<compile_context>
chip_gen: v7x
topology: tpu7x:2x2x1
jax: 0.10.0
libtpu: 0.0.40
codegen_flags: <defaults>
</compile_context>

<pallas_src>
import functools

import jax
import jax.numpy as jnp
from jax import lax
from jax.experimental import pallas as pl
from jax.experimental.pallas import tpu as pltpu


# ----------------------------- in-kernel math ------------------------------ #

def _gelu_tanh(x):
    # tanh-approximate GELU: the tanh goes to the EUP (separate VLIW slot);
    # |err| vs exact erf-GELU < 3e-3, well inside the test tolerance.
    c0 = 0.7978845608028654  # sqrt(2/pi)
    return 0.5 * x * (1.0 + jnp.tanh(c0 * (x + 0.044715 * x * x * x)))


def mednext_down_kernel(xpar_ref, wdw_ref, gamma_ref, beta_ref, gsel_ref,
                        gselt_ref, w1_ref, w2_ref, wres_ref, out_ref,
                        dw_s, res_s, *, k, Ho, Wo, group_count, eps, s_chunk):
    pad = k // 2
    S = Ho * Wo
    C = dw_s.shape[1]

    # --- depthwise kxk stride-2 conv: streamed accumulation over k*k taps ---
    # tap (kh,kw) = parity plane (kh%2, kw%2), unit-stride window.
    dw = jnp.zeros((Ho, Wo, C), jnp.float32)
    for kh in range(k):
        for kw in range(k):
            tap = xpar_ref[(kh % 2) * 2 + (kw % 2),
                           kh // 2:kh // 2 + Ho,
                           kw // 2:kw // 2 + Wo, :].astype(jnp.float32)
            kk = kh * k + kw
            w_row = wdw_ref[kk:kk + 1, :]                      # (1, C) f32
            dw = dw + tap * w_row
            if kh == pad and kw == pad:
                # residual stream of the stride-2 1x1 conv == the center tap
                res_s[...] = tap.reshape(S, C).astype(res_s.dtype)

    # --- GroupNorm statistics in f32; per-group reduce via tiny (C,G) dots ---
    s1 = jnp.sum(jnp.sum(dw, axis=0), axis=0, keepdims=True)          # (1, C)
    s2 = jnp.sum(jnp.sum(dw * dw, axis=0), axis=0, keepdims=True)     # (1, C)
    gs1 = jnp.dot(s1, gsel_ref[...], preferred_element_type=jnp.float32)  # (1, G)
    gs2 = jnp.dot(s2, gsel_ref[...], preferred_element_type=jnp.float32)
    mean_g = gs1 * (1.0 / group_count)
    var_g = gs2 * (1.0 / group_count) - mean_g * mean_g               # biased
    inv_g = lax.rsqrt(var_g + eps)
    mean = jnp.dot(mean_g, gselt_ref[...], preferred_element_type=jnp.float32)
    inv = jnp.dot(inv_g, gselt_ref[...], preferred_element_type=jnp.float32)
    # folded affine:  y = dw * scale + shift
    scale = inv * gamma_ref[...]                                      # (1, C)
    shift = beta_ref[...] - mean * scale                              # (1, C)

    dw_s[...] = dw.reshape(S, C)

    # --- chunked 1x1 expand -> GELU -> 1x1 project (+ residual), bf16 MXU ---
    def chunk_body(i, carry):
        off = pl.multiple_of(i * s_chunk, s_chunk)
        dwc = dw_s[pl.ds(off, s_chunk), :]
        y = (dwc * scale + shift).astype(jnp.bfloat16)
        h = jnp.dot(y, w1_ref[...], preferred_element_type=jnp.float32)
        h = _gelu_tanh(h).astype(jnp.bfloat16)
        o = jnp.dot(h, w2_ref[...], preferred_element_type=jnp.float32)
        rc = res_s[pl.ds(off, s_chunk), :]
        o = o + jnp.dot(rc, wres_ref[...], preferred_element_type=jnp.float32)
        out_ref[0, pl.ds(off, s_chunk), :] = o.astype(out_ref.dtype)
        return carry

    lax.fori_loop(0, S // s_chunk, chunk_body, 0)


# ------------------------------ host wrapper ------------------------------- #

def mednext_down(x_nchw, params, *, kernel_size=5, groups=32):
    N, C, H, W = x_nchw.shape
    k = kernel_size
    assert k % 2 == 1, "odd kernel_size assumed (pad=k//2, residual == center tap)"
    assert C % groups == 0
    pad = k // 2
    Ho = (H + 2 * pad - k) // 2 + 1
    Wo = (W + 2 * pad - k) // 2 + 1
    S = Ho * Wo
    E4 = params["w1_pt"].shape[0]          # C * expansion
    C2 = params["w2_pt"].shape[0]          # 2 * C
    C2p = ((C2 + 127) // 128) * 128        # lane-dense output block width

    # parity-decimated, zero-padded, channels-last input (bf16, ~1x HBM bytes).
    # Tap (kh,kw) of the stride-2 conv is the unit-stride window
    #   xpar[(kh%2)*2 + kw%2, kh//2 : kh//2+Ho, kw//2 : kw//2+Wo, :].
    x_nhwc = jnp.transpose(x_nchw, (0, 2, 3, 1))               # (N, H, W, C)
    x_pad = jnp.pad(x_nhwc, ((0, 0), (pad, pad), (pad, pad), (0, 0)))
    Hh = Ho + (k - 1) // 2
    Wh = Wo + (k - 1) // 2
    planes = []
    for ph in range(2):
        for pw in range(2):
            q = x_pad[:, ph::2, pw::2, :][:, :Hh, :Wh, :]
            q = jnp.pad(q, ((0, 0), (0, Hh - q.shape[1]),
                            (0, Wh - q.shape[2]), (0, 0)))
            planes.append(q)
    xpar = (jnp.stack(planes, axis=1)
            .reshape(N * 4, Hh, Wh, C).astype(jnp.bfloat16))   # (4N, Hh, Wh, C)

    # weight layout conversion; MXU operands in bf16, VALU/GN params in f32.
    wdw = params["dw_pt"].reshape(C, k * k).T.astype(jnp.float32)        # (k*k, C)
    w1 = params["w1_pt"][:, :, 0, 0].T.astype(jnp.bfloat16)              # (C, 4C)
    w2 = jnp.pad(params["w2_pt"][:, :, 0, 0].T.astype(jnp.bfloat16),
                 ((0, 0), (0, C2p - C2)))                                # (4C, C2p)
    wres = jnp.pad(params["wres_pt"][:, :, 0, 0].T.astype(jnp.bfloat16),
                   ((0, 0), (0, C2p - C2)))                              # (C, C2p)
    gamma = params["gamma"].reshape(1, C).astype(jnp.float32)
    beta = params["beta"].reshape(1, C).astype(jnp.float32)
    gid = jnp.arange(C) // (C // groups)
    gsel = (gid[:, None] == jnp.arange(groups)[None, :]).astype(jnp.float32)  # (C, G)
    gselt = gsel.T                                                            # (G, C)

    group_count = float(S * (C // groups))
    s_chunk = S
    for cand in (512, 256, 128, 64, 32, 16, 8):
        if cand <= S and S % cand == 0:
            s_chunk = cand
            break

    kernel = functools.partial(mednext_down_kernel, k=k, Ho=Ho, Wo=Wo,
                               group_count=group_count, eps=1e-5,
                               s_chunk=s_chunk)

    out = pl.pallas_call(
        kernel,
        out_shape=jax.ShapeDtypeStruct((N, S, C2p), jnp.float32),
        grid=(N,),
        in_specs=[
            pl.BlockSpec((4, Hh, Wh, C), lambda n: (n, 0, 0, 0)),   # parity planes
            pl.BlockSpec((k * k, C), lambda n: (0, 0)),             # depthwise w
            pl.BlockSpec((1, C), lambda n: (0, 0)),                 # gamma
            pl.BlockSpec((1, C), lambda n: (0, 0)),                 # beta
            pl.BlockSpec((C, groups), lambda n: (0, 0)),            # group select
            pl.BlockSpec((groups, C), lambda n: (0, 0)),            # group scatter
            pl.BlockSpec((C, E4), lambda n: (0, 0)),                # w1
            pl.BlockSpec((E4, C2p), lambda n: (0, 0)),              # w2 (padded)
            pl.BlockSpec((C, C2p), lambda n: (0, 0)),               # wres (padded)
        ],
        out_specs=pl.BlockSpec((1, S, C2p), lambda n: (n, 0, 0)),
        scratch_shapes=[pltpu.VMEM((S, C), jnp.float32),            # dw
                        pltpu.VMEM((S, C), jnp.bfloat16)],          # residual taps
        compiler_params=pltpu.CompilerParams(
            dimension_semantics=("parallel",)),
    )(xpar, wdw, gamma, beta, gsel, gselt, w1, w2, wres)

    out = out[:, :, :C2].reshape(N, Ho, Wo, C2)
    return jnp.transpose(out, (0, 3, 1, 2))                         # NCHW


# --------------------------- pure-JAX reference ----------------------------- #

def mednext_down_ref(x, params, *, kernel_size=5, groups=32):
    N, C, H, W = x.shape
    pad = kernel_size // 2
    dn = ("NCHW", "OIHW", "NCHW")
    y = lax.conv_general_dilated(x, params["dw_pt"], (2, 2),
                                 [(pad, pad), (pad, pad)],
                                 feature_group_count=C, dimension_numbers=dn)
    Ny, Cy, Hy, Wy = y.shape
    yg = y.reshape(Ny, groups, Cy // groups, Hy, Wy)
    mean = yg.mean(axis=(2, 3, 4), keepdims=True)
    var = yg.var(axis=(2, 3, 4), keepdims=True)
    yn = ((yg - mean) / jnp.sqrt(var + 1e-5)).reshape(Ny, Cy, Hy, Wy)
    yn = yn * params["gamma"][None, :, None, None] + params["beta"][None, :, None, None]
    h = lax.conv_general_dilated(yn, params["w1_pt"], (1, 1), "VALID",
                                 dimension_numbers=dn)
    h = jax.nn.gelu(h, approximate=False)
    out = lax.conv_general_dilated(h, params["w2_pt"], (1, 1), "VALID",
                                   dimension_numbers=dn)
    resid = lax.conv_general_dilated(x, params["wres_pt"], (2, 2), "VALID",
                                     dimension_numbers=dn)
    return out + resid


# ---------------------------------- main ------------------------------------ #

if __name__ == "__main__":
    # Small but module-consistent shapes: C must be divisible by groups (=32).
    N, C, H, W = 2, 32, 16, 16
    K, EXP, GROUPS = 5, 4, 32

    key = jax.random.PRNGKey(0)
    kx, k1, k2, k3, k4, k5, k6 = jax.random.split(key, 7)

    x = jax.random.normal(kx, (N, C, H, W), dtype=jnp.float32)

    params = {
        "dw_pt":   0.2 * jax.random.normal(k1, (C, 1, K, K), dtype=jnp.float32),
        "gamma":   1.0 + 0.1 * jax.random.normal(k2, (C,), dtype=jnp.float32),
        "beta":    0.1 * jax.random.normal(k3, (C,), dtype=jnp.float32),
        "w1_pt":   (1.0 / (C ** 0.5)) * jax.random.normal(
            k4, (C * EXP, C, 1, 1), dtype=jnp.float32),
        "w2_pt":   (1.0 / ((C * EXP) ** 0.5)) * jax.random.normal(
            k5, (2 * C, C * EXP, 1, 1), dtype=jnp.float32),
        "wres_pt": (1.0 / (C ** 0.5)) * jax.random.normal(
            k6, (2 * C, C, 1, 1), dtype=jnp.float32),
    }

    out = mednext_down(x, params, kernel_size=K, groups=GROUPS)
    out = jax.block_until_ready(out)

    ref = jax.block_until_ready(
        mednext_down_ref(x, params, kernel_size=K, groups=GROUPS))

    assert out.shape == (N, 2 * C, H // 2, W // 2), out.shape
    max_err = float(jnp.max(jnp.abs(out - ref)))
    scale = float(jnp.max(jnp.abs(ref))) + 1.0
    assert max_err < 2e-2 * scale, f"mismatch: max_err={max_err}"

    print("KERNEL_OK")
</pallas_src>

<mosaic_0001>
module attributes {stable_mosaic.version = 11 : i64} {
  func.func @mednext_down_kernel(%arg0: i32, %arg1: memref<4x10x10x32xbf16, #tpu.memory_space<vmem>>, %arg2: memref<25x32xf32, #tpu.memory_space<vmem>>, %arg3: memref<1x32xf32, #tpu.memory_space<vmem>>, %arg4: memref<1x32xf32, #tpu.memory_space<vmem>>, %arg5: memref<32x32xf32, #tpu.memory_space<vmem>>, %arg6: memref<32x32xf32, #tpu.memory_space<vmem>>, %arg7: memref<32x128xbf16, #tpu.memory_space<vmem>>, %arg8: memref<128x128xbf16, #tpu.memory_space<vmem>>, %arg9: memref<32x128xbf16, #tpu.memory_space<vmem>>, %arg10: memref<1x64x128xf32, #tpu.memory_space<vmem>>, %arg11: memref<64x32xf32, #tpu.memory_space<vmem>>, %arg12: memref<64x32xbf16, #tpu.memory_space<vmem>>) attributes {dimension_semantics = [#tpu.dimension_semantics<parallel>], iteration_bounds = array<i64: 2>, scalar_prefetch = 0 : i64, scratch_operands = 2 : i64, tpu.core_type = #tpu.core_type<tc>, window_params = [{transform_indices = @transform_0, window_bounds = array<i64: 4, 10, 10, 32>}, {pipeline_mode = #tpu.pipeline_mode<synchronous>, transform_indices = @transform_1, window_bounds = array<i64: 25, 32>}, {pipeline_mode = #tpu.pipeline_mode<synchronous>, transform_indices = @transform_2, window_bounds = array<i64: 1, 32>}, {pipeline_mode = #tpu.pipeline_mode<synchronous>, transform_indices = @transform_3, window_bounds = array<i64: 1, 32>}, {pipeline_mode = #tpu.pipeline_mode<synchronous>, transform_indices = @transform_4, window_bounds = array<i64: 32, 32>}, {pipeline_mode = #tpu.pipeline_mode<synchronous>, transform_indices = @transform_5, window_bounds = array<i64: 32, 32>}, {pipeline_mode = #tpu.pipeline_mode<synchronous>, transform_indices = @transform_6, window_bounds = array<i64: 32, 128>}, {pipeline_mode = #tpu.pipeline_mode<synchronous>, transform_indices = @transform_7, window_bounds = array<i64: 128, 128>}, {pipeline_mode = #tpu.pipeline_mode<synchronous>, transform_indices = @transform_8, window_bounds = array<i64: 32, 128>}, {transform_indices = @transform_9, window_bounds = array<i64: 1, 64, 128>}]} {
    %cst = arith.constant 0.000000e+00 : f32
    %0 = vector.broadcast %cst : f32 to vector<8x8x32xf32>
    %c0 = arith.constant 0 : index
    %c0_0 = arith.constant 0 : index
    %c0_1 = arith.constant 0 : index
    %c0_2 = arith.constant 0 : index
    %1 = vector.load %arg1[%c0, %c0_0, %c0_1, %c0_2] : memref<4x10x10x32xbf16, #tpu.memory_space<vmem>>, vector<1x8x8x32xbf16>
    %2 = vector.shape_cast %1 : vector<1x8x8x32xbf16> to vector<8x8x32xbf16>
    %3 = arith.extf %2 : vector<8x8x32xbf16> to vector<8x8x32xf32>
    %c0_3 = arith.constant 0 : index
    %c0_4 = arith.constant 0 : index
    %4 = vector.load %arg2[%c0_3, %c0_4] : memref<25x32xf32, #tpu.memory_space<vmem>>, vector<1x32xf32>
    %5 = vector.shape_cast %4 : vector<1x32xf32> to vector<1x1x32xf32>
    %6 = vector.broadcast %5 : vector<1x1x32xf32> to vector<8x8x32xf32>
    %7 = arith.mulf %3, %6 : vector<8x8x32xf32>
    %8 = arith.addf %0, %7 : vector<8x8x32xf32>
    %c1 = arith.constant 1 : index
    %c0_5 = arith.constant 0 : index
    %c0_6 = arith.constant 0 : index
    %c0_7 = arith.constant 0 : index
    %9 = vector.load %arg1[%c1, %c0_5, %c0_6, %c0_7] : memref<4x10x10x32xbf16, #tpu.memory_space<vmem>>, vector<1x8x8x32xbf16>
    %10 = vector.shape_cast %9 : vector<1x8x8x32xbf16> to vector<8x8x32xbf16>
    %11 = arith.extf %10 : vector<8x8x32xbf16> to vector<8x8x32xf32>
    %c1_8 = arith.constant 1 : index
    %c0_9 = arith.constant 0 : index
    %12 = vector.load %arg2[%c1_8, %c0_9] : memref<25x32xf32, #tpu.memory_space<vmem>>, vector<1x32xf32>
    %13 = vector.shape_cast %12 : vector<1x32xf32> to vector<1x1x32xf32>
    %14 = vector.broadcast %13 : vector<1x1x32xf32> to vector<8x8x32xf32>
    %15 = arith.mulf %11, %14 : vector<8x8x32xf32>
    %16 = arith.addf %8, %15 : vector<8x8x32xf32>
    %c0_10 = arith.constant 0 : index
    %c0_11 = arith.constant 0 : index
    %c1_12 = arith.constant 1 : index
    %c0_13 = arith.constant 0 : index
    %17 = vector.load %arg1[%c0_10, %c0_11, %c1_12, %c0_13] : memref<4x10x10x32xbf16, #tpu.memory_space<vmem>>, vector<1x8x8x32xbf16>
    %18 = vector.shape_cast %17 : vector<1x8x8x32xbf16> to vector<8x8x32xbf16>
    %19 = arith.extf %18 : vector<8x8x32xbf16> to vector<8x8x32xf32>
    %c2 = arith.constant 2 : index
    %c0_14 = arith.constant 0 : index
    %20 = vector.load %arg2[%c2, %c0_14] : memref<25x32xf32, #tpu.memory_space<vmem>>, vector<1x32xf32>
    %21 = vector.shape_cast %20 : vector<1x32xf32> to vector<1x1x32xf32>
    %22 = vector.broadcast %21 : vector<1x1x32xf32> to vector<8x8x32xf32>
    %23 = arith.mulf %19, %22 : vector<8x8x32xf32>
    %24 = arith.addf %16, %23 : vector<8x8x32xf32>
    %c1_15 = arith.constant 1 : index
    %c0_16 = arith.constant 0 : index
    %c1_17 = arith.constant 1 : index
    %c0_18 = arith.constant 0 : index
    %25 = vector.load %arg1[%c1_15, %c0_16, %c1_17, %c0_18] : memref<4x10x10x32xbf16, #tpu.memory_space<vmem>>, vector<1x8x8x32xbf16>
    %26 = vector.shape_cast %25 : vector<1x8x8x32xbf16> to vector<8x8x32xbf16>
    %27 = arith.extf %26 : vector<8x8x32xbf16> to vector<8x8x32xf32>
    %c3 = arith.constant 3 : index
    %c0_19 = arith.constant 0 : index
    %28 = vector.load %arg2[%c3, %c0_19] : memref<25x32xf32, #tpu.memory_space<vmem>>, vector<1x32xf32>
    %29 = vector.shape_cast %28 : vector<1x32xf32> to vector<1x1x32xf32>
    %30 = vector.broadcast %29 : vector<1x1x32xf32> to vector<8x8x32xf32>
    %31 = arith.mulf %27, %30 : vector<8x8x32xf32>
    %32 = arith.addf %24, %31 : vector<8x8x32xf32>
    %c0_20 = arith.constant 0 : index
    %c0_21 = arith.constant 0 : index
    %c2_22 = arith.constant 2 : index
    %c0_23 = arith.constant 0 : index
    %33 = vector.load %arg1[%c0_20, %c0_21, %c2_22, %c0_23] : memref<4x10x10x32xbf16, #tpu.memory_space<vmem>>, vector<1x8x8x32xbf16>
    %34 = vector.shape_cast %33 : vector<1x8x8x32xbf16> to vector<8x8x32xbf16>
    %35 = arith.extf %34 : vector<8x8x32xbf16> to vector<8x8x32xf32>
    %c4 = arith.constant 4 : index
    %c0_24 = arith.constant 0 : index
    %36 = vector.load %arg2[%c4, %c0_24] : memref<25x32xf32, #tpu.memory_space<vmem>>, vector<1x32xf32>
    %37 = vector.shape_cast %36 : vector<1x32xf32> to vector<1x1x32xf32>
    %38 = vector.broadcast %37 : vector<1x1x32xf32> to vector<8x8x32xf32>
    %39 = arith.mulf %35, %38 : vector<8x8x32xf32>
    %40 = arith.addf %32, %39 : vector<8x8x32xf32>
    %c2_25 = arith.constant 2 : index
    %c0_26 = arith.constant 0 : index
    %c0_27 = arith.constant 0 : index
    %c0_28 = arith.constant 0 : index
    %41 = vector.load %arg1[%c2_25, %c0_26, %c0_27, %c0_28] : memref<4x10x10x32xbf16, #tpu.memory_space<vmem>>, vector<1x8x8x32xbf16>
    %42 = vector.shape_cast %41 : vector<1x8x8x32xbf16> to vector<8x8x32xbf16>
    %43 = arith.extf %42 : vector<8x8x32xbf16> to vector<8x8x32xf32>
    %c5 = arith.constant 5 : index
    %c0_29 = arith.constant 0 : index
    %44 = vector.load %arg2[%c5, %c0_29] : memref<25x32xf32, #tpu.memory_space<vmem>>, vector<1x32xf32>
    %45 = vector.shape_cast %44 : vector<1x32xf32> to vector<1x1x32xf32>
    %46 = vector.broadcast %45 : vector<1x1x32xf32> to vector<8x8x32xf32>
    %47 = arith.mulf %43, %46 : vector<8x8x32xf32>
    %48 = arith.addf %40, %47 : vector<8x8x32xf32>
    %c3_30 = arith.constant 3 : index
    %c0_31 = arith.constant 0 : index
    %c0_32 = arith.constant 0 : index
    %c0_33 = arith.constant 0 : index
    %49 = vector.load %arg1[%c3_30, %c0_31, %c0_32, %c0_33] : memref<4x10x10x32xbf16, #tpu.memory_space<vmem>>, vector<1x8x8x32xbf16>
    %50 = vector.shape_cast %49 : vector<1x8x8x32xbf16> to vector<8x8x32xbf16>
    %51 = arith.extf %50 : vector<8x8x32xbf16> to vector<8x8x32xf32>
    %c6 = arith.constant 6 : index
    %c0_34 = arith.constant 0 : index
    %52 = vector.load %arg2[%c6, %c0_34] : memref<25x32xf32, #tpu.memory_space<vmem>>, vector<1x32xf32>
    %53 = vector.shape_cast %52 : vector<1x32xf32> to vector<1x1x32xf32>
    %54 = vector.broadcast %53 : vector<1x1x32xf32> to vector<8x8x32xf32>
    %55 = arith.mulf %51, %54 : vector<8x8x32xf32>
    %56 = arith.addf %48, %55 : vector<8x8x32xf32>
    %c2_35 = arith.constant 2 : index
    %c0_36 = arith.constant 0 : index
    %c1_37 = arith.constant 1 : index
    %c0_38 = arith.constant 0 : index
    %57 = vector.load %arg1[%c2_35, %c0_36, %c1_37, %c0_38] : memref<4x10x10x32xbf16, #tpu.memory_space<vmem>>, vector<1x8x8x32xbf16>
    %58 = vector.shape_cast %57 : vector<1x8x8x32xbf16> to vector<8x8x32xbf16>
    %59 = arith.extf %58 : vector<8x8x32xbf16> to vector<8x8x32xf32>
    %c7 = arith.constant 7 : index
    %c0_39 = arith.constant 0 : index
    %60 = vector.load %arg2[%c7, %c0_39] : memref<25x32xf32, #tpu.memory_space<vmem>>, vector<1x32xf32>
    %61 = vector.shape_cast %60 : vector<1x32xf32> to vector<1x1x32xf32>
    %62 = vector.broadcast %61 : vector<1x1x32xf32> to vector<8x8x32xf32>
    %63 = arith.mulf %59, %62 : vector<8x8x32xf32>
    %64 = arith.addf %56, %63 : vector<8x8x32xf32>
    %c3_40 = arith.constant 3 : index
    %c0_41 = arith.constant 0 : index
    %c1_42 = arith.constant 1 : index
    %c0_43 = arith.constant 0 : index
    %65 = vector.load %arg1[%c3_40, %c0_41, %c1_42, %c0_43] : memref<4x10x10x32xbf16, #tpu.memory_space<vmem>>, vector<1x8x8x32xbf16>
    %66 = vector.shape_cast %65 : vector<1x8x8x32xbf16> to vector<8x8x32xbf16>
    %67 = arith.extf %66 : vector<8x8x32xbf16> to vector<8x8x32xf32>
    %c8 = arith.constant 8 : index
    %c0_44 = arith.constant 0 : index
    %68 = vector.load %arg2[%c8, %c0_44] : memref<25x32xf32, #tpu.memory_space<vmem>>, vector<1x32xf32>
    %69 = vector.shape_cast %68 : vector<1x32xf32> to vector<1x1x32xf32>
    %70 = vector.broadcast %69 : vector<1x1x32xf32> to vector<8x8x32xf32>
    %71 = arith.mulf %67, %70 : vector<8x8x32xf32>
    %72 = arith.addf %64, %71 : vector<8x8x32xf32>
    %c2_45 = arith.constant 2 : index
    %c0_46 = arith.constant 0 : index
    %c2_47 = arith.constant 2 : index
    %c0_48 = arith.constant 0 : index
    %73 = vector.load %arg1[%c2_45, %c0_46, %c2_47, %c0_48] : memref<4x10x10x32xbf16, #tpu.memory_space<vmem>>, vector<1x8x8x32xbf16>
    %74 = vector.shape_cast %73 : vector<1x8x8x32xbf16> to vector<8x8x32xbf16>
    %75 = arith.extf %74 : vector<8x8x32xbf16> to vector<8x8x32xf32>
    %c9 = arith.constant 9 : index
    %c0_49 = arith.constant 0 : index
    %76 = vector.load %arg2[%c9, %c0_49] : memref<25x32xf32, #tpu.memory_space<vmem>>, vector<1x32xf32>
    %77 = vector.shape_cast %76 : vector<1x32xf32> to vector<1x1x32xf32>
    %78 = vector.broadcast %77 : vector<1x1x32xf32> to vector<8x8x32xf32>
    %79 = arith.mulf %75, %78 : vector<8x8x32xf32>
    %80 = arith.addf %72, %79 : vector<8x8x32xf32>
    %c0_50 = arith.constant 0 : index
    %c1_51 = arith.constant 1 : index
    %c0_52 = arith.constant 0 : index
    %c0_53 = arith.constant 0 : index
    %81 = vector.load %arg1[%c0_50, %c1_51, %c0_52, %c0_53] : memref<4x10x10x32xbf16, #tpu.memory_space<vmem>>, vector<1x8x8x32xbf16>
    %82 = vector.shape_cast %81 : vector<1x8x8x32xbf16> to vector<8x8x32xbf16>
    %83 = arith.extf %82 : vector<8x8x32xbf16> to vector<8x8x32xf32>
    %c10 = arith.constant 10 : index
    %c0_54 = arith.constant 0 : index
    %84 = vector.load %arg2[%c10, %c0_54] : memref<25x32xf32, #tpu.memory_space<vmem>>, vector<1x32xf32>
    %85 = vector.shape_cast %84 : vector<1x32xf32> to vector<1x1x32xf32>
    %86 = vector.broadcast %85 : vector<1x1x32xf32> to vector<8x8x32xf32>
    %87 = arith.mulf %83, %86 : vector<8x8x32xf32>
    %88 = arith.addf %80, %87 : vector<8x8x32xf32>
    %c1_55 = arith.constant 1 : index
    %c1_56 = arith.constant 1 : index
    %c0_57 = arith.constant 0 : index
    %c0_58 = arith.constant 0 : index
    %89 = vector.load %arg1[%c1_55, %c1_56, %c0_57, %c0_58] : memref<4x10x10x32xbf16, #tpu.memory_space<vmem>>, vector<1x8x8x32xbf16>
    %90 = vector.shape_cast %89 : vector<1x8x8x32xbf16> to vector<8x8x32xbf16>
    %91 = arith.extf %90 : vector<8x8x32xbf16> to vector<8x8x32xf32>
    %c11 = arith.constant 11 : index
    %c0_59 = arith.constant 0 : index
    %92 = vector.load %arg2[%c11, %c0_59] : memref<25x32xf32, #tpu.memory_space<vmem>>, vector<1x32xf32>
    %93 = vector.shape_cast %92 : vector<1x32xf32> to vector<1x1x32xf32>
    %94 = vector.broadcast %93 : vector<1x1x32xf32> to vector<8x8x32xf32>
    %95 = arith.mulf %91, %94 : vector<8x8x32xf32>
    %96 = arith.addf %88, %95 : vector<8x8x32xf32>
    %c0_60 = arith.constant 0 : index
    %c1_61 = arith.constant 1 : index
    %c1_62 = arith.constant 1 : index
    %c0_63 = arith.constant 0 : index
    %97 = vector.load %arg1[%c0_60, %c1_61, %c1_62, %c0_63] : memref<4x10x10x32xbf16, #tpu.memory_space<vmem>>, vector<1x8x8x32xbf16>
    %98 = vector.shape_cast %97 : vector<1x8x8x32xbf16> to vector<8x8x32xbf16>
    %99 = arith.extf %98 : vector<8x8x32xbf16> to vector<8x8x32xf32>
    %c12 = arith.constant 12 : index
    %c0_64 = arith.constant 0 : index
    %100 = vector.load %arg2[%c12, %c0_64] : memref<25x32xf32, #tpu.memory_space<vmem>>, vector<1x32xf32>
    %101 = vector.shape_cast %100 : vector<1x32xf32> to vector<1x1x32xf32>
    %102 = vector.broadcast %101 : vector<1x1x32xf32> to vector<8x8x32xf32>
    %103 = arith.mulf %99, %102 : vector<8x8x32xf32>
    %104 = arith.addf %96, %103 : vector<8x8x32xf32>
    %105 = vector.shape_cast %99 : vector<8x8x32xf32> to vector<64x32xf32>
    %106 = arith.truncf %105 : vector<64x32xf32> to vector<64x32xbf16>
    %c0_65 = arith.constant 0 : index
    %c0_66 = arith.constant 0 : index
    %107 = vector.load %arg12[%c0_65, %c0_66] : memref<64x32xbf16, #tpu.memory_space<vmem>>, vector<64x32xbf16>
    tpu.vector_store %arg12[%c0_65, %c0_66], %106 {strides = array<i32>} : memref<64x32xbf16, #tpu.memory_space<vmem>>, vector<64x32xbf16>,
    %c1_67 = arith.constant 1 : index
    %c1_68 = arith.constant 1 : index
    %c1_69 = arith.constant 1 : index
    %c0_70 = arith.constant 0 : index
    %108 = vector.load %arg1[%c1_67, %c1_68, %c1_69, %c0_70] : memref<4x10x10x32xbf16, #tpu.memory_space<vmem>>, vector<1x8x8x32xbf16>
    %109 = vector.shape_cast %108 : vector<1x8x8x32xbf16> to vector<8x8x32xbf16>
    %110 = arith.extf %109 : vector<8x8x32xbf16> to vector<8x8x32xf32>
    %c13 = arith.constant 13 : index
    %c0_71 = arith.constant 0 : index
    %111 = vector.load %arg2[%c13, %c0_71] : memref<25x32xf32, #tpu.memory_space<vmem>>, vector<1x32xf32>
    %112 = vector.shape_cast %111 : vector<1x32xf32> to vector<1x1x32xf32>
    %113 = vector.broadcast %112 : vector<1x1x32xf32> to vector<8x8x32xf32>
    %114 = arith.mulf %110, %113 : vector<8x8x32xf32>
    %115 = arith.addf %104, %114 : vector<8x8x32xf32>
    %c0_72 = arith.constant 0 : index
    %c1_73 = arith.constant 1 : index
    %c2_74 = arith.constant 2 : index
    %c0_75 = arith.constant 0 : index
    %116 = vector.load %arg1[%c0_72, %c1_73, %c2_74, %c0_75] : memref<4x10x10x32xbf16, #tpu.memory_space<vmem>>, vector<1x8x8x32xbf16>
    %117 = vector.shape_cast %116 : vector<1x8x8x32xbf16> to vector<8x8x32xbf16>
    %118 = arith.extf %117 : vector<8x8x32xbf16> to vector<8x8x32xf32>
    %c14 = arith.constant 14 : index
    %c0_76 = arith.constant 0 : index
    %119 = vector.load %arg2[%c14, %c0_76] : memref<25x32xf32, #tpu.memory_space<vmem>>, vector<1x32xf32>
    %120 = vector.shape_cast %119 : vector<1x32xf32> to vector<1x1x32xf32>
    %121 = vector.broadcast %120 : vector<1x1x32xf32> to vector<8x8x32xf32>
    %122 = arith.mulf %118, %121 : vector<8x8x32xf32>
    %123 = arith.addf %115, %122 : vector<8x8x32xf32>
    %c2_77 = arith.constant 2 : index
    %c1_78 = arith.constant 1 : index
    %c0_79 = arith.constant 0 : index
    %c0_80 = arith.constant 0 : index
    %124 = vector.load %arg1[%c2_77, %c1_78, %c0_79, %c0_80] : memref<4x10x10x32xbf16, #tpu.memory_space<vmem>>, vector<1x8x8x32xbf16>
    %125 = vector.shape_cast %124 : vector<1x8x8x32xbf16> to vector<8x8x32xbf16>
    %126 = arith.extf %125 : vector<8x8x32xbf16> to vector<8x8x32xf32>
    %c15 = arith.constant 15 : index
    %c0_81 = arith.constant 0 : index
    %127 = vector.load %arg2[%c15, %c0_81] : memref<25x32xf32, #tpu.memory_space<vmem>>, vector<1x32xf32>
    %128 = vector.shape_cast %127 : vector<1x32xf32> to vector<1x1x32xf32>
    %129 = vector.broadcast %128 : vector<1x1x32xf32> to vector<8x8x32xf32>
    %130 = arith.mulf %126, %129 : vector<8x8x32xf32>
    %131 = arith.addf %123, %130 : vector<8x8x32xf32>
    %c3_82 = arith.constant 3 : index
    %c1_83 = arith.constant 1 : index
    %c0_84 = arith.constant 0 : index
    %c0_85 = arith.constant 0 : index
    %132 = vector.load %arg1[%c3_82, %c1_83, %c0_84, %c0_85] : memref<4x10x10x32xbf16, #tpu.memory_space<vmem>>, vector<1x8x8x32xbf16>
    %133 = vector.shape_cast %132 : vector<1x8x8x32xbf16> to vector<8x8x32xbf16>
    %134 = arith.extf %133 : vector<8x8x32xbf16> to vector<8x8x32xf32>
    %c16 = arith.constant 16 : index
    %c0_86 = arith.constant 0 : index
    %135 = vector.load %arg2[%c16, %c0_86] : memref<25x32xf32, #tpu.memory_space<vmem>>, vector<1x32xf32>
    %136 = vector.shape_cast %135 : vector<1x32xf32> to vector<1x1x32xf32>
    %137 = vector.broadcast %136 : vector<1x1x32xf32> to vector<8x8x32xf32>
    %138 = arith.mulf %134, %137 : vector<8x8x32xf32>
    %139 = arith.addf %131, %138 : vector<8x8x32xf32>
    %c2_87 = arith.constant 2 : index
    %c1_88 = arith.constant 1 : index
    %c1_89 = arith.constant 1 : index
    %c0_90 = arith.constant 0 : index
    %140 = vector.load %arg1[%c2_87, %c1_88, %c1_89, %c0_90] : memref<4x10x10x32xbf16, #tpu.memory_space<vmem>>, vector<1x8x8x32xbf16>
    %141 = vector.shape_cast %140 : vector<1x8x8x32xbf16> to vector<8x8x32xbf16>
    %142 = arith.extf %141 : vector<8x8x32xbf16> to vector<8x8x32xf32>
    %c17 = arith.constant 17 : index
    %c0_91 = arith.constant 0 : index
    %143 = vector.load %arg2[%c17, %c0_91] : memref<25x32xf32, #tpu.memory_space<vmem>>, vector<1x32xf32>
    %144 = vector.shape_cast %143 : vector<1x32xf32> to vector<1x1x32xf32>
    %145 = vector.broadcast %144 : vector<1x1x32xf32> to vector<8x8x32xf32>
    %146 = arith.mulf %142, %145 : vector<8x8x32xf32>
    %147 = arith.addf %139, %146 : vector<8x8x32xf32>
    %c3_92 = arith.constant 3 : index
    %c1_93 = arith.constant 1 : index
    %c1_94 = arith.constant 1 : index
    %c0_95 = arith.constant 0 : index
    %148 = vector.load %arg1[%c3_92, %c1_93, %c1_94, %c0_95] : memref<4x10x10x32xbf16, #tpu.memory_space<vmem>>, vector<1x8x8x32xbf16>
    %149 = vector.shape_cast %148 : vector<1x8x8x32xbf16> to vector<8x8x32xbf16>
    %150 = arith.extf %149 : vector<8x8x32xbf16> to vector<8x8x32xf32>
    %c18 = arith.constant 18 : index
    %c0_96 = arith.constant 0 : index
    %151 = vector.load %arg2[%c18, %c0_96] : memref<25x32xf32, #tpu.memory_space<vmem>>, vector<1x32xf32>
    %152 = vector.shape_cast %151 : vector<1x32xf32> to vector<1x1x32xf32>
    %153 = vector.broadcast %152 : vector<1x1x32xf32> to vector<8x8x32xf32>
    %154 = arith.mulf %150, %153 : vector<8x8x32xf32>
    %155 = arith.addf %147, %154 : vector<8x8x32xf32>
    %c2_97 = arith.constant 2 : index
    %c1_98 = arith.constant 1 : index
    %c2_99 = arith.constant 2 : index
    %c0_100 = arith.constant 0 : index
    %156 = vector.load %arg1[%c2_97, %c1_98, %c2_99, %c0_100] : memref<4x10x10x32xbf16, #tpu.memory_space<vmem>>, vector<1x8x8x32xbf16>
    %157 = vector.shape_cast %156 : vector<1x8x8x32xbf16> to vector<8x8x32xbf16>
    %158 = arith.extf %157 : vector<8x8x32xbf16> to vector<8x8x32xf32>
    %c19 = arith.constant 19 : index
    %c0_101 = arith.constant 0 : index
    %159 = vector.load %arg2[%c19, %c0_101] : memref<25x32xf32, #tpu.memory_space<vmem>>, vector<1x32xf32>
    %160 = vector.shape_cast %159 : vector<1x32xf32> to vector<1x1x32xf32>
    %161 = vector.broadcast %160 : vector<1x1x32xf32> to vector<8x8x32xf32>
    %162 = arith.mulf %158, %161 : vector<8x8x32xf32>
    %163 = arith.addf %155, %162 : vector<8x8x32xf32>
    %c0_102 = arith.constant 0 : index
    %c2_103 = arith.constant 2 : index
    %c0_104 = arith.constant 0 : index
    %c0_105 = arith.constant 0 : index
    %164 = vector.load %arg1[%c0_102, %c2_103, %c0_104, %c0_105] : memref<4x10x10x32xbf16, #tpu.memory_space<vmem>>, vector<1x8x8x32xbf16>
    %165 = vector.shape_cast %164 : vector<1x8x8x32xbf16> to vector<8x8x32xbf16>
    %166 = arith.extf %165 : vector<8x8x32xbf16> to vector<8x8x32xf32>
    %c20 = arith.constant 20 : index
    %c0_106 = arith.constant 0 : index
    %167 = vector.load %arg2[%c20, %c0_106] : memref<25x32xf32, #tpu.memory_space<vmem>>, vector<1x32xf32>
    %168 = vector.shape_cast %167 : vector<1x32xf32> to vector<1x1x32xf32>
    %169 = vector.broadcast %168 : vector<1x1x32xf32> to vector<8x8x32xf32>
    %170 = arith.mulf %166, %169 : vector<8x8x32xf32>
    %171 = arith.addf %163, %170 : vector<8x8x32xf32>
    %c1_107 = arith.constant 1 : index
    %c2_108 = arith.constant 2 : index
    %c0_109 = arith.constant 0 : index
    %c0_110 = arith.constant 0 : index
    %172 = vector.load %arg1[%c1_107, %c2_108, %c0_109, %c0_110] : memref<4x10x10x32xbf16, #tpu.memory_space<vmem>>, vector<1x8x8x32xbf16>
    %173 = vector.shape_cast %172 : vector<1x8x8x32xbf16> to vector<8x8x32xbf16>
    %174 = arith.extf %173 : vector<8x8x32xbf16> to vector<8x8x32xf32>
    %c21 = arith.constant 21 : index
    %c0_111 = arith.constant 0 : index
    %175 = vector.load %arg2[%c21, %c0_111] : memref<25x32xf32, #tpu.memory_space<vmem>>, vector<1x32xf32>
    %176 = vector.shape_cast %175 : vector<1x32xf32> to vector<1x1x32xf32>
    %177 = vector.broadcast %176 : vector<1x1x32xf32> to vector<8x8x32xf32>
    %178 = arith.mulf %174, %177 : vector<8x8x32xf32>
    %179 = arith.addf %171, %178 : vector<8x8x32xf32>
    %c0_112 = arith.constant 0 : index
    %c2_113 = arith.constant 2 : index
    %c1_114 = arith.constant 1 : index
    %c0_115 = arith.constant 0 : index
    %180 = vector.load %arg1[%c0_112, %c2_113, %c1_114, %c0_115] : memref<4x10x10x32xbf16, #tpu.memory_space<vmem>>, vector<1x8x8x32xbf16>
    %181 = vector.shape_cast %180 : vector<1x8x8x32xbf16> to vector<8x8x32xbf16>
    %182 = arith.extf %181 : vector<8x8x32xbf16> to vector<8x8x32xf32>
    %c22 = arith.constant 22 : index
    %c0_116 = arith.constant 0 : index
    %183 = vector.load %arg2[%c22, %c0_116] : memref<25x32xf32, #tpu.memory_space<vmem>>, vector<1x32xf32>
    %184 = vector.shape_cast %183 : vector<1x32xf32> to vector<1x1x32xf32>
    %185 = vector.broadcast %184 : vector<1x1x32xf32> to vector<8x8x32xf32>
    %186 = arith.mulf %182, %185 : vector<8x8x32xf32>
    %187 = arith.addf %179, %186 : vector<8x8x32xf32>
    %c1_117 = arith.constant 1 : index
    %c2_118 = arith.constant 2 : index
    %c1_119 = arith.constant 1 : index
    %c0_120 = arith.constant 0 : index
    %188 = vector.load %arg1[%c1_117, %c2_118, %c1_119, %c0_120] : memref<4x10x10x32xbf16, #tpu.memory_space<vmem>>, vector<1x8x8x32xbf16>
    %189 = vector.shape_cast %188 : vector<1x8x8x32xbf16> to vector<8x8x32xbf16>
    %190 = arith.extf %189 : vector<8x8x32xbf16> to vector<8x8x32xf32>
    %c23 = arith.constant 23 : index
    %c0_121 = arith.constant 0 : index
    %191 = vector.load %arg2[%c23, %c0_121] : memref<25x32xf32, #tpu.memory_space<vmem>>, vector<1x32xf32>
    %192 = vector.shape_cast %191 : vector<1x32xf32> to vector<1x1x32xf32>
    %193 = vector.broadcast %192 : vector<1x1x32xf32> to vector<8x8x32xf32>
    %194 = arith.mulf %190, %193 : vector<8x8x32xf32>
    %195 = arith.addf %187, %194 : vector<8x8x32xf32>
    %c0_122 = arith.constant 0 : index
    %c2_123 = arith.constant 2 : index
    %c2_124 = arith.constant 2 : index
    %c0_125 = arith.constant 0 : index
    %196 = vector.load %arg1[%c0_122, %c2_123, %c2_124, %c0_125] : memref<4x10x10x32xbf16, #tpu.memory_space<vmem>>, vector<1x8x8x32xbf16>
    %197 = vector.shape_cast %196 : vector<1x8x8x32xbf16> to vector<8x8x32xbf16>
    %198 = arith.extf %197 : vector<8x8x32xbf16> to vector<8x8x32xf32>
    %c24 = arith.constant 24 : index
    %c0_126 = arith.constant 0 : index
    %199 = vector.load %arg2[%c24, %c0_126] : memref<25x32xf32, #tpu.memory_space<vmem>>, vector<1x32xf32>
    %200 = vector.shape_cast %199 : vector<1x32xf32> to vector<1x1x32xf32>
    %201 = vector.broadcast %200 : vector<1x1x32xf32> to vector<8x8x32xf32>
    %202 = arith.mulf %198, %201 : vector<8x8x32xf32>
    %203 = arith.addf %195, %202 : vector<8x8x32xf32>
    %cst_127 = arith.constant dense<0.000000e+00> : vector<8x32xf32>
    %204 = vector.multi_reduction <add>, %203, %cst_127 [0] : vector<8x8x32xf32> to vector<8x32xf32>
    %cst_128 = arith.constant dense<0.000000e+00> : vector<32xf32>
    %205 = vector.multi_reduction <add>, %204, %cst_128 [0] : vector<8x32xf32> to vector<32xf32>
    %206 = vector.shape_cast %205 : vector<32xf32> to vector<1x32xf32>
    %207 = arith.mulf %203, %203 : vector<8x8x32xf32>
    %cst_129 = arith.constant dense<0.000000e+00> : vector<8x32xf32>
    %208 = vector.multi_reduction <add>, %207, %cst_129 [0] : vector<8x8x32xf32> to vector<8x32xf32>
    %cst_130 = arith.constant dense<0.000000e+00> : vector<32xf32>
    %209 = vector.multi_reduction <add>, %208, %cst_130 [0] : vector<8x32xf32> to vector<32xf32>
    %210 = vector.shape_cast %209 : vector<32xf32> to vector<1x32xf32>
    %c0_131 = arith.constant 0 : index
    %c0_132 = arith.constant 0 : index
    %211 = vector.load %arg5[%c0_131, %c0_132] : memref<32x32xf32, #tpu.memory_space<vmem>>, vector<32x32xf32>
    %cst_133 = arith.constant dense<0.000000e+00> : vector<1x32xf32>
    %212 = tpu.matmul %206, %211, %cst_133 {dimension_numbers = #tpu.dot_dimension_numbers<[1], [0], [0], [1], [0, 0, 1, 1], [], []>} : vector<1x32xf32>, vector<32x32xf32>, vector<1x32xf32> -> vector<1x32xf32>
    %c0_134 = arith.constant 0 : index
    %c0_135 = arith.constant 0 : index
    %213 = vector.load %arg5[%c0_134, %c0_135] : memref<32x32xf32, #tpu.memory_space<vmem>>, vector<32x32xf32>
    %cst_136 = arith.constant dense<0.000000e+00> : vector<1x32xf32>
    %214 = tpu.matmul %210, %213, %cst_136 {dimension_numbers = #tpu.dot_dimension_numbers<[1], [0], [0], [1], [0, 0, 1, 1], [], []>} : vector<1x32xf32>, vector<32x32xf32>, vector<1x32xf32> -> vector<1x32xf32>
    %cst_137 = arith.constant 1.562500e-02 : f32
    %215 = vector.broadcast %cst_137 : f32 to vector<1x32xf32>
    %216 = arith.mulf %212, %215 : vector<1x32xf32>
    %cst_138 = arith.constant 1.562500e-02 : f32
    %217 = vector.broadcast %cst_138 : f32 to vector<1x32xf32>
    %218 = arith.mulf %214, %217 : vector<1x32xf32>
    %219 = arith.mulf %216, %216 : vector<1x32xf32>
    %220 = arith.subf %218, %219 : vector<1x32xf32>
    %cst_139 = arith.constant 9.99999974E-6 : f32
    %221 = vector.broadcast %cst_139 : f32 to vector<1x32xf32>
    %222 = arith.addf %220, %221 : vector<1x32xf32>
    %223 = math.rsqrt %222 : vector<1x32xf32>
    %c0_140 = arith.constant 0 : index
    %c0_141 = arith.constant 0 : index
    %224 = vector.load %arg6[%c0_140, %c0_141] : memref<32x32xf32, #tpu.memory_space<vmem>>, vector<32x32xf32>
    %cst_142 = arith.constant dense<0.000000e+00> : vector<1x32xf32>
    %225 = tpu.matmul %216, %224, %cst_142 {dimension_numbers = #tpu.dot_dimension_numbers<[1], [0], [0], [1], [0, 0, 1, 1], [], []>} : vector<1x32xf32>, vector<32x32xf32>, vector<1x32xf32> -> vector<1x32xf32>
    %c0_143 = arith.constant 0 : index
    %c0_144 = arith.constant 0 : index
    %226 = vector.load %arg6[%c0_143, %c0_144] : memref<32x32xf32, #tpu.memory_space<vmem>>, vector<32x32xf32>
    %cst_145 = arith.constant dense<0.000000e+00> : vector<1x32xf32>
    %227 = tpu.matmul %223, %226, %cst_145 {dimension_numbers = #tpu.dot_dimension_numbers<[1], [0], [0], [1], [0, 0, 1, 1], [], []>} : vector<1x32xf32>, vector<32x32xf32>, vector<1x32xf32> -> vector<1x32xf32>
    %c0_146 = arith.constant 0 : index
    %c0_147 = arith.constant 0 : index
    %228 = vector.load %arg3[%c0_146, %c0_147] : memref<1x32xf32, #tpu.memory_space<vmem>>, vector<1x32xf32>
    %229 = arith.mulf %227, %228 : vector<1x32xf32>
    %c0_148 = arith.constant 0 : index
    %c0_149 = arith.constant 0 : index
    %230 = vector.load %arg4[%c0_148, %c0_149] : memref<1x32xf32, #tpu.memory_space<vmem>>, vector<1x32xf32>
    %231 = arith.mulf %225, %229 : vector<1x32xf32>
    %232 = arith.subf %230, %231 : vector<1x32xf32>
    %233 = vector.shape_cast %203 : vector<8x8x32xf32> to vector<64x32xf32>
    %c0_150 = arith.constant 0 : index
    %c0_151 = arith.constant 0 : index
    %234 = vector.load %arg11[%c0_150, %c0_151] : memref<64x32xf32, #tpu.memory_space<vmem>>, vector<64x32xf32>
    tpu.vector_store %arg11[%c0_150, %c0_151], %233 {strides = array<i32>} : memref<64x32xf32, #tpu.memory_space<vmem>>, vector<64x32xf32>,
    %c0_i32 = arith.constant 0 : i32
    %c64_i32 = arith.constant 64 : i32
    %235 = arith.muli %c0_i32, %c64_i32 : i32
    %236 = tpu.assume_multiple %235, 64 : i32
    %237 = arith.index_cast %236 : i32 to index
    %c0_152 = arith.constant 0 : index
    %238 = vector.load %arg11[%237, %c0_152] : memref<64x32xf32, #tpu.memory_space<vmem>>, vector<64x32xf32>
    %239 = vector.broadcast %229 : vector<1x32xf32> to vector<64x32xf32>
    %240 = arith.mulf %238, %239 : vector<64x32xf32>
    %241 = vector.broadcast %232 : vector<1x32xf32> to vector<64x32xf32>
    %242 = arith.addf %240, %241 : vector<64x32xf32>
    %243 = arith.truncf %242 : vector<64x32xf32> to vector<64x32xbf16>
    %c0_153 = arith.constant 0 : index
    %c0_154 = arith.constant 0 : index
    %244 = vector.load %arg7[%c0_153, %c0_154] : memref<32x128xbf16, #tpu.memory_space<vmem>>, vector<32x128xbf16>
    %cst_155 = arith.constant dense<0.000000e+00> : vector<64x128xf32>
    %245 = tpu.matmul %243, %244, %cst_155 {dimension_numbers = #tpu.dot_dimension_numbers<[1], [0], [0], [1], [0, 0, 1, 1], [], []>} : vector<64x32xbf16>, vector<32x128xbf16>, vector<64x128xf32> -> vector<64x128xf32>
    %cst_156 = arith.constant 5.000000e-01 : f32
    %246 = vector.broadcast %cst_156 : f32 to vector<64x128xf32>
    %247 = arith.mulf %246, %245 : vector<64x128xf32>
    %cst_157 = arith.constant 4.471500e-02 : f32
    %248 = vector.broadcast %cst_157 : f32 to vector<64x128xf32>
    %249 = arith.mulf %248, %245 : vector<64x128xf32>
    %250 = arith.mulf %249, %245 : vector<64x128xf32>
    %251 = arith.mulf %250, %245 : vector<64x128xf32>
    %252 = arith.addf %245, %251 : vector<64x128xf32>
    %cst_158 = arith.constant 0.797884583 : f32
    %253 = vector.broadcast %cst_158 : f32 to vector<64x128xf32>
    %254 = arith.mulf %253, %252 : vector<64x128xf32>
    %255 = math.tanh %254 : vector<64x128xf32>
    %cst_159 = arith.constant 1.000000e+00 : f32
    %256 = vector.broadcast %cst_159 : f32 to vector<64x128xf32>
    %257 = arith.addf %256, %255 : vector<64x128xf32>
    %258 = arith.mulf %247, %257 : vector<64x128xf32>
    %259 = arith.truncf %258 : vector<64x128xf32> to vector<64x128xbf16>
    %c0_160 = arith.constant 0 : index
    %c0_161 = arith.constant 0 : index
    %260 = vector.load %arg8[%c0_160, %c0_161] : memref<128x128xbf16, #tpu.memory_space<vmem>>, vector<128x128xbf16>
    %cst_162 = arith.constant dense<0.000000e+00> : vector<64x128xf32>
    %261 = tpu.matmul %259, %260, %cst_162 {dimension_numbers = #tpu.dot_dimension_numbers<[1], [0], [0], [1], [0, 0, 1, 1], [], []>} : vector<64x128xbf16>, vector<128x128xbf16>, vector<64x128xf32> -> vector<64x128xf32>
    %262 = arith.index_cast %236 : i32 to index
    %c0_163 = arith.constant 0 : index
    %263 = vector.load %arg12[%262, %c0_163] : memref<64x32xbf16, #tpu.memory_space<vmem>>, vector<64x32xbf16>
    %c0_164 = arith.constant 0 : index
    %c0_165 = arith.constant 0 : index
    %264 = vector.load %arg9[%c0_164, %c0_165] : memref<32x128xbf16, #tpu.memory_space<vmem>>, vector<32x128xbf16>
    %cst_166 = arith.constant dense<0.000000e+00> : vector<64x128xf32>
    %265 = tpu.matmul %263, %264, %cst_166 {dimension_numbers = #tpu.dot_dimension_numbers<[1], [0], [0], [1], [0, 0, 1, 1], [], []>} : vector<64x32xbf16>, vector<32x128xbf16>, vector<64x128xf32> -> vector<64x128xf32>
    %266 = arith.addf %261, %265 : vector<64x128xf32>
    %c0_167 = arith.constant 0 : index
    %267 = arith.index_cast %236 : i32 to index
    %c0_168 = arith.constant 0 : index
    %268 = vector.load %arg10[%c0_167, %267, %c0_168] : memref<1x64x128xf32, #tpu.memory_space<vmem>>, vector<1x64x128xf32>
    %269 = vector.shape_cast %268 : vector<1x64x128xf32> to vector<64x128xf32>
    %270 = vector.shape_cast %266 : vector<64x128xf32> to vector<1x64x128xf32>
    tpu.vector_store %arg10[%c0_167, %267, %c0_168], %270 {strides = array<i32>} : memref<1x64x128xf32, #tpu.memory_space<vmem>>, vector<1x64x128xf32>,
    %c1_i32 = arith.constant 1 : i32
    return
  }
  func.func @transform_0(%arg0: i32) -> (i32, i32, i32, i32) {
    %c0_i32 = arith.constant 0 : i32
    %c0_i32_0 = arith.constant 0 : i32
    %c0_i32_1 = arith.constant 0 : i32
    %c0_i32_2 = arith.constant 0 : i32
    return %arg0, %c0_i32, %c0_i32_0, %c0_i32_1 : i32, i32, i32, i32
  }
  func.func @transform_1(%arg0: i32) -> (i32, i32) {
    %c0_i32 = arith.constant 0 : i32
    %c0_i32_0 = arith.constant 0 : i32
    %c0_i32_1 = arith.constant 0 : i32
    return %c0_i32, %c0_i32_0 : i32, i32
  }
  func.func @transform_2(%arg0: i32) -> (i32, i32) {
    %c0_i32 = arith.constant 0 : i32
    %c0_i32_0 = arith.constant 0 : i32
    %c0_i32_1 = arith.constant 0 : i32
    return %c0_i32, %c0_i32_0 : i32, i32
  }
  func.func @transform_3(%arg0: i32) -> (i32, i32) {
    %c0_i32 = arith.constant 0 : i32
    %c0_i32_0 = arith.constant 0 : i32
    %c0_i32_1 = arith.constant 0 : i32
    return %c0_i32, %c0_i32_0 : i32, i32
  }
  func.func @transform_4(%arg0: i32) -> (i32, i32) {
    %c0_i32 = arith.constant 0 : i32
    %c0_i32_0 = arith.constant 0 : i32
    %c0_i32_1 = arith.constant 0 : i32
    return %c0_i32, %c0_i32_0 : i32, i32
  }
  func.func @transform_5(%arg0: i32) -> (i32, i32) {
    %c0_i32 = arith.constant 0 : i32
    %c0_i32_0 = arith.constant 0 : i32
    %c0_i32_1 = arith.constant 0 : i32
    return %c0_i32, %c0_i32_0 : i32, i32
  }
  func.func @transform_6(%arg0: i32) -> (i32, i32) {
    %c0_i32 = arith.constant 0 : i32
    %c0_i32_0 = arith.constant 0 : i32
    %c0_i32_1 = arith.constant 0 : i32
    return %c0_i32, %c0_i32_0 : i32, i32
  }
  func.func @transform_7(%arg0: i32) -> (i32, i32) {
    %c0_i32 = arith.constant 0 : i32
    %c0_i32_0 = arith.constant 0 : i32
    %c0_i32_1 = arith.constant 0 : i32
    return %c0_i32, %c0_i32_0 : i32, i32
  }
  func.func @transform_8(%arg0: i32) -> (i32, i32) {
    %c0_i32 = arith.constant 0 : i32
    %c0_i32_0 = arith.constant 0 : i32
    %c0_i32_1 = arith.constant 0 : i32
    return %c0_i32, %c0_i32_0 : i32, i32
  }
  func.func @transform_9(%arg0: i32) -> (i32, i32, i32) {
    %c0_i32 = arith.constant 0 : i32
    %c0_i32_0 = arith.constant 0 : i32
    %c0_i32_1 = arith.constant 0 : i32
    return %arg0, %c0_i32, %c0_i32_0 : i32, i32, i32
  }
}

</mosaic_0001>

<bundles_post_ra>
// kernel: tpu_custom_call.1
= control target key start
LH: loop header
LB: loop body
LE: loop exit
PB: predicated region body
PF: predicated region fallthrough
CT: control target
= control target key end

     0   :  { %14 = vsyncpa [#allocation5], 0  ;;  %s5280_s0 = inlined_call_operand.vmem [shape: bf16[8,10,10,32], index: 0, kind: input, shape index: {}]   ;;  %s5281_s1 = inlined_call_operand.vmem [shape: f32[25,32], index: 1, kind: input, shape index: {}]   ;;  %s5282_s2 = inlined_call_operand.vmem [shape: f32[1,32], index: 2, kind: input, shape index: {}]   ;;  %s5283_s3 = inlined_call_operand.vmem [shape: f32[1,32], index: 3, kind: input, shape index: {}]   ;;  %s5284_s4 = inlined_call_operand.vmem [shape: f32[32,32], index: 4, kind: input, shape index: {}]   ;;  %s5285_s5 = inlined_call_operand.vmem [shape: f32[32,32], index: 5, kind: input, shape index: {}]   ;;  %s5286_s6 = inlined_call_operand.vmem [shape: bf16[32,128], index: 6, kind: input, shape index: {}]   ;;  %s5287_s7 = inlined_call_operand.vmem [shape: bf16[128,128], index: 7, kind: input, shape index: {}]   ;;  %s5288_s8 = inlined_call_operand.vmem [shape: bf16[32,128], index: 8, kind: input, shape index: {}]   ;;  %s5289_s9 = inlined_call_operand.hbm [shape: f32[2,64,128], index: 9, kind: output, shape index: {}]  }
   0x1   :  { %16 = vsyncpa [#allocation5 + $0x1], 0  ;;  %s3707_s30 = smov 0   ;;  %s3709_s10 = smov 0  }
   0x2   :  { %s3711_s11 = smov 0   ;;  %s3713_s12 = smov 0  }
   0x3 LB: > { %s3728_s13 = sadd.s32 4294967295, %s3649_s12   ;;  %s3090_s14 = sadd.s32 4294967294, %s3649_s12   ;;  %s3649_s12 = sphi %s3713_s12, %s5410_s12   ;;  %s3645_s11 = sphi %s3711_s11, %s5409_s11   ;;  %s3641_s10 = sphi %s3709_s10, %s5408_s10   ;;  %s3637_s30 = sphi %s3707_s30, %s5407_s30  }
   0x4   : > { %s3732_s15 = sadd.s32 1, %s3649_s12   ;;  %s223_s16 = sadd.s32 1, %s3645_s11 }
   0x5   : > { %s220_s17 = ssub.s32 %s3649_s12, %s3732_s15  ;;  %p233_p0 = scmp.ne.s32.totalorder %s3645_s11, %s3641_s10 }
   0x6   : > { %p221_p1 = scmp.eq.s32.totalorder %s220_s17, 0  ;;  %p234_p2 = scmp.eq.s32.totalorder %s3728_s13, 1 }
   0x7   : > { %p239_p3 = scmp.ne.s32.totalorder %s3641_s10, %s3637_s30  ;;  %p240_p4 = scmp.eq.s32.totalorder %s3090_s14, 1 }
   0x8   : > { %s3743_s18 = scalar_select %p221_p1, %s3645_s11, %s223_s16  }
   0x9   : > { %p3745_p5 = por %p234_p2, %p233_p0  ;;  %p3749_p6 = por %p240_p4, %p239_p3 }
   0xa   : > { %p3093_p7 = scmp.ge.s32.totalorder %s3649_s12, 1  ;;  %p292_p8 = scmp.lt.s32.totalorder %s3649_s12, 3 }
   0xc   : > { %p293_p9 = pnand %p3093_p7, %p292_p8 }
   0xe   : > { %296 = sbr.rel (%p293_p9) target bundleno = 1283 (0x503), region = 56 }
  0x15   : > { %v2254_v0 = vld [vmem:[%s5284_s4] sm:$0xff]  ;;  %v2255_v1 = vld [vmem:[%s5284_s4 + $0x8] sm:$0xff]  ;;  %v2256_v2 = vld [vmem:[%s5284_s4 + $0x10] sm:$0xff]  ;;  %v5290_v3 = vmov 0.0|0.0   ;;  %vm3652_vm0 = vmmov 0   ;;  %v5292_v6 = vmov 0.0  }
  0x16   : > { %3480 = vmatprep.subr.bf16.mxu0 %v5290_v3  ;;  %v3765_v4 = vpack.c.bf16 %v2255_v1, %v2254_v0  ;;  %v2257_v5 = vld [vmem:[%s5284_s4 + $0x18] sm:$0xff]  ;;  %3396 = vmatprep.mubr.msk.f32.mxu0 %vm3652_vm0, %v5292_v6  ;;  %s3095_s29 = sshll.u32 %s3728_s13, 2  ;;  %v3097_v8 = vld [vmem:[%s5281_s1] ss:$0 sm:$0xff]  ;;  %v3106_v33 = vld [vmem:[%s5281_s1 + $0x1] ss:$0 sm:$0xff] }
  0x17   : > { %p330_p10 = scmp.lt.s32.totalorder %s3095_s29, 7  ;;  %v3774_v7 = vpack.c.bf16 %v2257_v5, %v2256_v2  ;;  %vm465_vm1 = vcmask 1046528   ;;  %v3107_v2 = vld [vmem:[%s5281_s1 + $0x2] ss:$0 sm:$0xff]  ;;  %vm652_vm2 = vcmask 1045504   ;;  %vm1269_vm3 = vcmask 261120  }
  0x18   : > { %3482 = vmatpush3.bf16.msra.mxu0 %v3765_v4  ;;  %s3343_s16 = sshll.u32 %s3728_s13, 10  ;;  %s3654_s25 = smov [#allocation4]  }
  0x19   : > { %3483 = vmatprep.subr.bf16.mxu0 %v5290_v3  ;;  %s5412_s29 = smov (!%p330_p10, %s3095_s29), 7  ;;  %s5237_s22 = scalar_lea.hbm %s5289_s9, %s3343_s16 }
  0x1a   : > { %s3512_s14 = smul.u32 80, %s5412_s29  ;;  %s3591_s26 = sshll.u32 %s3654_s25, 4  ;;  %s3592_s26 = int_to_ptr.vmem [resolvable:$false] %s3591_s26 }
  0x1b   : > { %s3593_s27 = scalar_lea.vmem %s3592_s26, 2048 }
  0x1c   : > { %3485 = vmatpush3.bf16.msra.mxu0 %v3774_v7  ;;  %s3785_s23 = scalar_lea.vmem %s5280_s0, %s3512_s14 }
  0x1d   : > { %3486 = vmatprep.subr.bf16.mxu0 %v5290_v3  ;;  %v3788_v9 = vld [vmem:[%s3785_s23] ss:$8 sps:$4 sm:$0xff]   ;;  %v3791_v10 = vld [vmem:[%s3785_s23 + $0x10] ss:$8 sps:$4 sm:$0xff]   ;;  %v3855_v46 = vld [vmem:[%s3785_s23 + $0x4] sm:$0x1] }
  0x1e   : > { %v3794_v11 = vld [vmem:[%s3785_s23 + $0x20] ss:$8 sps:$4 sm:$0xff]   ;;  %v3797_v12 = vld [vmem:[%s3785_s23 + $0x30] ss:$8 sps:$4 sm:$0xff]   ;;  %v345_v13 = vunpack.c.l.bf16 %v3788_v9  ;;  %v346_v14 = vunpack.c.h.bf16 %v3788_v9  ;;  %v347_v15 = vunpack.c.l.bf16 %v3791_v10  ;;  %v348_v16 = vunpack.c.h.bf16 %v3791_v10  ;;  %v3858_v47 = vld [vmem:[%s3785_s23 + $0xc] sm:$0x1] }
  0x1f   : > { %v349_v17 = vunpack.c.l.bf16 %v3794_v11  ;;  %v350_v18 = vunpack.c.h.bf16 %v3794_v11  ;;  %v351_v19 = vunpack.c.l.bf16 %v3797_v12  ;;  %v352_v20 = vunpack.c.h.bf16 %v3797_v12  ;;  %v3808_v21 = vld [vmem:[%s3785_s23 + $0x50] ss:$8 sps:$4 sm:$0xff]   ;;  %v3811_v22 = vld [vmem:[%s3785_s23 + $0x60] ss:$8 sps:$4 sm:$0xff]   ;;  %v3869_v52 = vld [vmem:[%s3785_s23 + $0x14] sm:$0x1] }
  0x20   : > { %v358_v23 = vmul.f32 %v3097_v8, %v345_v13  ;;  %v359_v24 = vmul.f32 %v3097_v8, %v346_v14  ;;  %v360_v25 = vmul.f32 %v3097_v8, %v347_v15  ;;  %v361_v26 = vmul.f32 %v3097_v8, %v348_v16  ;;  %v3822_v27 = vld [vmem:[%s3785_s23 + $0x70] ss:$8 sps:$4 sm:$0xff]   ;;  %v3825_v28 = vld [vmem:[%s3785_s23 + $0x80] ss:$8 sps:$4 sm:$0xff]   ;;  %v3872_v53 = vld [vmem:[%s3785_s23 + $0x1c] sm:$0x1] }
  0x21   : > { %v362_v29 = vmul.f32 %v3097_v8, %v349_v17  ;;  %v363_v30 = vmul.f32 %v3097_v8, %v350_v18  ;;  %v364_v31 = vmul.f32 %v3097_v8, %v351_v19  ;;  %v365_v32 = vmul.f32 %v3097_v8, %v352_v20  ;;  %v3875_v54 = vld [vmem:[%s3785_s23 + $0x24] sm:$0x1]  ;;  %v3882_v59 = vld [vmem:[%s3785_s23 + $0x2c] sm:$0x1]  ;;  %v3885_v60 = vld [vmem:[%s3785_s23 + $0x34] sm:$0x1] }
  0x22   : > { %v383_v34 = vunpack.c.l.bf16 %v3808_v21  ;;  %v384_v35 = vunpack.c.h.bf16 %v3808_v21  ;;  %v385_v36 = vunpack.c.l.bf16 %v3811_v22  ;;  %v386_v37 = vunpack.c.h.bf16 %v3811_v22  ;;  %v3888_v61 = vld [vmem:[%s3785_s23 + $0x3c] sm:$0x1] }
  0x23   : > { %v387_v38 = vunpack.c.l.bf16 %v3822_v27  ;;  %v388_v39 = vunpack.c.h.bf16 %v3822_v27  ;;  %v389_v40 = vunpack.c.l.bf16 %v3825_v28  ;;  %v390_v41 = vunpack.c.h.bf16 %v3825_v28 }
  0x24   : > { %v396_v42 = vmul.f32 %v3106_v33, %v383_v34  ;;  %v397_v43 = vmul.f32 %v3106_v33, %v384_v35  ;;  %v398_v44 = vmul.f32 %v3106_v33, %v385_v36  ;;  %v399_v45 = vmul.f32 %v3106_v33, %v386_v37 }
  0x25   : > { %v400_v48 = vmul.f32 %v3106_v33, %v387_v38  ;;  %v401_v49 = vmul.f32 %v3106_v33, %v388_v39  ;;  %v402_v50 = vmul.f32 %v3106_v33, %v389_v40  ;;  %v403_v51 = vmul.f32 %v3106_v33, %v390_v41 }
  0x26   : > { %v404_v55 = vadd.f32 %v396_v42, %v358_v23  ;;  %v405_v56 = vadd.f32 %v397_v43, %v359_v24  ;;  %v3877_v57 = vadd.f32 %v398_v44, %v360_v25  ;;  %v3879_v58 = vadd.f32 %v399_v45, %v361_v26 }
  0x27   : > { %v408_v62 = vadd.f32 %v400_v48, %v362_v29  ;;  %v3890_v63 = vadd.f32 %v401_v49, %v363_v30  ;;  %v3892_v0 = vadd.f32 %v402_v50, %v364_v31  ;;  %v3894_v1 = vadd.f32 %v403_v51, %v365_v32 }
  0x28   : > { %v420_v5 = vunpack.c.l.bf16 %v3855_v46  ;;  %v421_v8 = vunpack.c.l.bf16 %v3858_v47  ;;  %v422_v23 = vunpack.c.l.bf16 %v3869_v52  ;;  %v423_v24 = vunpack.c.l.bf16 %v3872_v53 }
  0x29   : > { %v5295_v25 = vunpack.c.l.bf16 %v3875_v54  ;;  %v5294_v26 = vunpack.c.l.bf16 %v3882_v59  ;;  %v5296_v29 = vunpack.c.l.bf16 %v3885_v60  ;;  %v427_v30 = vunpack.c.l.bf16 %v3888_v61 }
  0x2a   : > { %v433_v31 = vmul.f32 %v3107_v2, %v345_v13  ;;  %v434_v32 = vmul.f32 %v3107_v2, %v420_v5  ;;  %v435_v33 = vmul.f32 %v3107_v2, %v346_v14  ;;  %v436_v42 = vmul.f32 %v3107_v2, %v421_v8 }
  0x2b   : > { %v437_v43 = vmul.f32 %v3107_v2, %v347_v15  ;;  %v438_v44 = vmul.f32 %v3107_v2, %v422_v23  ;;  %v439_v45 = vmul.f32 %v3107_v2, %v348_v16  ;;  %v440_v13 = vmul.f32 %v3107_v2, %v423_v24 }
  0x2c   : > { %v441_v48 = vmul.f32 %v3107_v2, %v349_v17  ;;  %v442_v9 = vmul.f32 %v3107_v2, %v5295_v25  ;;  %v443_v14 = vmul.f32 %v3107_v2, %v350_v18  ;;  %v444_v15 = vmul.f32 %v3107_v2, %v5294_v26 }
  0x2d   : > { %v445_v49 = vmul.f32 %v3107_v2, %v351_v19  ;;  %v446_v10 = vmul.f32 %v3107_v2, %v5296_v29  ;;  %v447_v16 = vmul.f32 %v3107_v2, %v352_v20  ;;  %v448_v17 = vmul.f32 %v3107_v2, %v427_v30 }
  0x2e   : > { %v466_v50 = vrot.slane %v433_v31, 1  ;;  %v467_v51 = vrot.slane %v434_v32, 1  ;;  %v469_v11 = vrot.slane %v435_v33, 1  ;;  %v470_v18 = vrot.slane %v436_v42, 1  ;;  %v3108_v42 = vld [vmem:[%s3785_s23 + $0x54] sm:$0x1] }
  0x2f   : > { %v472_v3 = vrot.slane %v437_v43, 1  ;;  %v473_v6 = vrot.slane %v438_v44, 1  ;;  %v475_v26 = vrot.slane %v439_v45, 1  ;;  %v476_v19 = vrot.slane %v440_v13, 1  ;;  %v3109_v43 = vld [vmem:[%s3785_s23 + $0x5c] sm:$0x1] }
  0x30   : > { %v468_v25 = vsel %vm465_vm1, %v466_v50, %v467_v51  ;;  %v471_v29 = vsel %vm465_vm1, %v469_v11, %v470_v18  ;;  %v478_v12 = vrot.slane %v441_v48, 1  ;;  %v479_v20 = vrot.slane %v442_v9, 1  ;;  %v3110_v48 = vld [vmem:[%s3785_s23 + $0x64] sm:$0x1] }
  0x31   : > { %v474_v2 = vsel %vm465_vm1, %v472_v3, %v473_v6  ;;  %v477_v31 = vsel %vm465_vm1, %v475_v26, %v476_v19  ;;  %v481_v32 = vrot.slane %v443_v14, 1  ;;  %v482_v33 = vrot.slane %v444_v15, 1  ;;  %v3111_v26 = vld [vmem:[%s3785_s23 + $0x6c] sm:$0x1]  ;;  %v3112_v14 = vld [vmem:[%s3785_s23 + $0x74] sm:$0x1] }
  0x32   : > { %v480_v44 = vsel %vm465_vm1, %v478_v12, %v479_v20  ;;  %v484_v45 = vrot.slane %v445_v49, 1  ;;  %v485_v13 = vrot.slane %v446_v10, 1  ;;  %v487_v50 = vrot.slane %v447_v16, 1  ;;  %v3113_v16 = vld [vmem:[%s3785_s23 + $0x7c] sm:$0x1] }
  0x33   : > { %v483_v9 = vsel %vm465_vm1, %v481_v32, %v482_v33  ;;  %v488_v51 = vrot.slane %v448_v17, 1  ;;  %v3948_v3 = vadd.f32 %v468_v25, %v404_v55  ;;  %v3950_v6 = vadd.f32 %v471_v29, %v405_v56  ;;  %v3114_v18 = vld [vmem:[%s3785_s23 + $0x84] sm:$0x1]  ;;  %v3115_v19 = vld [vmem:[%s3785_s23 + $0x8c] sm:$0x1] }
  0x34   : > { %v486_v15 = vsel %vm465_vm1, %v484_v45, %v485_v13  ;;  %v3956_v11 = vadd.f32 %v474_v2, %v3877_v57  ;;  %v3959_v49 = vadd.f32 %v477_v31, %v3879_v58  ;;  %v3961_v10 = vadd.f32 %v480_v44, %v408_v62  ;;  %v3116_v57 = vld [vmem:[%s5281_s1 + $0x3] ss:$0 sm:$0xff] }
  0x35   : > { %v489_v55 = vsel %vm465_vm1, %v487_v50, %v488_v51  ;;  %v3968_v56 = vadd.f32 %v483_v9, %v3890_v63  ;;  %v3971_v25 = vadd.f32 %v486_v15, %v3892_v0  ;;  %v514_v29 = vunpack.c.l.bf16 %v3108_v42 }
  0x36   : > { %v3977_v58 = vadd.f32 %v489_v55, %v3894_v1  ;;  %v515_v62 = vunpack.c.l.bf16 %v3109_v43  ;;  %v516_v17 = vunpack.c.l.bf16 %v3110_v48  ;;  %v517_v12 = vunpack.c.l.bf16 %v3111_v26 }
  0x37   : > { %v518_v20 = vunpack.c.l.bf16 %v3112_v14  ;;  %v519_v2 = vunpack.c.l.bf16 %v3113_v16  ;;  %v520_v31 = vunpack.c.l.bf16 %v3114_v18  ;;  %v521_v32 = vunpack.c.l.bf16 %v3115_v19 }
  0x38   : > { %v527_v63 = vmul.f32 %v3116_v57, %v383_v34  ;;  %v528_v0 = vmul.f32 %v3116_v57, %v514_v29  ;;  %v529_v33 = vmul.f32 %v3116_v57, %v384_v35  ;;  %v530_v42 = vmul.f32 %v3116_v57, %v515_v62  ;;  %v599_v29 = vld [vmem:[%s3785_s23] sm:$0xe] }
  0x39   : > { %v531_v44 = vmul.f32 %v3116_v57, %v385_v36  ;;  %v532_v1 = vmul.f32 %v3116_v57, %v516_v17  ;;  %v533_v43 = vmul.f32 %v3116_v57, %v386_v37  ;;  %v534_v45 = vmul.f32 %v3116_v57, %v517_v12 }
  0x3a   : > { %v535_v13 = vmul.f32 %v3116_v57, %v387_v38  ;;  %v536_v50 = vmul.f32 %v3116_v57, %v518_v20  ;;  %v537_v34 = vmul.f32 %v3116_v57, %v388_v39  ;;  %v538_v48 = vmul.f32 %v3116_v57, %v519_v2  ;;  %v601_v2 = vld [vmem:[%s3785_s23 + $0x10] sm:$0xe] }
  0x3b   : > { %v539_v21 = vmul.f32 %v3116_v57, %v389_v40  ;;  %v540_v35 = vmul.f32 %v3116_v57, %v520_v31  ;;  %v541_v36 = vmul.f32 %v3116_v57, %v390_v41  ;;  %v542_v9 = vmul.f32 %v3116_v57, %v521_v32  ;;  %v600_v57 = vld [vmem:[%s3785_s23 + $0x8] sm:$0xe] }
  0x3c   : > { %v559_v51 = vrot.slane %v527_v63, 1  ;;  %v560_v22 = vrot.slane %v528_v0, 1  ;;  %v562_v37 = vrot.slane %v529_v33, 1  ;;  %v563_v26 = vrot.slane %v530_v42, 1  ;;  %v602_v33 = vld [vmem:[%s3785_s23 + $0x18] sm:$0xe] }
  0x3d   : > { %v565_v38 = vrot.slane %v531_v44, 1  ;;  %v566_v14 = vrot.slane %v532_v1, 1  ;;  %v568_v15 = vrot.slane %v533_v43, 1  ;;  %v569_v27 = vrot.slane %v534_v45, 1  ;;  %v603_v42 = vld [vmem:[%s3785_s23 + $0x20] sm:$0xe] }
  0x3e   : > { %v561_v39 = vsel %vm465_vm1, %v559_v51, %v560_v22  ;;  %v564_v40 = vsel %vm465_vm1, %v562_v37, %v563_v26  ;;  %v571_v16 = vrot.slane %v535_v13, 1  ;;  %v572_v18 = vrot.slane %v536_v50, 1  ;;  %v604_v13 = vld [vmem:[%s3785_s23 + $0x28] sm:$0xe]  ;;  %v605_v50 = vld [vmem:[%s3785_s23 + $0x30] sm:$0xe] }
  0x3f   : > { %v567_v28 = vsel %vm465_vm1, %v565_v38, %v566_v14  ;;  %v570_v41 = vsel %vm465_vm1, %v568_v15, %v569_v27  ;;  %v574_v19 = vrot.slane %v537_v34, 1  ;;  %v575_v55 = vrot.slane %v538_v48, 1  ;;  %v606_v34 = vld [vmem:[%s3785_s23 + $0x38] sm:$0xe] }
  0x40   : > { %v573_v62 = vsel %vm465_vm1, %v571_v16, %v572_v18  ;;  %v577_v17 = vrot.slane %v539_v21, 1  ;;  %v578_v12 = vrot.slane %v540_v35, 1  ;;  %v580_v20 = vrot.slane %v541_v36, 1 }
  0x41   : > { %v576_v31 = vsel %vm465_vm1, %v574_v19, %v575_v55  ;;  %v581_v32 = vrot.slane %v542_v9, 1  ;;  %v4005_v63 = vadd.f32 %v561_v39, %v3948_v3  ;;  %v4008_v0 = vadd.f32 %v564_v40, %v3950_v6 }
  0x42   : > { %v579_v44 = vsel %vm465_vm1, %v577_v17, %v578_v12  ;;  %v4014_v1 = vadd.f32 %v567_v28, %v3956_v11  ;;  %v594_v43 = vadd.f32 %v570_v41, %v3959_v49  ;;  %v595_v45 = vadd.f32 %v573_v62, %v3961_v10  ;;  %v3117_v11 = vld [vmem:[%s5281_s1 + $0x4] ss:$0 sm:$0xff] }
  0x43   : > { %v582_v3 = vsel %vm465_vm1, %v580_v20, %v581_v32  ;;  %v4023_v6 = vadd.f32 %v576_v31, %v3968_v56  ;;  %v597_v48 = vadd.f32 %v579_v44, %v3971_v25  ;;  %v607_v21 = vunpack.c.l.bf16 %v599_v29 }
  0x44   : > { %v598_v35 = vadd.f32 %v582_v3, %v3977_v58  ;;  %v608_v49 = vunpack.c.l.bf16 %v600_v57  ;;  %v609_v36 = vunpack.c.l.bf16 %v601_v2  ;;  %v610_v10 = vunpack.c.l.bf16 %v602_v33  ;;  %v4058_v3 = vld [vmem:[%s3785_s23 + $0xb0] ss:$8 sps:$4 sm:$0xff]  }
  0x45   : > { %v611_v9 = vunpack.c.l.bf16 %v603_v42  ;;  %v612_v51 = vunpack.c.l.bf16 %v604_v13  ;;  %v613_v22 = vunpack.c.l.bf16 %v605_v50  ;;  %v614_v37 = vunpack.c.l.bf16 %v606_v34  ;;  %v4052_v42 = vld [vmem:[%s3785_s23 + $0xa0] ss:$8 sps:$4 sm:$0xff]  }
  0x46   : > { %v620_v26 = vmul.f32 %v3117_v11, %v607_v21  ;;  %v621_v56 = vmul.f32 %v3117_v11, %v420_v5  ;;  %v622_v38 = vmul.f32 %v3117_v11, %v608_v49  ;;  %v623_v25 = vmul.f32 %v3117_v11, %v421_v8 }
  0x47   : > { %v624_v14 = vmul.f32 %v3117_v11, %v609_v36  ;;  %v625_v15 = vmul.f32 %v3117_v11, %v422_v23  ;;  %v626_v58 = vmul.f32 %v3117_v11, %v610_v10  ;;  %v627_v27 = vmul.f32 %v3117_v11, %v423_v24  ;;  %v4063_v10 = vld [vmem:[%s3785_s23 + $0xc0] ss:$8 sps:$4 sm:$0xff]  }
  0x48   : > { %v628_v39 = vmul.f32 %v3117_v11, %v611_v9  ;;  %v5348_v40 = vunpack.c.l.bf16 %v3875_v54  ;;  %v630_v18 = vmul.f32 %v3117_v11, %v612_v51  ;;  %v5349_v46 = vunpack.c.l.bf16 %v3882_v59  ;;  %v4066_v9 = vld [vmem:[%s3785_s23 + $0xd0] ss:$8 sps:$4 sm:$0xff]   ;;  %v3126_v51 = vld [vmem:[%s5281_s1 + $0x5] ss:$0 sm:$0xff] }
  0x49   : > { %v632_v28 = vmul.f32 %v3117_v11, %v613_v22  ;;  %v5350_v47 = vunpack.c.l.bf16 %v3885_v60  ;;  %v634_v41 = vmul.f32 %v3117_v11, %v614_v37  ;;  %v635_v52 = vmul.f32 %v3117_v11, %v427_v30 }
  0x4a   : > { %v629_v16 = vmul.f32 %v3117_v11, %v5348_v40  ;;  %v631_v5 = vmul.f32 %v3117_v11, %v5349_v46  ;;  %v653_v23 = vrot.slane %v620_v26, 2  ;;  %v654_v19 = vrot.slane %v621_v56, 2 }
  0x4b   : > { %v633_v8 = vmul.f32 %v3117_v11, %v5350_v47  ;;  %v656_v53 = vrot.slane %v622_v38, 2  ;;  %v657_v24 = vrot.slane %v623_v25, 2  ;;  %v659_v55 = vrot.slane %v624_v14, 2  ;;  %v4082_v14 = vld [vmem:[%s3785_s23 + $0xf0] ss:$8 sps:$4 sm:$0xff]  }
  0x4c   : > { %v660_v54 = vrot.slane %v625_v15, 2  ;;  %v662_v29 = vrot.slane %v626_v58, 2  ;;  %v663_v57 = vrot.slane %v627_v27, 2  ;;  %v655_v59 = vsel %vm652_vm2, %v653_v23, %v654_v19  ;;  %v4093_v27 = vld [vmem:[%s3785_s23 + $0x100] ss:$8 sps:$4 sm:$0xff]  }
  0x4d   : > { %v658_v62 = vsel %vm652_vm2, %v656_v53, %v657_v24  ;;  %v665_v60 = vrot.slane %v628_v39, 2  ;;  %v666_v17 = vrot.slane %v629_v16, 2  ;;  %v668_v30 = vrot.slane %v630_v18, 2  ;;  %v4096_v39 = vld [vmem:[%s3785_s23 + $0x110] ss:$8 sps:$4 sm:$0xff]  }
  0x4e   : > { %v661_v12 = vsel %vm652_vm2, %v659_v55, %v660_v54  ;;  %v664_v61 = vsel %vm652_vm2, %v662_v29, %v663_v57  ;;  %v669_v20 = vrot.slane %v631_v5, 2  ;;  %v671_v31 = vrot.slane %v632_v28, 2  ;;  %v3135_v5 = vld [vmem:[%s5281_s1 + $0x6] ss:$0 sm:$0xff] }
  0x4f   : > { %v667_v2 = vsel %vm652_vm2, %v665_v60, %v666_v17  ;;  %v672_v32 = vrot.slane %v633_v8, 2  ;;  %v674_v33 = vrot.slane %v634_v41, 2  ;;  %v675_v13 = vrot.slane %v635_v52, 2  ;;  %v4110_v52 = vld [vmem:[%s3785_s23 + $0x120] ss:$8 sps:$4 sm:$0xff]  }
  0x50   : > { %v670_v44 = vsel %vm652_vm2, %v668_v30, %v669_v20  ;;  %v685_v50 = vadd.f32 %v655_v59, %v4005_v63  ;;  %v686_v34 = vadd.f32 %v658_v62, %v4008_v0  ;;  %v687_v11 = vadd.f32 %v661_v12, %v4014_v1 }
  0x51   : > { %v673_v21 = vsel %vm652_vm2, %v671_v31, %v672_v32  ;;  %v688_v49 = vadd.f32 %v664_v61, %v594_v43  ;;  %v689_v36 = vadd.f32 %v667_v2, %v595_v45  ;;  %v676_v63 = vsel %vm652_vm2, %v674_v33, %v675_v13  ;;  %v4129_v2 = vld [vmem:[%s3785_s23 + $0xa4] sm:$0x1]  ;;  %v4132_v31 = vld [vmem:[%s3785_s23 + $0xac] sm:$0x1] }
  0x52   : > { %v690_v0 = vadd.f32 %v670_v44, %v4023_v6  ;;  %v691_v22 = vadd.f32 %v673_v21, %v597_v48  ;;  %v702_v1 = vunpack.c.l.bf16 %v4052_v42  ;;  %v692_v43 = vadd.f32 %v676_v63, %v598_v35  ;;  %v4149_v21 = vld [vmem:[%s3785_s23 + $0xc4] sm:$0x1]  ;;  %v4156_v63 = vld [vmem:[%s3785_s23 + $0xcc] sm:$0x1] }
  0x53   : > { %v703_v45 = vunpack.c.h.bf16 %v4052_v42  ;;  %v704_v37 = vunpack.c.l.bf16 %v4058_v3  ;;  %v705_v26 = vunpack.c.h.bf16 %v4058_v3  ;;  %v706_v56 = vunpack.c.l.bf16 %v4063_v10 }
  0x54   : > { %v707_v38 = vunpack.c.h.bf16 %v4063_v10  ;;  %v708_v25 = vunpack.c.l.bf16 %v4066_v9  ;;  %v709_v6 = vunpack.c.h.bf16 %v4066_v9  ;;  %v715_v48 = vmul.f32 %v3126_v51, %v702_v1 }
  0x55   : > { %v716_v35 = vmul.f32 %v3126_v51, %v703_v45  ;;  %v717_v15 = vmul.f32 %v3126_v51, %v704_v37  ;;  %v718_v58 = vmul.f32 %v3126_v51, %v705_v26  ;;  %v719_v40 = vmul.f32 %v3126_v51, %v706_v56 }
  0x56   : > { %v720_v16 = vmul.f32 %v3126_v51, %v707_v38  ;;  %v721_v18 = vmul.f32 %v3126_v51, %v708_v25  ;;  %v722_v46 = vmul.f32 %v3126_v51, %v709_v6  ;;  %v723_v28 = vadd.f32 %v715_v48, %v685_v50  ;;  %v4143_v50 = vld [vmem:[%s3785_s23 + $0xb4] sm:$0x1] }
  0x57   : > { %v724_v47 = vadd.f32 %v716_v35, %v686_v34  ;;  %v725_v8 = vadd.f32 %v717_v15, %v687_v11  ;;  %v726_v41 = vadd.f32 %v718_v58, %v688_v49  ;;  %v727_v23 = vadd.f32 %v719_v40, %v689_v36  ;;  %v4146_v34 = vld [vmem:[%s3785_s23 + $0xbc] sm:$0x1]  ;;  %v3144_v58 = vld [vmem:[%s5281_s1 + $0x7] ss:$0 sm:$0xff] }
  0x58   : > { %v728_v19 = vadd.f32 %v720_v16, %v690_v0  ;;  %v729_v53 = vadd.f32 %v721_v18, %v691_v22  ;;  %v730_v24 = vadd.f32 %v722_v46, %v692_v43  ;;  %v740_v55 = vunpack.c.l.bf16 %v4082_v14  ;;  %v4159_v0 = vld [vmem:[%s3785_s23 + $0xd4] sm:$0x1]  ;;  %v4162_v22 = vld [vmem:[%s3785_s23 + $0xdc] sm:$0x1] }
  0x59   : > { %v741_v54 = vunpack.c.h.bf16 %v4082_v14  ;;  %v742_v29 = vunpack.c.l.bf16 %v4093_v27  ;;  %v743_v57 = vunpack.c.h.bf16 %v4093_v27  ;;  %v744_v59 = vunpack.c.l.bf16 %v4096_v39 }
  0x5a   : > { %v745_v62 = vunpack.c.h.bf16 %v4096_v39  ;;  %v746_v60 = vunpack.c.l.bf16 %v4110_v52  ;;  %v747_v17 = vunpack.c.h.bf16 %v4110_v52  ;;  %v753_v12 = vmul.f32 %v3135_v5, %v740_v55 }
  0x5b   : > { %v754_v61 = vmul.f32 %v3135_v5, %v741_v54  ;;  %v755_v30 = vmul.f32 %v3135_v5, %v742_v29  ;;  %v756_v20 = vmul.f32 %v3135_v5, %v743_v57  ;;  %v757_v32 = vmul.f32 %v3135_v5, %v744_v59 }
  0x5c   : > { %v758_v33 = vmul.f32 %v3135_v5, %v745_v62  ;;  %v759_v44 = vmul.f32 %v3135_v5, %v746_v60  ;;  %v760_v13 = vmul.f32 %v3135_v5, %v747_v17  ;;  %v761_v11 = vadd.f32 %v753_v12, %v723_v28 }
  0x5d   : > { %v762_v49 = vadd.f32 %v754_v61, %v724_v47  ;;  %v4151_v36 = vadd.f32 %v755_v30, %v725_v8  ;;  %v4153_v51 = vadd.f32 %v756_v20, %v726_v41  ;;  %v765_v43 = vadd.f32 %v757_v32, %v727_v23 }
  0x5e   : > { %v4164_v48 = vadd.f32 %v758_v33, %v728_v19  ;;  %v4166_v35 = vadd.f32 %v759_v44, %v729_v53  ;;  %v4168_v15 = vadd.f32 %v760_v13, %v730_v24  ;;  %v777_v40 = vunpack.c.l.bf16 %v4129_v2 }
  0x5f   : > { %v778_v16 = vunpack.c.l.bf16 %v4132_v31  ;;  %v779_v18 = vunpack.c.l.bf16 %v4143_v50  ;;  %v780_v46 = vunpack.c.l.bf16 %v4146_v34  ;;  %v5298_v5 = vunpack.c.l.bf16 %v4149_v21 }
  0x60   : > { %v5297_v28 = vunpack.c.l.bf16 %v4156_v63  ;;  %v5299_v47 = vunpack.c.l.bf16 %v4159_v0  ;;  %v784_v8 = vunpack.c.l.bf16 %v4162_v22  ;;  %v790_v41 = vmul.f32 %v3144_v58, %v702_v1 }
  0x61   : > { %v791_v23 = vmul.f32 %v3144_v58, %v777_v40  ;;  %v792_v19 = vmul.f32 %v3144_v58, %v703_v45  ;;  %v793_v53 = vmul.f32 %v3144_v58, %v778_v16  ;;  %v794_v24 = vmul.f32 %v3144_v58, %v704_v37 }
  0x62   : > { %v795_v12 = vmul.f32 %v3144_v58, %v779_v18  ;;  %v796_v61 = vmul.f32 %v3144_v58, %v705_v26  ;;  %v797_v1 = vmul.f32 %v3144_v58, %v780_v46  ;;  %v798_v30 = vmul.f32 %v3144_v58, %v706_v56 }
  0x63   : > { %v799_v42 = vmul.f32 %v3144_v58, %v5298_v5  ;;  %v800_v45 = vmul.f32 %v3144_v58, %v707_v38  ;;  %v801_v37 = vmul.f32 %v3144_v58, %v5297_v28  ;;  %v802_v20 = vmul.f32 %v3144_v58, %v708_v25 }
  0x64   : > { %v803_v3 = vmul.f32 %v3144_v58, %v5299_v47  ;;  %v804_v26 = vmul.f32 %v3144_v58, %v709_v6  ;;  %v805_v56 = vmul.f32 %v3144_v58, %v784_v8  ;;  %v822_v32 = vrot.slane %v790_v41, 1 }
  0x65   : > { %v823_v33 = vrot.slane %v791_v23, 1  ;;  %v825_v10 = vrot.slane %v792_v19, 1  ;;  %v826_v38 = vrot.slane %v793_v53, 1  ;;  %v828_v44 = vrot.slane %v794_v24, 1  ;;  %v3145_v53 = vld [vmem:[%s3785_s23 + $0xf4] sm:$0x1] }
  0x66   : > { %v829_v13 = vrot.slane %v795_v12, 1  ;;  %v831_v28 = vrot.slane %v796_v61, 1  ;;  %v832_v25 = vrot.slane %v797_v1, 1  ;;  %v834_v9 = vrot.slane %v798_v30, 1  ;;  %v3146_v24 = vld [vmem:[%s3785_s23 + $0xfc] sm:$0x1] }
  0x67   : > { %v824_v5 = vsel %vm465_vm1, %v822_v32, %v823_v33  ;;  %v827_v47 = vsel %vm465_vm1, %v825_v10, %v826_v38  ;;  %v835_v6 = vrot.slane %v799_v42, 1  ;;  %v837_v23 = vrot.slane %v800_v45, 1  ;;  %v3147_v30 = vld [vmem:[%s3785_s23 + $0x104] sm:$0x1]  ;;  %v3149_v45 = vld [vmem:[%s3785_s23 + $0x114] sm:$0x1] }
  0x68   : > { %v830_v58 = vsel %vm465_vm1, %v828_v44, %v829_v13  ;;  %v833_v41 = vsel %vm465_vm1, %v831_v28, %v832_v25  ;;  %v838_v19 = vrot.slane %v801_v37, 1  ;;  %v840_v61 = vrot.slane %v802_v20, 1  ;;  %v3148_v28 = vld [vmem:[%s3785_s23 + $0x10c] sm:$0x1]  ;;  %v3151_v13 = vld [vmem:[%s3785_s23 + $0x124] sm:$0x1] }
  0x69   : > { %v836_v12 = vsel %vm465_vm1, %v834_v9, %v835_v6  ;;  %v841_v1 = vrot.slane %v803_v3, 1  ;;  %v843_v32 = vrot.slane %v804_v26, 1  ;;  %v844_v33 = vrot.slane %v805_v56, 1  ;;  %v3150_v26 = vld [vmem:[%s3785_s23 + $0x11c] sm:$0x1] }
  0x6a   : > { %v839_v42 = vsel %vm465_vm1, %v837_v23, %v838_v19  ;;  %v4222_v10 = vadd.f32 %v824_v5, %v761_v11  ;;  %v4224_v38 = vadd.f32 %v827_v47, %v762_v49  ;;  %v4230_v44 = vadd.f32 %v830_v58, %v4151_v36  ;;  %v3152_v25 = vld [vmem:[%s3785_s23 + $0x12c] sm:$0x1]  ;;  %v3153_v36 = vld [vmem:[%s5281_s1 + $0x8] ss:$0 sm:$0xff] }
  0x6b   : > { %v842_v37 = vsel %vm465_vm1, %v840_v61, %v841_v1  ;;  %v4233_v20 = vadd.f32 %v833_v41, %v4153_v51  ;;  %v4235_v3 = vadd.f32 %v836_v12, %v765_v43  ;;  %v845_v11 = vsel %vm465_vm1, %v843_v32, %v844_v33 }
  0x6c   : > { %v4242_v49 = vadd.f32 %v839_v42, %v4164_v48  ;;  %v4245_v5 = vadd.f32 %v842_v37, %v4166_v35  ;;  %v870_v47 = vunpack.c.l.bf16 %v3145_v53  ;;  %v4251_v51 = vadd.f32 %v845_v11, %v4168_v15 }
  0x6d   : > { %v871_v43 = vunpack.c.l.bf16 %v3146_v24  ;;  %v872_v56 = vunpack.c.l.bf16 %v3147_v30  ;;  %v873_v9 = vunpack.c.l.bf16 %v3148_v28  ;;  %v874_v6 = vunpack.c.l.bf16 %v3149_v45 }
  0x6e   : > { %v875_v58 = vunpack.c.l.bf16 %v3150_v26  ;;  %v876_v41 = vunpack.c.l.bf16 %v3151_v13  ;;  %v877_v23 = vunpack.c.l.bf16 %v3152_v25  ;;  %v883_v48 = vmul.f32 %v3153_v36, %v740_v55 }
  0x6f   : > { %v884_v35 = vmul.f32 %v3153_v36, %v870_v47  ;;  %v885_v19 = vmul.f32 %v3153_v36, %v741_v54  ;;  %v886_v53 = vmul.f32 %v3153_v36, %v871_v43  ;;  %v887_v12 = vmul.f32 %v3153_v36, %v742_v29  ;;  %v3154_v47 = vld [vmem:[%s3785_s23 + $0xa0] sm:$0xe] }
  0x70   : > { %v888_v15 = vmul.f32 %v3153_v36, %v872_v56  ;;  %v889_v24 = vmul.f32 %v3153_v36, %v743_v57  ;;  %v890_v61 = vmul.f32 %v3153_v36, %v873_v9  ;;  %v891_v1 = vmul.f32 %v3153_v36, %v744_v59 }
  0x71   : > { %v892_v32 = vmul.f32 %v3153_v36, %v874_v6  ;;  %v893_v55 = vmul.f32 %v3153_v36, %v745_v62  ;;  %v894_v30 = vmul.f32 %v3153_v36, %v875_v58  ;;  %v895_v14 = vmul.f32 %v3153_v36, %v746_v60  ;;  %v3156_v58 = vld [vmem:[%s3785_s23 + $0xb0] sm:$0xe] }
  0x72   : > { %v896_v54 = vmul.f32 %v3153_v36, %v876_v41  ;;  %v897_v29 = vmul.f32 %v3153_v36, %v747_v17  ;;  %v898_v42 = vmul.f32 %v3153_v36, %v877_v23  ;;  %v915_v33 = vrot.slane %v883_v48, 1  ;;  %v3155_v36 = vld [vmem:[%s3785_s23 + $0xa8] sm:$0xe] }
  0x73   : > { %v916_v27 = vrot.slane %v884_v35, 1  ;;  %v918_v57 = vrot.slane %v885_v19, 1  ;;  %v919_v28 = vrot.slane %v886_v53, 1  ;;  %v921_v59 = vrot.slane %v887_v12, 1  ;;  %v3157_v19 = vld [vmem:[%s3785_s23 + $0xb8] sm:$0xe] }
  0x74   : > { %v922_v45 = vrot.slane %v888_v15, 1  ;;  %v924_v37 = vrot.slane %v889_v24, 1  ;;  %v925_v39 = vrot.slane %v890_v61, 1  ;;  %v927_v26 = vrot.slane %v891_v1, 1  ;;  %v3158_v53 = vld [vmem:[%s3785_s23 + $0xc0] sm:$0xe] }
  0x75   : > { %v917_v62 = vsel %vm465_vm1, %v915_v33, %v916_v27  ;;  %v920_v60 = vsel %vm465_vm1, %v918_v57, %v919_v28  ;;  %v928_v13 = vrot.slane %v892_v32, 1  ;;  %v930_v25 = vrot.slane %v893_v55, 1  ;;  %v3159_v1 = vld [vmem:[%s3785_s23 + $0xc8] sm:$0xe]  ;;  %v3160_v32 = vld [vmem:[%s3785_s23 + $0xd0] sm:$0xe] }
  0x76   : > { %v923_v52 = vsel %vm465_vm1, %v921_v59, %v922_v45  ;;  %v926_v17 = vsel %vm465_vm1, %v924_v37, %v925_v39  ;;  %v931_v11 = vrot.slane %v894_v30, 1  ;;  %v933_v56 = vrot.slane %v895_v14, 1  ;;  %v3161_v55 = vld [vmem:[%s3785_s23 + $0xd8] sm:$0xe] }
  0x77   : > { %v929_v43 = vsel %vm465_vm1, %v927_v26, %v928_v13  ;;  %v934_v9 = vrot.slane %v896_v54, 1  ;;  %v936_v6 = vrot.slane %v897_v29, 1  ;;  %v937_v23 = vrot.slane %v898_v42, 1  ;;  %v3162_v54 = vld [vmem:[%s5281_s1 + $0x9] ss:$0 sm:$0xff] }
  0x78   : > { %v932_v41 = vsel %vm465_vm1, %v930_v25, %v931_v11  ;;  %v4279_v48 = vadd.f32 %v917_v62, %v4222_v10  ;;  %v4282_v35 = vadd.f32 %v920_v60, %v4224_v38  ;;  %v4288_v15 = vadd.f32 %v923_v52, %v4230_v44 }
  0x79   : > { %v935_v12 = vsel %vm465_vm1, %v933_v56, %v934_v9  ;;  %v950_v24 = vadd.f32 %v926_v17, %v4233_v20  ;;  %v951_v61 = vadd.f32 %v929_v43, %v4235_v3  ;;  %v938_v10 = vsel %vm465_vm1, %v936_v6, %v937_v23 }
  0x7a   : > { %v952_v30 = vadd.f32 %v932_v41, %v4242_v49  ;;  %v953_v38 = vadd.f32 %v935_v12, %v4245_v5  ;;  %v963_v14 = vunpack.c.l.bf16 %v3154_v47  ;;  %v954_v44 = vadd.f32 %v938_v10, %v4251_v51  ;;  %v3165_v10 = vld [vmem:[%s3785_s23 + $0x18] ss:$8 sps:$4 sm:$0xff]  }
  0x7b   : > { %v964_v29 = vunpack.c.l.bf16 %v3155_v36  ;;  %v965_v20 = vunpack.c.l.bf16 %v3156_v58  ;;  %v966_v42 = vunpack.c.l.bf16 %v3157_v19  ;;  %v967_v3 = vunpack.c.l.bf16 %v3158_v53  ;;  %v3163_v53 = vld [vmem:[%s3785_s23 + $0x8] ss:$8 sps:$4 sm:$0xff]  }
  0x7c   : > { %v968_v33 = vunpack.c.l.bf16 %v3159_v1  ;;  %v969_v27 = vunpack.c.l.bf16 %v3160_v32  ;;  %v970_v57 = vunpack.c.l.bf16 %v3161_v55  ;;  %v976_v28 = vmul.f32 %v3162_v54, %v963_v14 }
  0x7d   : > { %v977_v49 = vmul.f32 %v3162_v54, %v777_v40  ;;  %v978_v59 = vmul.f32 %v3162_v54, %v964_v29  ;;  %v979_v5 = vmul.f32 %v3162_v54, %v778_v16  ;;  %v980_v45 = vmul.f32 %v3162_v54, %v965_v20 }
  0x7e   : > { %v981_v37 = vmul.f32 %v3162_v54, %v779_v18  ;;  %v982_v51 = vmul.f32 %v3162_v54, %v966_v42  ;;  %v983_v39 = vmul.f32 %v3162_v54, %v780_v46  ;;  %v984_v62 = vmul.f32 %v3162_v54, %v967_v3  ;;  %v3167_v42 = vld [vmem:[%s3785_s23 + $0x28] ss:$8 sps:$4 sm:$0xff]   ;;  %v3169_v3 = vld [vmem:[%s3785_s23 + $0x38] ss:$8 sps:$4 sm:$0xff]  }
  0x7f   : > { %v5351_v60 = vunpack.c.l.bf16 %v4149_v21  ;;  %v986_v13 = vmul.f32 %v3162_v54, %v968_v33  ;;  %v5352_v2 = vunpack.c.l.bf16 %v4156_v63  ;;  %v988_v52 = vmul.f32 %v3162_v54, %v969_v27 }
  0x80   : > { %v5353_v31 = vunpack.c.l.bf16 %v4159_v0  ;;  %v990_v17 = vmul.f32 %v3162_v54, %v970_v57  ;;  %v991_v50 = vmul.f32 %v3162_v54, %v784_v8  ;;  %v1008_v18 = vrot.slane %v976_v28, 2 }
  0x81   : > { %v985_v26 = vmul.f32 %v3162_v54, %v5351_v60  ;;  %v987_v40 = vmul.f32 %v3162_v54, %v5352_v2  ;;  %v1009_v25 = vrot.slane %v977_v49, 2  ;;  %v1011_v34 = vrot.slane %v978_v59, 2 }
  0x82   : > { %v989_v16 = vmul.f32 %v3162_v54, %v5353_v31  ;;  %v1012_v46 = vrot.slane %v979_v5, 2  ;;  %v1014_v11 = vrot.slane %v980_v45, 2  ;;  %v1015_v21 = vrot.slane %v981_v37, 2 }
  0x83   : > { %v1017_v47 = vrot.slane %v982_v51, 2  ;;  %v1018_v36 = vrot.slane %v983_v39, 2  ;;  %v1010_v63 = vsel %vm652_vm2, %v1008_v18, %v1009_v25  ;;  %v1020_v0 = vrot.slane %v984_v62, 2 }
  0x84   : > { %v1013_v43 = vsel %vm652_vm2, %v1011_v34, %v1012_v46  ;;  %v1021_v56 = vrot.slane %v985_v26, 2  ;;  %v1016_v9 = vsel %vm652_vm2, %v1014_v11, %v1015_v21  ;;  %v1023_v8 = vrot.slane %v986_v13, 2  ;;  %v3172_v26 = vld [vmem:[%s3785_s23 + $0x58] ss:$8 sps:$4 sm:$0xff]   ;;  %v3174_v13 = vld [vmem:[%s3785_s23 + $0x68] ss:$8 sps:$4 sm:$0xff]  }
  0x85   : > { %v1019_v22 = vsel %vm652_vm2, %v1017_v47, %v1018_v36  ;;  %v1024_v6 = vrot.slane %v987_v40, 2  ;;  %v1026_v41 = vrot.slane %v988_v52, 2  ;;  %v1027_v23 = vrot.slane %v989_v16, 2  ;;  %v3176_v16 = vld [vmem:[%s3785_s23 + $0x78] ss:$8 sps:$4 sm:$0xff]  }
  0x86   : > { %v1022_v58 = vsel %vm652_vm2, %v1020_v0, %v1021_v56  ;;  %v1029_v19 = vrot.slane %v990_v17, 2  ;;  %v1030_v1 = vrot.slane %v991_v50, 2  ;;  %v1040_v32 = vadd.f32 %v1010_v63, %v4279_v48  ;;  %v3171_v48 = vld [vmem:[%s5281_s1 + $0xa] ss:$0 sm:$0xff]  ;;  %v3180_v46 = vld [vmem:[%s5281_s1 + $0xb] ss:$0 sm:$0xff] }
  0x87   : > { %v1025_v12 = vsel %vm652_vm2, %v1023_v8, %v1024_v6  ;;  %v1041_v55 = vadd.f32 %v1013_v43, %v4282_v35  ;;  %v1028_v14 = vsel %vm652_vm2, %v1026_v41, %v1027_v23  ;;  %v1042_v54 = vadd.f32 %v1016_v9, %v4288_v15  ;;  %v3178_v17 = vld [vmem:[%s3785_s23 + $0x88] ss:$8 sps:$4 sm:$0xff]   ;;  %v4371_v41 = vld [vmem:[%s3785_s23 + $0x14] sm:$0x1] }
  0x88   : > { %v1043_v29 = vadd.f32 %v1019_v22, %v950_v24  ;;  %v1044_v20 = vadd.f32 %v1022_v58, %v951_v61  ;;  %v1031_v33 = vsel %vm652_vm2, %v1029_v19, %v1030_v1  ;;  %v1045_v27 = vadd.f32 %v1025_v12, %v952_v30  ;;  %v4368_v58 = vld [vmem:[%s3785_s23 + $0xc] sm:$0x1]  ;;  %v4374_v1 = vld [vmem:[%s3785_s23 + $0x1c] sm:$0x1] }
  0x89   : > { %v1046_v57 = vadd.f32 %v1028_v14, %v953_v38  ;;  %v4333_v28 = vunpack.c.l.bf16 %v3163_v53  ;;  %v1047_v35 = vadd.f32 %v1031_v33, %v954_v44  ;;  %v4338_v49 = vunpack.c.h.bf16 %v3163_v53 }
  0x8a   : > { %v4340_v15 = vunpack.c.l.bf16 %v3165_v10  ;;  %v4342_v24 = vunpack.c.h.bf16 %v3165_v10  ;;  %v4344_v61 = vunpack.c.l.bf16 %v3167_v42  ;;  %v4346_v59 = vunpack.c.h.bf16 %v3167_v42  ;;  %v4386_v42 = vld [vmem:[%s3785_s23 + $0x3c] sm:$0x1] }
  0x8b   : > { %v4348_v30 = vunpack.c.l.bf16 %v3169_v3  ;;  %v4350_v38 = vunpack.c.h.bf16 %v3169_v3  ;;  %v1070_v44 = vmul.f32 %v3171_v48, %v4333_v28  ;;  %v1071_v5 = vmul.f32 %v3171_v48, %v4338_v49  ;;  %5357 = vst [vmem:[#allocation10_spill] sm:$0xff] %v4386_v42  ;;  %v4389_v3 = vld [vmem:[%s3785_s23 + $0x44] sm:$0x1] }
  0x8c   : > { %v1072_v45 = vmul.f32 %v3171_v48, %v4340_v15  ;;  %v1073_v37 = vmul.f32 %v3171_v48, %v4342_v24  ;;  %v1074_v51 = vmul.f32 %v3171_v48, %v4344_v61  ;;  %v1075_v39 = vmul.f32 %v3171_v48, %v4346_v59  ;;  %5358 = vst [vmem:[#allocation11_spill] sm:$0xff] %v4389_v3 }
  0x8d   : > { %5354 = vst [vmem:[#allocation7_spill] sm:$0xff] %v4348_v30  ;;  %5355 = vst [vmem:[#allocation8_spill] sm:$0xff] %v4350_v38  ;;  %v1076_v62 = vmul.f32 %v3171_v48, %v4348_v30  ;;  %v1077_v60 = vmul.f32 %v3171_v48, %v4350_v38  ;;  %v1078_v2 = vadd.f32 %v1070_v44, %v1040_v32  ;;  %v1095_v11 = vunpack.c.l.bf16 %v3172_v26  ;;  %v4377_v32 = vld [vmem:[%s3785_s23 + $0x24] sm:$0x1] }
  0x8e   : > { %v1079_v40 = vadd.f32 %v1071_v5, %v1041_v55  ;;  %v1080_v52 = vadd.f32 %v1072_v45, %v1042_v54  ;;  %v1081_v31 = vadd.f32 %v1073_v37, %v1043_v29  ;;  %v1082_v50 = vadd.f32 %v1074_v51, %v1044_v20  ;;  %v4380_v55 = vld [vmem:[%s3785_s23 + $0x2c] sm:$0x1]  ;;  %v4383_v20 = vld [vmem:[%s3785_s23 + $0x34] sm:$0x1] }
  0x8f   : > { %v1083_v18 = vadd.f32 %v1075_v39, %v1045_v27  ;;  %v1084_v25 = vadd.f32 %v1076_v62, %v1046_v57  ;;  %v1085_v34 = vadd.f32 %v1077_v60, %v1047_v35  ;;  %v1096_v21 = vunpack.c.h.bf16 %v3172_v26  ;;  %5356 = vst [vmem:[#allocation9_spill] sm:$0xff] %v4383_v20  ;;  %v3189_v35 = vld [vmem:[%s5281_s1 + $0xc] ss:$0 sm:$0xff] }
  0x90   : > { %v1097_v47 = vunpack.c.l.bf16 %v3174_v13  ;;  %v1098_v36 = vunpack.c.h.bf16 %v3174_v13  ;;  %v1099_v63 = vunpack.c.l.bf16 %v3176_v16  ;;  %v1100_v43 = vunpack.c.h.bf16 %v3176_v16 }
  0x91   : > { %v1101_v0 = vunpack.c.l.bf16 %v3178_v17  ;;  %v1102_v56 = vunpack.c.h.bf16 %v3178_v17  ;;  %v1108_v9 = vmul.f32 %v3180_v46, %v1095_v11  ;;  %v1109_v22 = vmul.f32 %v3180_v46, %v1096_v21 }
  0x92   : > { %v1110_v8 = vmul.f32 %v3180_v46, %v1097_v47  ;;  %v1111_v6 = vmul.f32 %v3180_v46, %v1098_v36  ;;  %v1112_v23 = vmul.f32 %v3180_v46, %v1099_v63  ;;  %v1113_v19 = vmul.f32 %v3180_v46, %v1100_v43 }
  0x93   : > { %v1114_v53 = vmul.f32 %v3180_v46, %v1101_v0  ;;  %v1115_v12 = vmul.f32 %v3180_v46, %v1102_v56  ;;  %v1116_v10 = vadd.f32 %v1108_v9, %v1078_v2  ;;  %v1117_v14 = vadd.f32 %v1109_v22, %v1079_v40 }
  0x94   : > { %v1118_v54 = vadd.f32 %v1110_v8, %v1080_v52  ;;  %v1119_v29 = vadd.f32 %v1111_v6, %v1081_v31  ;;  %v4391_v33 = vadd.f32 %v1112_v23, %v1082_v50  ;;  %v1121_v27 = vadd.f32 %v1113_v19, %v1083_v18 }
  0x95   : > { %v1122_v57 = vadd.f32 %v1114_v53, %v1084_v25  ;;  %v4393_v48 = vadd.f32 %v1115_v12, %v1085_v34  ;;  %v5307_v44 = vunpack.c.l.bf16 %v4368_v58  ;;  %v5306_v5 = vunpack.c.l.bf16 %v4371_v41 }
  0x96   : > { %v5305_v45 = vunpack.c.l.bf16 %v4374_v1  ;;  %v5304_v37 = vunpack.c.l.bf16 %v4377_v32  ;;  %v5303_v51 = vunpack.c.l.bf16 %v4380_v55  ;;  %v5302_v39 = vunpack.c.l.bf16 %v4383_v20 }
  0x97   : > { %v5301_v62 = vunpack.c.l.bf16 %v4386_v42  ;;  %v5300_v60 = vunpack.c.l.bf16 %v4389_v3  ;;  %v1145_v26 = vmul.f32 %v3189_v35, %v4333_v28  ;;  %v1146_v13 = vmul.f32 %v3189_v35, %v5307_v44 }
  0x98   : > { %v1147_v2 = vmul.f32 %v3189_v35, %v4338_v49  ;;  %v1148_v40 = vmul.f32 %v3189_v35, %v5306_v5  ;;  %v1149_v52 = vmul.f32 %v3189_v35, %v4340_v15  ;;  %v1150_v31 = vmul.f32 %v3189_v35, %v5305_v45 }
  0x99   : > { %v1151_v16 = vmul.f32 %v3189_v35, %v4342_v24  ;;  %v1152_v17 = vmul.f32 %v3189_v35, %v5304_v37  ;;  %v1153_v50 = vmul.f32 %v3189_v35, %v4344_v61  ;;  %v1154_v18 = vmul.f32 %v3189_v35, %v5303_v51 }
  0x9a   : > { %v1155_v25 = vmul.f32 %v3189_v35, %v4346_v59  ;;  %v1156_v34 = vmul.f32 %v3189_v35, %v5302_v39  ;;  %v1157_v46 = vmul.f32 %v3189_v35, %v4348_v30  ;;  %v1158_v11 = vmul.f32 %v3189_v35, %v5301_v62 }
  0x9b   : > { %v1159_v21 = vmul.f32 %v3189_v35, %v4350_v38  ;;  %v1160_v47 = vmul.f32 %v3189_v35, %v5300_v60  ;;  %v1177_v36 = vrot.slane %v1145_v26, 1  ;;  %v1178_v63 = vrot.slane %v1146_v13, 1 }
  0x9c   : > { %v1180_v43 = vrot.slane %v1147_v2, 1  ;;  %v1181_v0 = vrot.slane %v1148_v40, 1  ;;  %v1183_v56 = vrot.slane %v1149_v52, 1  ;;  %v1184_v9 = vrot.slane %v1150_v31, 1 }
  0x9d   : > { %v1186_v22 = vrot.slane %v1151_v16, 1  ;;  %v1187_v8 = vrot.slane %v1152_v17, 1  ;;  %v1179_v6 = vsel %vm465_vm1, %v1177_v36, %v1178_v63  ;;  %v1189_v19 = vrot.slane %v1153_v50, 1  ;;  %v3191_v36 = vld [vmem:[%s3785_s23 + $0x5c] sm:$0x1] }
  0x9e   : > { %v1182_v23 = vsel %vm465_vm1, %v1180_v43, %v1181_v0  ;;  %v1190_v53 = vrot.slane %v1154_v18, 1  ;;  %v1185_v12 = vsel %vm465_vm1, %v1183_v56, %v1184_v9  ;;  %v1192_v26 = vrot.slane %v1155_v25, 1  ;;  %v3190_v18 = vld [vmem:[%s3785_s23 + $0x58] ss:$8 sps:$4 sm:$0xff]   ;;  %v3194_v63 = vld [vmem:[%s3785_s23 + $0x68] ss:$8 sps:$4 sm:$0xff]  }
  0x9f   : > { %v1188_v35 = vsel %vm465_vm1, %v1186_v22, %v1187_v8  ;;  %v1193_v13 = vrot.slane %v1156_v34, 1  ;;  %v1195_v40 = vrot.slane %v1157_v46, 1  ;;  %v1196_v52 = vrot.slane %v1158_v11, 1  ;;  %v3198_v9 = vld [vmem:[%s3785_s23 + $0x78] ss:$8 sps:$4 sm:$0xff]  }
  0xa0   : > { %v1191_v2 = vsel %vm465_vm1, %v1189_v19, %v1190_v53  ;;  %v1198_v31 = vrot.slane %v1159_v21, 1  ;;  %v1199_v17 = vrot.slane %v1160_v47, 1  ;;  %v4436_v50 = vadd.f32 %v1179_v6, %v1116_v10  ;;  %v3193_v21 = vld [vmem:[%s3785_s23 + $0x64] sm:$0x1]  ;;  %v3195_v47 = vld [vmem:[%s3785_s23 + $0x6c] sm:$0x1] }
  0xa1   : > { %v1194_v16 = vsel %vm465_vm1, %v1192_v26, %v1193_v13  ;;  %v1197_v25 = vsel %vm465_vm1, %v1195_v40, %v1196_v52  ;;  %v4441_v34 = vadd.f32 %v1182_v23, %v1117_v14  ;;  %v4443_v46 = vadd.f32 %v1185_v12, %v1118_v54  ;;  %v3197_v14 = vld [vmem:[%s3785_s23 + $0x74] sm:$0x1]  ;;  %v3199_v22 = vld [vmem:[%s3785_s23 + $0x7c] sm:$0x1]  ;;  %v3202_v8 = vld [vmem:[%s3785_s23 + $0x88] ss:$8 sps:$4 sm:$0xff]  }
  0xa2   : > { %v4445_v11 = vadd.f32 %v1188_v35, %v1119_v29  ;;  %v1200_v10 = vsel %vm465_vm1, %v1198_v31, %v1199_v17  ;;  %v4452_v43 = vadd.f32 %v1191_v2, %v4391_v33  ;;  %v4454_v0 = vadd.f32 %v1194_v16, %v1121_v27  ;;  %v3201_v29 = vld [vmem:[%s3785_s23 + $0x84] sm:$0x1]  ;;  %v3203_v6 = vld [vmem:[%s3785_s23 + $0x8c] sm:$0x1]  ;;  %v3205_v12 = vld [vmem:[%s3785_s23 + $0x94] sm:$0x1] }
  0xa3   : > { %v4456_v56 = vadd.f32 %v1197_v25, %v1122_v57  ;;  %v4462_v54 = vadd.f32 %v1200_v10, %v4393_v48  ;;  %v1290_v23 = vunpack.c.l.bf16 %v3190_v18  ;;  %v1291_v19 = vunpack.c.l.bf16 %v3191_v36  ;;  %v3206_v57 = vld [vmem:[%s5281_s1 + $0xd] ss:$0 sm:$0xff] }
  0xa4   : > { %v1292_v53 = vunpack.c.h.bf16 %v3190_v18  ;;  %v1293_v35 = vunpack.c.l.bf16 %v3193_v21  ;;  %v1294_v33 = vunpack.c.l.bf16 %v3194_v63  ;;  %v1295_v26 = vunpack.c.l.bf16 %v3195_v47 }
  0xa5   : > { %v1296_v27 = vunpack.c.h.bf16 %v3194_v63  ;;  %v1297_v13 = vunpack.c.l.bf16 %v3197_v14  ;;  %v1298_v2 = vunpack.c.l.bf16 %v3198_v9  ;;  %v1299_v40 = vunpack.c.l.bf16 %v3199_v22 }
  0xa6   : > { %v1300_v48 = vunpack.c.h.bf16 %v3198_v9  ;;  %v1301_v52 = vunpack.c.l.bf16 %v3201_v29  ;;  %v1302_v31 = vunpack.c.l.bf16 %v3202_v8  ;;  %v1303_v16 = vunpack.c.l.bf16 %v3203_v6 }
  0xa7   : > { %v1304_v17 = vunpack.c.h.bf16 %v3202_v8  ;;  %v1305_v25 = vunpack.c.l.bf16 %v3205_v12  ;;  %v1311_v36 = vmul.f32 %v3206_v57, %v1290_v23  ;;  %v1312_v18 = vmul.f32 %v3206_v57, %v1291_v19 }
  0xa8   : > { %v1313_v10 = vmul.f32 %v3206_v57, %v1292_v53  ;;  %v1314_v21 = vmul.f32 %v3206_v57, %v1293_v35  ;;  %v1315_v60 = vmul.f32 %v3206_v57, %v1294_v33  ;;  %v1316_v47 = vmul.f32 %v3206_v57, %v1295_v26 }
  0xa9   : > { %v1317_v63 = vmul.f32 %v3206_v57, %v1296_v27  ;;  %v1318_v62 = vmul.f32 %v3206_v57, %v1297_v13  ;;  %v1319_v39 = vmul.f32 %v3206_v57, %v1298_v2  ;;  %v1320_v51 = vmul.f32 %v3206_v57, %v1299_v40 }
  0xaa   : > { %v1321_v37 = vmul.f32 %v3206_v57, %v1300_v48  ;;  %v1322_v14 = vmul.f32 %v3206_v57, %v1301_v52  ;;  %v1323_v45 = vmul.f32 %v3206_v57, %v1302_v31  ;;  %v1324_v22 = vmul.f32 %v3206_v57, %v1303_v16  ;;  %v3207_v52 = vld [vmem:[%s3785_s23 + $0x8] sm:$0xe]  ;;  %v3208_v31 = vld [vmem:[%s3785_s23 + $0xc] sm:$0x1] }
  0xab   : > { %v1325_v9 = vmul.f32 %v3206_v57, %v1304_v17  ;;  %v1326_v29 = vmul.f32 %v3206_v57, %v1305_v25  ;;  %v1343_v6 = vrot.slane %v1311_v36, 1  ;;  %v1344_v8 = vrot.slane %v1312_v18, 1 }
  0xac   : > { %v1346_v23 = vrot.slane %v1313_v10, 1  ;;  %v1347_v19 = vrot.slane %v1314_v21, 1  ;;  %v1349_v53 = vrot.slane %v1315_v60, 1  ;;  %v1350_v12 = vrot.slane %v1316_v47, 1  ;;  %v3211_v10 = vld [vmem:[%s3785_s23 + $0x18] sm:$0xe] }
  0xad   : > { %v1352_v35 = vrot.slane %v1317_v63, 1  ;;  %v1345_v33 = vsel %vm465_vm1, %v1343_v6, %v1344_v8  ;;  %v1353_v26 = vrot.slane %v1318_v62, 1  ;;  %v1355_v27 = vrot.slane %v1319_v39, 1  ;;  %v3210_v62 = vld [vmem:[%s3785_s23 + $0x14] sm:$0x1] }
  0xae   : > { %v1356_v13 = vrot.slane %v1320_v51, 1  ;;  %v1348_v2 = vsel %vm465_vm1, %v1346_v23, %v1347_v19  ;;  %v1351_v57 = vsel %vm465_vm1, %v1349_v53, %v1350_v12  ;;  %v1358_v40 = vrot.slane %v1321_v37, 1  ;;  %v3209_v51 = vld [vmem:[%s3785_s23 + $0x10] sm:$0xe]  ;;  %v3212_v21 = vld [vmem:[%s3785_s23 + $0x1c] sm:$0x1] }
  0xaf   : > { %v1359_v48 = vrot.slane %v1322_v14, 1  ;;  %v1354_v60 = vsel %vm465_vm1, %v1352_v35, %v1353_v26  ;;  %v1361_v17 = vrot.slane %v1323_v45, 1  ;;  %v1362_v39 = vrot.slane %v1324_v22, 1  ;;  %v3213_v22 = vld [vmem:[%s3785_s23 + $0x20] sm:$0xe] }
  0xb0   : > { %v1357_v16 = vsel %vm465_vm1, %v1355_v27, %v1356_v13  ;;  %v1364_v36 = vrot.slane %v1325_v9, 1  ;;  %v1365_v18 = vrot.slane %v1326_v29, 1  ;;  %v4482_v37 = vadd.f32 %v1345_v33, %v4436_v50  ;;  %v3214_v50 = vld [vmem:[%s3785_s23 + $0x24] sm:$0x1]  ;;  %v3215_v9 = vld [vmem:[%s3785_s23 + $0x28] sm:$0xe] }
  0xb1   : > { %v1360_v25 = vsel %vm465_vm1, %v1358_v40, %v1359_v48  ;;  %v1363_v47 = vsel %vm465_vm1, %v1361_v17, %v1362_v39  ;;  %v4488_v45 = vadd.f32 %v1348_v2, %v4441_v34  ;;  %v4491_v63 = vadd.f32 %v1351_v57, %v4443_v46  ;;  %v3216_v46 = vld [vmem:[%s3785_s23 + $0x2c] sm:$0x1]  ;;  %v3217_v23 = vld [vmem:[%s3785_s23 + $0x30] sm:$0xe]  ;;  %v3218_v19 = vld [vmem:[%s3785_s23 + $0x34] sm:$0x1] }
  0xb2   : > { %v4494_v14 = vadd.f32 %v1354_v60, %v4445_v11  ;;  %v1366_v29 = vsel %vm465_vm1, %v1364_v36, %v1365_v18  ;;  %v4501_v6 = vadd.f32 %v1357_v16, %v4452_v43  ;;  %v4504_v8 = vadd.f32 %v1360_v25, %v4454_v0  ;;  %v3219_v53 = vld [vmem:[%s3785_s23 + $0x38] sm:$0xe]  ;;  %v3220_v12 = vld [vmem:[%s3785_s23 + $0x3c] sm:$0x1]  ;;  %v3221_v35 = vld [vmem:[%s3785_s23 + $0x40] sm:$0xe] }
  0xb3   : > { %v4507_v34 = vadd.f32 %v1363_v47, %v4456_v56  ;;  %v4513_v11 = vadd.f32 %v1366_v29, %v4462_v54  ;;  %v1399_v33 = vunpack.c.l.bf16 %v3207_v52  ;;  %v1400_v26 = vunpack.c.l.bf16 %v3208_v31  ;;  %v3222_v43 = vld [vmem:[%s3785_s23 + $0x44] sm:$0x1]  ;;  %v3223_v56 = vld [vmem:[%s5281_s1 + $0xe] ss:$0 sm:$0xff] }
  0xb4   : > { %v1401_v27 = vunpack.c.l.bf16 %v3209_v51  ;;  %v1402_v13 = vunpack.c.l.bf16 %v3210_v62  ;;  %v1403_v2 = vunpack.c.l.bf16 %v3211_v10  ;;  %v1404_v0 = vunpack.c.l.bf16 %v3212_v21 }
  0xb5   : > { %v1405_v57 = vunpack.c.l.bf16 %v3213_v22  ;;  %v1406_v40 = vunpack.c.l.bf16 %v3214_v50  ;;  %v1407_v48 = vunpack.c.l.bf16 %v3215_v9  ;;  %v1408_v60 = vunpack.c.l.bf16 %v3216_v46 }
  0xb6   : > { %v1409_v54 = vunpack.c.l.bf16 %v3217_v23  ;;  %v1410_v16 = vunpack.c.l.bf16 %v3218_v19  ;;  %v1411_v17 = vunpack.c.l.bf16 %v3219_v53  ;;  %v1412_v39 = vunpack.c.l.bf16 %v3220_v12 }
  0xb7   : > { %v1413_v25 = vunpack.c.l.bf16 %v3221_v35  ;;  %v1414_v52 = vunpack.c.l.bf16 %v3222_v43  ;;  %v1420_v31 = vmul.f32 %v3223_v56, %v1399_v33  ;;  %v1421_v51 = vmul.f32 %v3223_v56, %v1400_v26 }
  0xb8   : > { %v1422_v36 = vmul.f32 %v3223_v56, %v1401_v27  ;;  %v1423_v62 = vmul.f32 %v3223_v56, %v1402_v13  ;;  %v1424_v18 = vmul.f32 %v3223_v56, %v1403_v2  ;;  %v1425_v10 = vmul.f32 %v3223_v56, %v1404_v0 }
  0xb9   : > { %v1426_v21 = vmul.f32 %v3223_v56, %v1405_v57  ;;  %v1427_v47 = vmul.f32 %v3223_v56, %v1406_v40  ;;  %v1428_v22 = vmul.f32 %v3223_v56, %v1407_v48  ;;  %v1429_v29 = vmul.f32 %v3223_v56, %v1408_v60 }
  0xba   : > { %v1430_v5 = vmul.f32 %v3223_v56, %v1409_v54  ;;  %v1431_v50 = vmul.f32 %v3223_v56, %v1410_v16  ;;  %v1432_v9 = vmul.f32 %v3223_v56, %v1411_v17  ;;  %v1433_v46 = vmul.f32 %v3223_v56, %v1412_v39 }
  0xbb   : > { %v1434_v23 = vmul.f32 %v3223_v56, %v1413_v25  ;;  %v1435_v19 = vmul.f32 %v3223_v56, %v1414_v52  ;;  %v1452_v53 = vrot.slane %v1420_v31, 2  ;;  %v1453_v12 = vrot.slane %v1421_v51, 2 }
  0xbc   : > { %v1455_v35 = vrot.slane %v1422_v36, 2  ;;  %v1456_v43 = vrot.slane %v1423_v62, 2  ;;  %v1458_v33 = vrot.slane %v1424_v18, 2  ;;  %v1459_v26 = vrot.slane %v1425_v10, 2  ;;  %v4530_v36 = vld [vmem:[%s3785_s23 + $0xa8] ss:$8 sps:$4 sm:$0xff]  }
  0xbd   : > { %v1461_v27 = vrot.slane %v1426_v21, 2  ;;  %v1454_v13 = vsel %vm652_vm2, %v1452_v53, %v1453_v12  ;;  %v1462_v2 = vrot.slane %v1427_v47, 2  ;;  %v1464_v0 = vrot.slane %v1428_v22, 2  ;;  %v4533_v62 = vld [vmem:[%s3785_s23 + $0xb8] ss:$8 sps:$4 sm:$0xff]  }
  0xbe   : > { %v1465_v57 = vrot.slane %v1429_v29, 2  ;;  %v1457_v40 = vsel %vm652_vm2, %v1455_v35, %v1456_v43  ;;  %v1460_v48 = vsel %vm652_vm2, %v1458_v33, %v1459_v26  ;;  %v1467_v60 = vrot.slane %v1430_v5, 2  ;;  %v4540_v47 = vld [vmem:[%s3785_s23 + $0xc8] ss:$8 sps:$4 sm:$0xff]   ;;  %v4543_v22 = vld [vmem:[%s3785_s23 + $0xd8] ss:$8 sps:$4 sm:$0xff]  }
  0xbf   : > { %v1468_v56 = vrot.slane %v1431_v50, 2  ;;  %v1463_v54 = vsel %vm652_vm2, %v1461_v27, %v1462_v2  ;;  %v1470_v17 = vrot.slane %v1432_v9, 2  ;;  %v1471_v39 = vrot.slane %v1433_v46, 2  ;;  %v4579_v2 = vld [vmem:[%s3785_s23 + $0x108] ss:$8 sps:$4 sm:$0xff]  }
  0xc0   : > { %v1466_v16 = vsel %vm652_vm2, %v1464_v0, %v1465_v57  ;;  %v1473_v52 = vrot.slane %v1434_v23, 2  ;;  %v1474_v31 = vrot.slane %v1435_v19, 2  ;;  %v1484_v51 = vadd.f32 %v1454_v13, %v4482_v37  ;;  %v4576_v13 = vld [vmem:[%s3785_s23 + $0xf8] ss:$8 sps:$4 sm:$0xff]  }
  0xc1   : > { %v1469_v25 = vsel %vm652_vm2, %v1467_v60, %v1468_v56  ;;  %v1472_v5 = vsel %vm652_vm2, %v1470_v17, %v1471_v39  ;;  %v1485_v18 = vadd.f32 %v1457_v40, %v4488_v45  ;;  %v1486_v10 = vadd.f32 %v1460_v48, %v4491_v63  ;;  %v3232_v45 = vld [vmem:[%s5281_s1 + $0xf] ss:$0 sm:$0xff]  ;;  %v4584_v60 = vld [vmem:[%s3785_s23 + $0x118] ss:$8 sps:$4 sm:$0xff]   ;;  %v4587_v56 = vld [vmem:[%s3785_s23 + $0x128] ss:$8 sps:$4 sm:$0xff]  }
  0xc2   : > { %v1487_v21 = vadd.f32 %v1463_v54, %v4494_v14  ;;  %v1475_v29 = vsel %vm652_vm2, %v1473_v52, %v1474_v31  ;;  %v1488_v37 = vadd.f32 %v1466_v16, %v4501_v6  ;;  %v1489_v50 = vadd.f32 %v1469_v25, %v4504_v8  ;;  %v3241_v25 = vld [vmem:[%s5281_s1 + $0x10] ss:$0 sm:$0xff] }
  0xc3   : > { %v1490_v9 = vadd.f32 %v1472_v5, %v4507_v34  ;;  %v1491_v63 = vadd.f32 %v1475_v29, %v4513_v11  ;;  %v1501_v14 = vunpack.c.l.bf16 %v4530_v36  ;;  %v1502_v46 = vunpack.c.h.bf16 %v4530_v36 }
  0xc4   : > { %v1503_v23 = vunpack.c.l.bf16 %v4533_v62  ;;  %v1504_v6 = vunpack.c.h.bf16 %v4533_v62  ;;  %v1505_v8 = vunpack.c.l.bf16 %v4540_v47  ;;  %v5317_v34 = vunpack.c.h.bf16 %v4540_v47 }
  0xc5   : > { %v5316_v19 = vunpack.c.l.bf16 %v4543_v22  ;;  %v5315_v11 = vunpack.c.h.bf16 %v4543_v22  ;;  %v1514_v53 = vmul.f32 %v3232_v45, %v1501_v14  ;;  %v1515_v12 = vmul.f32 %v3232_v45, %v1502_v46 }
  0xc6   : > { %v1516_v35 = vmul.f32 %v3232_v45, %v1503_v23  ;;  %v1517_v43 = vmul.f32 %v3232_v45, %v1504_v6  ;;  %v1518_v33 = vmul.f32 %v3232_v45, %v1505_v8  ;;  %v1519_v26 = vmul.f32 %v3232_v45, %v5317_v34  ;;  %v4648_v34 = vld [vmem:[%s3785_s23 + $0xe4] sm:$0x1] }
  0xc7   : > { %v1520_v27 = vmul.f32 %v3232_v45, %v5316_v19  ;;  %v1521_v0 = vmul.f32 %v3232_v45, %v5315_v11  ;;  %v1522_v57 = vadd.f32 %v1514_v53, %v1484_v51  ;;  %v1523_v40 = vadd.f32 %v1515_v12, %v1485_v18 }
  0xc8   : > { %v1524_v48 = vadd.f32 %v1516_v35, %v1486_v10  ;;  %v1525_v54 = vadd.f32 %v1517_v43, %v1487_v21  ;;  %v1526_v16 = vadd.f32 %v1518_v33, %v1488_v37  ;;  %v1527_v17 = vadd.f32 %v1519_v26, %v1489_v50  ;;  %v4618_v33 = vld [vmem:[%s3785_s23 + $0xb4] sm:$0x1]  ;;  %v4621_v26 = vld [vmem:[%s3785_s23 + $0xbc] sm:$0x1] }
  0xc9   : > { %v1528_v39 = vadd.f32 %v1520_v27, %v1490_v9  ;;  %v1529_v52 = vadd.f32 %v1521_v0, %v1491_v63  ;;  %v5314_v31 = vunpack.c.l.bf16 %v4576_v13  ;;  %v5312_v51 = vunpack.c.h.bf16 %v4576_v13  ;;  %v4607_v63 = vld [vmem:[%s3785_s23 + $0xac] sm:$0x1]  ;;  %v4624_v27 = vld [vmem:[%s3785_s23 + $0xc4] sm:$0x1] }
  0xca   : > { %v5310_v5 = vunpack.c.l.bf16 %v4579_v2  ;;  %v5308_v18 = vunpack.c.h.bf16 %v4579_v2  ;;  %v5309_v10 = vunpack.c.l.bf16 %v4584_v60  ;;  %v5311_v21 = vunpack.c.h.bf16 %v4584_v60 }
  0xcb   : > { %v5313_v29 = vunpack.c.l.bf16 %v4587_v56  ;;  %v5321_v37 = vunpack.c.h.bf16 %v4587_v56  ;;  %v1552_v50 = vmul.f32 %v3241_v25, %v5314_v31  ;;  %v1553_v9 = vmul.f32 %v3241_v25, %v5312_v51  ;;  %v4639_v51 = vld [vmem:[%s3785_s23 + $0xdc] sm:$0x1] }
  0xcc   : > { %v1554_v45 = vmul.f32 %v3241_v25, %v5310_v5  ;;  %v1555_v53 = vmul.f32 %v3241_v25, %v5308_v18  ;;  %v1556_v12 = vmul.f32 %v3241_v25, %v5309_v10  ;;  %v1557_v35 = vmul.f32 %v3241_v25, %v5311_v21  ;;  %v4633_v5 = vld [vmem:[%s3785_s23 + $0xcc] sm:$0x1]  ;;  %v4636_v21 = vld [vmem:[%s3785_s23 + $0xd4] sm:$0x1] }
  0xcd   : > { %v1558_v43 = vmul.f32 %v3241_v25, %v5313_v29  ;;  %v1559_v0 = vmul.f32 %v3241_v25, %v5321_v37  ;;  %v1560_v44 = vadd.f32 %v1552_v50, %v1522_v57  ;;  %v4628_v18 = vadd.f32 %v1553_v9, %v1523_v40  ;;  %v3250_v57 = vld [vmem:[%s5281_s1 + $0x11] ss:$0 sm:$0xff] }
  0xce   : > { %v4630_v10 = vadd.f32 %v1554_v45, %v1524_v48  ;;  %v1563_v29 = vadd.f32 %v1555_v53, %v1525_v54  ;;  %v4641_v31 = vadd.f32 %v1556_v12, %v1526_v16  ;;  %v4643_v11 = vadd.f32 %v1557_v35, %v1527_v17 }
  0xcf   : > { %v4645_v19 = vadd.f32 %v1558_v43, %v1528_v39  ;;  %v4653_v40 = vadd.f32 %v1559_v0, %v1529_v52  ;;  %v5318_v48 = vunpack.c.l.bf16 %v4607_v63  ;;  %v5319_v25 = vunpack.c.l.bf16 %v4618_v33 }
  0xd0   : > { %v5320_v54 = vunpack.c.l.bf16 %v4621_v26  ;;  %v5322_v16 = vunpack.c.l.bf16 %v4624_v27  ;;  %v5324_v17 = vunpack.c.l.bf16 %v4633_v5  ;;  %v5326_v39 = vunpack.c.l.bf16 %v4636_v21 }
  0xd1   : > { %v5330_v50 = vunpack.c.l.bf16 %v4639_v51  ;;  %v1583_v9 = vunpack.c.l.bf16 %v4648_v34  ;;  %v1589_v52 = vmul.f32 %v3250_v57, %v1501_v14  ;;  %v1590_v45 = vmul.f32 %v3250_v57, %v5318_v48 }
  0xd2   : > { %v1591_v53 = vmul.f32 %v3250_v57, %v1502_v46  ;;  %v1592_v12 = vmul.f32 %v3250_v57, %v5319_v25  ;;  %v1593_v35 = vmul.f32 %v3250_v57, %v1503_v23  ;;  %v1594_v43 = vmul.f32 %v3250_v57, %v5320_v54 }
  0xd3   : > { %v1595_v0 = vmul.f32 %v3250_v57, %v1504_v6  ;;  %v1596_v14 = vmul.f32 %v3250_v57, %v5322_v16  ;;  %v1597_v48 = vmul.f32 %v3250_v57, %v1505_v8  ;;  %v1598_v36 = vmul.f32 %v3250_v57, %v5324_v17 }
  0xd4   : > { %v5359_v46 = vunpack.c.h.bf16 %v4540_v47  ;;  %v1600_v23 = vmul.f32 %v3250_v57, %v5326_v39  ;;  %v5360_v54 = vunpack.c.l.bf16 %v4543_v22  ;;  %v1602_v62 = vmul.f32 %v3250_v57, %v5330_v50 }
  0xd5   : > { %v5361_v6 = vunpack.c.h.bf16 %v4543_v22  ;;  %v1604_v8 = vmul.f32 %v3250_v57, %v1583_v9  ;;  %v1621_v3 = vrot.slane %v1589_v52, 1  ;;  %v1622_v17 = vrot.slane %v1590_v45, 1 }
  0xd6   : > { %v1599_v25 = vmul.f32 %v3250_v57, %v5359_v46  ;;  %v1601_v37 = vmul.f32 %v3250_v57, %v5360_v54  ;;  %v1624_v38 = vrot.slane %v1591_v53, 1  ;;  %v1625_v47 = vrot.slane %v1592_v12, 1 }
  0xd7   : > { %v1603_v16 = vmul.f32 %v3250_v57, %v5361_v6  ;;  %v1627_v46 = vrot.slane %v1593_v35, 1  ;;  %v1628_v39 = vrot.slane %v1594_v43, 1  ;;  %v1630_v42 = vrot.slane %v1595_v0, 1 }
  0xd8   : > { %v1623_v54 = vsel %vm465_vm1, %v1621_v3, %v1622_v17  ;;  %v1631_v30 = vrot.slane %v1596_v14, 1  ;;  %v1633_v20 = vrot.slane %v1597_v48, 1  ;;  %v1634_v50 = vrot.slane %v1598_v36, 1  ;;  %v3251_v17 = vld [vmem:[%s3785_s23 + $0xfc] sm:$0x1] }
  0xd9   : > { %v1626_v22 = vsel %vm465_vm1, %v1624_v38, %v1625_v47  ;;  %v1629_v57 = vsel %vm465_vm1, %v1627_v46, %v1628_v39  ;;  %v1636_v52 = vrot.slane %v1599_v25, 1  ;;  %v1637_v45 = vrot.slane %v1600_v23, 1  ;;  %v3252_v48 = vld [vmem:[%s3785_s23 + $0x104] sm:$0x1]  ;;  %v3253_v25 = vld [vmem:[%s3785_s23 + $0x10c] sm:$0x1] }
  0xda   : > { %v1632_v53 = vsel %vm465_vm1, %v1630_v42, %v1631_v30  ;;  %v1635_v12 = vsel %vm465_vm1, %v1633_v20, %v1634_v50  ;;  %v1639_v35 = vrot.slane %v1601_v37, 1  ;;  %v1640_v3 = vrot.slane %v1602_v62, 1  ;;  %v3254_v39 = vld [vmem:[%s3785_s23 + $0x114] sm:$0x1]  ;;  %v3255_v50 = vld [vmem:[%s3785_s23 + $0x11c] sm:$0x1] }
  0xdb   : > { %v1638_v43 = vsel %vm465_vm1, %v1636_v52, %v1637_v45  ;;  %v1642_v0 = vrot.slane %v1603_v16, 1  ;;  %v1643_v38 = vrot.slane %v1604_v8, 1  ;;  %v4703_v14 = vadd.f32 %v1623_v54, %v1560_v44  ;;  %v3256_v36 = vld [vmem:[%s3785_s23 + $0x124] sm:$0x1]  ;;  %v3257_v23 = vld [vmem:[%s3785_s23 + $0x12c] sm:$0x1] }
  0xdc   : > { %v1641_v30 = vsel %vm465_vm1, %v1639_v35, %v1640_v3  ;;  %v4709_v42 = vadd.f32 %v1626_v22, %v4628_v18  ;;  %v4712_v20 = vadd.f32 %v1629_v57, %v4630_v10  ;;  %v4714_v37 = vadd.f32 %v1632_v53, %v1563_v29  ;;  %v3258_v18 = vld [vmem:[%s3785_s23 + $0x134] sm:$0x1]  ;;  %v3259_v10 = vld [vmem:[%s5281_s1 + $0x12] ss:$0 sm:$0xff] }
  0xdd   : > { %v1644_v16 = vsel %vm465_vm1, %v1642_v0, %v1643_v38  ;;  %v4721_v44 = vadd.f32 %v1635_v12, %v4641_v31  ;;  %v4724_v62 = vadd.f32 %v1638_v43, %v4643_v11  ;;  %v4727_v6 = vadd.f32 %v1641_v30, %v4645_v19 }
  0xde   : > { %v4734_v29 = vadd.f32 %v1644_v16, %v4653_v40  ;;  %v1669_v8 = vunpack.c.l.bf16 %v3251_v17  ;;  %v1670_v47 = vunpack.c.l.bf16 %v3252_v48  ;;  %v1671_v46 = vunpack.c.l.bf16 %v3253_v25 }
  0xdf   : > { %v1672_v54 = vunpack.c.l.bf16 %v3254_v39  ;;  %v1673_v31 = vunpack.c.l.bf16 %v3255_v50  ;;  %v1674_v22 = vunpack.c.l.bf16 %v3256_v36  ;;  %v1675_v57 = vunpack.c.l.bf16 %v3257_v23 }
  0xe0   : > { %v1676_v11 = vunpack.c.l.bf16 %v3258_v18  ;;  %v5362_v52 = vunpack.c.l.bf16 %v4576_v13  ;;  %v1683_v45 = vmul.f32 %v3259_v10, %v1669_v8  ;;  %v5363_v53 = vunpack.c.h.bf16 %v4576_v13 }
  0xe1   : > { %v1685_v35 = vmul.f32 %v3259_v10, %v1670_v47  ;;  %v5364_v3 = vunpack.c.l.bf16 %v4579_v2  ;;  %v1687_v43 = vmul.f32 %v3259_v10, %v1671_v46  ;;  %v5365_v17 = vunpack.c.h.bf16 %v4579_v2 }
  0xe2   : > { %v1682_v19 = vmul.f32 %v3259_v10, %v5362_v52  ;;  %v1684_v12 = vmul.f32 %v3259_v10, %v5363_v53  ;;  %v1689_v0 = vmul.f32 %v3259_v10, %v1672_v54  ;;  %v5366_v38 = vunpack.c.l.bf16 %v4584_v60 }
  0xe3   : > { %v1686_v40 = vmul.f32 %v3259_v10, %v5364_v3  ;;  %v1688_v48 = vmul.f32 %v3259_v10, %v5365_v17  ;;  %v1691_v39 = vmul.f32 %v3259_v10, %v1673_v31  ;;  %v5367_v30 = vunpack.c.h.bf16 %v4584_v60 }
  0xe4   : > { %v1690_v25 = vmul.f32 %v3259_v10, %v5366_v38  ;;  %v1693_v36 = vmul.f32 %v3259_v10, %v1674_v22  ;;  %v5368_v13 = vunpack.c.l.bf16 %v4587_v56  ;;  %v1695_v16 = vmul.f32 %v3259_v10, %v1675_v57 }
  0xe5   : > { %v1692_v50 = vmul.f32 %v3259_v10, %v5367_v30  ;;  %v5369_v18 = vunpack.c.h.bf16 %v4587_v56  ;;  %v1697_v47 = vmul.f32 %v3259_v10, %v1676_v11  ;;  %v1714_v46 = vrot.slane %v1682_v19, 1  ;;  %v3262_v30 = vld [vmem:[%s3785_s23 + $0xb8] sm:$0xe] }
  0xe6   : > { %v1694_v23 = vmul.f32 %v3259_v10, %v5368_v13  ;;  %v1715_v2 = vrot.slane %v1683_v45, 1  ;;  %v1717_v52 = vrot.slane %v1684_v12, 1  ;;  %v1718_v54 = vrot.slane %v1685_v35, 1 }
  0xe7   : > { %v1696_v8 = vmul.f32 %v3259_v10, %v5369_v18  ;;  %v1720_v53 = vrot.slane %v1686_v40, 1  ;;  %v1721_v31 = vrot.slane %v1687_v43, 1  ;;  %v1723_v3 = vrot.slane %v1688_v48, 1  ;;  %v3260_v40 = vld [vmem:[%s3785_s23 + $0xa8] sm:$0xe] }
  0xe8   : > { %v1716_v60 = vsel %vm465_vm1, %v1714_v46, %v1715_v2  ;;  %v1724_v22 = vrot.slane %v1689_v0, 1  ;;  %v1726_v17 = vrot.slane %v1690_v25, 1  ;;  %v1727_v38 = vrot.slane %v1691_v39, 1  ;;  %v3261_v43 = vld [vmem:[%s3785_s23 + $0xb0] sm:$0xe] }
  0xe9   : > { %v1719_v56 = vsel %vm465_vm1, %v1717_v52, %v1718_v54  ;;  %v1722_v10 = vsel %vm465_vm1, %v1720_v53, %v1721_v31  ;;  %v1729_v57 = vrot.slane %v1692_v50, 1  ;;  %v1730_v11 = vrot.slane %v1693_v36, 1  ;;  %v3263_v50 = vld [vmem:[%s3785_s23 + $0xc0] sm:$0xe]  ;;  %v3264_v18 = vld [vmem:[%s3785_s23 + $0xc8] sm:$0xe] }
  0xea   : > { %v1725_v19 = vsel %vm465_vm1, %v1723_v3, %v1724_v22  ;;  %v1728_v45 = vsel %vm465_vm1, %v1726_v17, %v1727_v38  ;;  %v1732_v12 = vrot.slane %v1694_v23, 1  ;;  %v1733_v35 = vrot.slane %v1695_v16, 1  ;;  %v3266_v46 = vld [vmem:[%s3785_s23 + $0xd8] sm:$0xe] }
  0xeb   : > { %v1731_v48 = vsel %vm465_vm1, %v1729_v57, %v1730_v11  ;;  %v1735_v0 = vrot.slane %v1696_v8, 1  ;;  %v1736_v25 = vrot.slane %v1697_v47, 1  ;;  %v4761_v39 = vadd.f32 %v1716_v60, %v4703_v14  ;;  %v3265_v8 = vld [vmem:[%s3785_s23 + $0xd0] sm:$0xe] }
  0xec   : > { %v1734_v36 = vsel %vm465_vm1, %v1732_v12, %v1733_v35  ;;  %v4767_v13 = vadd.f32 %v1719_v56, %v4709_v42  ;;  %v4770_v23 = vadd.f32 %v1722_v10, %v4712_v20  ;;  %v4773_v16 = vadd.f32 %v1725_v19, %v4714_v37  ;;  %v3267_v42 = vld [vmem:[%s3785_s23 + $0xe0] sm:$0xe]  ;;  %v3268_v20 = vld [vmem:[%s5281_s1 + $0x13] ss:$0 sm:$0xff] }
  0xed   : > { %v1737_v47 = vsel %vm465_vm1, %v1735_v0, %v1736_v25  ;;  %v4780_v14 = vadd.f32 %v1728_v45, %v4721_v44  ;;  %v1751_v2 = vadd.f32 %v1731_v48, %v4724_v62  ;;  %v1752_v52 = vadd.f32 %v1734_v36, %v4727_v6 }
  0xee   : > { %v1753_v37 = vadd.f32 %v1737_v47, %v4734_v29  ;;  %v1762_v54 = vunpack.c.l.bf16 %v3260_v40  ;;  %v1763_v53 = vunpack.c.l.bf16 %v3261_v43  ;;  %v1764_v31 = vunpack.c.l.bf16 %v3262_v30 }
  0xef   : > { %v1765_v3 = vunpack.c.l.bf16 %v3263_v50  ;;  %v1766_v60 = vunpack.c.l.bf16 %v3264_v18  ;;  %v1767_v22 = vunpack.c.l.bf16 %v3265_v8  ;;  %v1768_v17 = vunpack.c.l.bf16 %v3266_v46 }
  0xf0   : > { %v1769_v44 = vunpack.c.l.bf16 %v3267_v42  ;;  %v1775_v38 = vmul.f32 %v3268_v20, %v1762_v54  ;;  %v5370_v62 = vunpack.c.l.bf16 %v4607_v63  ;;  %v1777_v6 = vmul.f32 %v3268_v20, %v1763_v53 }
  0xf1   : > { %v5371_v10 = vunpack.c.l.bf16 %v4618_v33  ;;  %v1779_v11 = vmul.f32 %v3268_v20, %v1764_v31  ;;  %v5372_v19 = vunpack.c.l.bf16 %v4621_v26  ;;  %v1781_v45 = vmul.f32 %v3268_v20, %v1765_v3 }
  0xf2   : > { %v1776_v56 = vmul.f32 %v3268_v20, %v5370_v62  ;;  %v5373_v12 = vunpack.c.l.bf16 %v4624_v27  ;;  %v1783_v40 = vmul.f32 %v3268_v20, %v1766_v60  ;;  %v5374_v43 = vunpack.c.l.bf16 %v4633_v5 }
  0xf3   : > { %v1778_v57 = vmul.f32 %v3268_v20, %v5371_v10  ;;  %v1780_v29 = vmul.f32 %v3268_v20, %v5372_v19  ;;  %v1785_v0 = vmul.f32 %v3268_v20, %v1767_v22  ;;  %v5375_v63 = vunpack.c.l.bf16 %v4636_v21  ;;  %v4816_v10 = vld [vmem:[%s3785_s23 + $0x20] ss:$8 sps:$4 sm:$0xff]  }
  0xf4   : > { %v1782_v35 = vmul.f32 %v3268_v20, %v5373_v12  ;;  %v1784_v48 = vmul.f32 %v3268_v20, %v5374_v43  ;;  %v1787_v30 = vmul.f32 %v3268_v20, %v1768_v17  ;;  %v5376_v33 = vunpack.c.l.bf16 %v4639_v51  ;;  %v4826_v12 = vld [vmem:[%s3785_s23 + $0x40] ss:$8 sps:$4 sm:$0xff]  }
  0xf5   : > { %v1786_v25 = vmul.f32 %v3268_v20, %v5375_v63  ;;  %v1789_v36 = vmul.f32 %v3268_v20, %v1769_v44  ;;  %v1790_v26 = vmul.f32 %v3268_v20, %v1583_v9  ;;  %v1807_v18 = vrot.slane %v1775_v38, 2 }
  0xf6   : > { %v1788_v50 = vmul.f32 %v3268_v20, %v5376_v33  ;;  %v1808_v8 = vrot.slane %v1776_v56, 2  ;;  %v1810_v27 = vrot.slane %v1777_v6, 2  ;;  %v1811_v46 = vrot.slane %v1778_v57, 2  ;;  %v4813_v6 = vld [vmem:[%s3785_s23 + $0x10] ss:$8 sps:$4 sm:$0xff]  }
  0xf7   : > { %v1813_v47 = vrot.slane %v1779_v11, 2  ;;  %v1814_v42 = vrot.slane %v1780_v29, 2  ;;  %v1816_v5 = vrot.slane %v1781_v45, 2  ;;  %v1817_v21 = vrot.slane %v1782_v35, 2  ;;  %v4823_v45 = vld [vmem:[%s3785_s23 + $0x30] ss:$8 sps:$4 sm:$0xff]  }
  0xf8   : > { %v1809_v54 = vsel %vm652_vm2, %v1807_v18, %v1808_v8  ;;  %v1819_v53 = vrot.slane %v1783_v40, 2  ;;  %v1820_v31 = vrot.slane %v1784_v48, 2  ;;  %v1812_v51 = vsel %vm652_vm2, %v1810_v27, %v1811_v46  ;;  %v3277_v48 = vld [vmem:[%s5281_s1 + $0x14] ss:$0 sm:$0xff]  ;;  %v4856_v8 = vld [vmem:[%s3785_s23 + $0x60] ss:$8 sps:$4 sm:$0xff]  }
  0xf9   : > { %v1815_v3 = vsel %vm652_vm2, %v1813_v47, %v1814_v42  ;;  %v1822_v34 = vrot.slane %v1785_v0, 2  ;;  %v1823_v9 = vrot.slane %v1786_v25, 2  ;;  %v1818_v20 = vsel %vm652_vm2, %v1816_v5, %v1817_v21  ;;  %v4859_v27 = vld [vmem:[%s3785_s23 + $0x70] ss:$8 sps:$4 sm:$0xff]  }
  0xfa   : > { %v1821_v60 = vsel %vm652_vm2, %v1819_v53, %v1820_v31  ;;  %v1825_v22 = vrot.slane %v1787_v30, 2  ;;  %v1826_v17 = vrot.slane %v1788_v50, 2  ;;  %v1828_v38 = vrot.slane %v1789_v36, 2  ;;  %v4867_v21 = vld [vmem:[%s3785_s23 + $0x90] ss:$8 sps:$4 sm:$0xff]  }
  0xfb   : > { %v1824_v44 = vsel %vm652_vm2, %v1822_v34, %v1823_v9  ;;  %v1829_v62 = vrot.slane %v1790_v26, 2  ;;  %v1839_v56 = vadd.f32 %v1809_v54, %v4761_v39  ;;  %v1840_v11 = vadd.f32 %v1812_v51, %v4767_v13  ;;  %v4864_v54 = vld [vmem:[%s3785_s23 + $0x80] ss:$8 sps:$4 sm:$0xff]   ;;  %v3286_v34 = vld [vmem:[%s5281_s1 + $0x15] ss:$0 sm:$0xff] }
  0xfc   : > { %v1827_v57 = vsel %vm652_vm2, %v1825_v22, %v1826_v17  ;;  %v1841_v19 = vadd.f32 %v1815_v3, %v4770_v23  ;;  %v1842_v29 = vadd.f32 %v1818_v20, %v4773_v16  ;;  %v1843_v39 = vadd.f32 %v1821_v60, %v4780_v14 }
  0xfd   : > { %v1830_v35 = vsel %vm652_vm2, %v1828_v38, %v1829_v62  ;;  %v1844_v40 = vadd.f32 %v1824_v44, %v1751_v2  ;;  %v1845_v43 = vadd.f32 %v1827_v57, %v1752_v52  ;;  %v1856_v13 = vunpack.c.l.bf16 %v4813_v6 }
  0xfe   : > { %v1846_v0 = vadd.f32 %v1830_v35, %v1753_v37  ;;  %v1857_v23 = vunpack.c.h.bf16 %v4813_v6  ;;  %v1858_v16 = vunpack.c.l.bf16 %v4816_v10  ;;  %v1859_v63 = vunpack.c.h.bf16 %v4816_v10 }
  0xff   : > { %v1860_v25 = vunpack.c.l.bf16 %v4823_v45  ;;  %v1861_v14 = vunpack.c.h.bf16 %v4823_v45  ;;  %v1862_v2 = vunpack.c.l.bf16 %v4826_v12  ;;  %v1863_v52 = vunpack.c.h.bf16 %v4826_v12 }
 0x100   : > { %v1869_v37 = vmul.f32 %v3277_v48, %v1856_v13  ;;  %v1870_v30 = vmul.f32 %v3277_v48, %v1857_v23  ;;  %v1871_v33 = vmul.f32 %v3277_v48, %v1858_v16  ;;  %v1872_v50 = vmul.f32 %v3277_v48, %v1859_v63 }
 0x101   : > { %v1873_v36 = vmul.f32 %v3277_v48, %v1860_v25  ;;  %v1874_v26 = vmul.f32 %v3277_v48, %v1861_v14  ;;  %v1875_v18 = vmul.f32 %v3277_v48, %v1862_v2  ;;  %v1876_v46 = vmul.f32 %v3277_v48, %v1863_v52  ;;  %v4898_v48 = vld [vmem:[%s3785_s23 + $0x1c] sm:$0x1] }
 0x102   : > { %v1877_v47 = vadd.f32 %v1869_v37, %v1839_v56  ;;  %v1878_v42 = vadd.f32 %v1870_v30, %v1840_v11  ;;  %v1879_v5 = vadd.f32 %v1871_v33, %v1841_v19  ;;  %v1880_v53 = vadd.f32 %v1872_v50, %v1842_v29  ;;  %v4887_v29 = vld [vmem:[%s3785_s23 + $0x14] sm:$0x1]  ;;  %v4904_v37 = vld [vmem:[%s3785_s23 + $0x2c] sm:$0x1] }
 0x103   : > { %v1881_v31 = vadd.f32 %v1873_v36, %v1843_v39  ;;  %v1882_v51 = vadd.f32 %v1874_v26, %v1844_v40  ;;  %v1883_v3 = vadd.f32 %v1875_v18, %v1845_v43  ;;  %v1884_v9 = vadd.f32 %v1876_v46, %v1846_v0  ;;  %v4901_v0 = vld [vmem:[%s3785_s23 + $0x24] sm:$0x1]  ;;  %v4913_v26 = vld [vmem:[%s3785_s23 + $0x34] sm:$0x1]  ;;  %v4916_v18 = vld [vmem:[%s3785_s23 + $0x3c] sm:$0x1] }
 0x104   : > { %v5344_v20 = vunpack.c.l.bf16 %v4856_v8  ;;  %v5343_v60 = vunpack.c.h.bf16 %v4856_v8  ;;  %v5335_v22 = vunpack.c.l.bf16 %v4859_v27  ;;  %v5334_v17 = vunpack.c.h.bf16 %v4859_v27  ;;  %v4919_v46 = vld [vmem:[%s3785_s23 + $0x44] sm:$0x1] }
 0x105   : > { %v5333_v44 = vunpack.c.l.bf16 %v4864_v54  ;;  %v5332_v38 = vunpack.c.h.bf16 %v4864_v54  ;;  %v5331_v62 = vunpack.c.l.bf16 %v4867_v21  ;;  %v5342_v56 = vunpack.c.h.bf16 %v4867_v21 }
 0x106   : > { %v1907_v57 = vmul.f32 %v3286_v34, %v5344_v20  ;;  %v1908_v11 = vmul.f32 %v3286_v34, %v5343_v60  ;;  %v1909_v19 = vmul.f32 %v3286_v34, %v5335_v22  ;;  %v1910_v35 = vmul.f32 %v3286_v34, %v5334_v17  ;;  %v4928_v22 = vld [vmem:[%s3785_s23 + $0x4c] sm:$0x1] }
 0x107   : > { %v1911_v39 = vmul.f32 %v3286_v34, %v5333_v44  ;;  %v1912_v40 = vmul.f32 %v3286_v34, %v5332_v38  ;;  %v1913_v43 = vmul.f32 %v3286_v34, %v5331_v62  ;;  %v1914_v30 = vmul.f32 %v3286_v34, %v5342_v56 }
 0x108   : > { %v1915_v33 = vadd.f32 %v1907_v57, %v1877_v47  ;;  %v4908_v50 = vadd.f32 %v1908_v11, %v1878_v42  ;;  %v4910_v36 = vadd.f32 %v1909_v19, %v1879_v5  ;;  %v1918_v62 = vadd.f32 %v1910_v35, %v1880_v53  ;;  %v3295_v47 = vld [vmem:[%s5281_s1 + $0x16] ss:$0 sm:$0xff] }
 0x109   : > { %v4921_v38 = vadd.f32 %v1911_v39, %v1881_v31  ;;  %v4923_v44 = vadd.f32 %v1912_v40, %v1882_v51  ;;  %v4925_v17 = vadd.f32 %v1913_v43, %v1883_v3  ;;  %v4933_v42 = vadd.f32 %v1914_v30, %v1884_v9 }
 0x10a   : > { %v5336_v5 = vunpack.c.l.bf16 %v4887_v29  ;;  %v5340_v34 = vunpack.c.l.bf16 %v4898_v48  ;;  %v5337_v53 = vunpack.c.l.bf16 %v4901_v0  ;;  %v5338_v31 = vunpack.c.l.bf16 %v4904_v37 }
 0x10b   : > { %v5339_v51 = vunpack.c.l.bf16 %v4913_v26  ;;  %v5341_v3 = vunpack.c.l.bf16 %v4916_v18  ;;  %v5345_v57 = vunpack.c.l.bf16 %v4919_v46  ;;  %v1938_v11 = vunpack.c.l.bf16 %v4928_v22 }
 0x10c   : > { %v1944_v9 = vmul.f32 %v3295_v47, %v1856_v13  ;;  %v1945_v19 = vmul.f32 %v3295_v47, %v5336_v5  ;;  %v1946_v35 = vmul.f32 %v3295_v47, %v1857_v23  ;;  %v1947_v39 = vmul.f32 %v3295_v47, %v5340_v34 }
 0x10d   : > { %v1948_v40 = vmul.f32 %v3295_v47, %v1858_v16  ;;  %v1949_v43 = vmul.f32 %v3295_v47, %v5337_v53  ;;  %v1950_v30 = vmul.f32 %v3295_v47, %v1859_v63  ;;  %v1951_v13 = vmul.f32 %v3295_v47, %v5338_v31 }
 0x10e   : > { %v1952_v5 = vmul.f32 %v3295_v47, %v1860_v25  ;;  %v1953_v6 = vmul.f32 %v3295_v47, %v5339_v51  ;;  %v1954_v23 = vmul.f32 %v3295_v47, %v1861_v14  ;;  %v1955_v16 = vmul.f32 %v3295_v47, %v5341_v3 }
 0x10f   : > { %v1956_v53 = vmul.f32 %v3295_v47, %v1862_v2  ;;  %v1957_v10 = vmul.f32 %v3295_v47, %v5345_v57  ;;  %v1958_v63 = vmul.f32 %v3295_v47, %v1863_v52  ;;  %v1959_v25 = vmul.f32 %v3295_v47, %v1938_v11 }
 0x110   : > { %v1976_v31 = vrot.slane %v1944_v9, 1  ;;  %v1977_v51 = vrot.slane %v1945_v19, 1  ;;  %v1979_v34 = vrot.slane %v1946_v35, 1  ;;  %v1980_v45 = vrot.slane %v1947_v39, 1 }
 0x111   : > { %v1982_v14 = vrot.slane %v1948_v40, 1  ;;  %v1983_v3 = vrot.slane %v1949_v43, 1  ;;  %v1985_v56 = vrot.slane %v1950_v30, 1  ;;  %v1986_v60 = vrot.slane %v1951_v13, 1  ;;  %v3299_v13 = vld [vmem:[%s3785_s23 + $0x7c] sm:$0x1] }
 0x112   : > { %v1978_v2 = vsel %vm465_vm1, %v1976_v31, %v1977_v51  ;;  %v1988_v20 = vrot.slane %v1952_v5, 1  ;;  %v1989_v57 = vrot.slane %v1953_v6, 1  ;;  %v1981_v12 = vsel %vm465_vm1, %v1979_v34, %v1980_v45  ;;  %v3296_v51 = vld [vmem:[%s3785_s23 + $0x64] sm:$0x1]  ;;  %v3297_v5 = vld [vmem:[%s3785_s23 + $0x6c] sm:$0x1] }
 0x113   : > { %v1984_v52 = vsel %vm465_vm1, %v1982_v14, %v1983_v3  ;;  %v1991_v47 = vrot.slane %v1954_v23, 1  ;;  %v1992_v9 = vrot.slane %v1955_v16, 1  ;;  %v1987_v19 = vsel %vm465_vm1, %v1985_v56, %v1986_v60  ;;  %v3298_v3 = vld [vmem:[%s3785_s23 + $0x74] sm:$0x1]  ;;  %v3301_v6 = vld [vmem:[%s3785_s23 + $0x8c] sm:$0x1] }
 0x114   : > { %v1990_v35 = vsel %vm465_vm1, %v1988_v20, %v1989_v57  ;;  %v1994_v39 = vrot.slane %v1956_v53, 1  ;;  %v1995_v31 = vrot.slane %v1957_v10, 1  ;;  %v1997_v43 = vrot.slane %v1958_v63, 1  ;;  %v3300_v57 = vld [vmem:[%s3785_s23 + $0x84] sm:$0x1] }
 0x115   : > { %v1993_v40 = vsel %vm465_vm1, %v1991_v47, %v1992_v9  ;;  %v1998_v34 = vrot.slane %v1959_v25, 1  ;;  %v4983_v30 = vadd.f32 %v1978_v2, %v1915_v33  ;;  %v4989_v56 = vadd.f32 %v1981_v12, %v4908_v50  ;;  %v3302_v23 = vld [vmem:[%s3785_s23 + $0x94] sm:$0x1]  ;;  %v3303_v50 = vld [vmem:[%s3785_s23 + $0x9c] sm:$0x1] }
 0x116   : > { %v1996_v60 = vsel %vm465_vm1, %v1994_v39, %v1995_v31  ;;  %v4992_v20 = vadd.f32 %v1984_v52, %v4910_v36  ;;  %v4994_v53 = vadd.f32 %v1987_v19, %v1918_v62  ;;  %v5001_v33 = vadd.f32 %v1990_v35, %v4921_v38  ;;  %v3304_v62 = vld [vmem:[%s5281_s1 + $0x17] ss:$0 sm:$0xff] }
 0x117   : > { %v1999_v16 = vsel %vm465_vm1, %v1997_v43, %v1998_v34  ;;  %v5004_v10 = vadd.f32 %v1993_v40, %v4923_v44  ;;  %v5007_v63 = vadd.f32 %v1996_v60, %v4925_v17  ;;  %v2024_v25 = vunpack.c.l.bf16 %v3296_v51 }
 0x118   : > { %v5014_v36 = vadd.f32 %v1999_v16, %v4933_v42  ;;  %v2025_v45 = vunpack.c.l.bf16 %v3297_v5  ;;  %v2026_v14 = vunpack.c.l.bf16 %v3298_v3  ;;  %v2027_v2 = vunpack.c.l.bf16 %v3299_v13 }
 0x119   : > { %v2028_v38 = vunpack.c.l.bf16 %v3300_v57  ;;  %v2029_v12 = vunpack.c.l.bf16 %v3301_v6  ;;  %v2030_v52 = vunpack.c.l.bf16 %v3302_v23  ;;  %v2031_v44 = vunpack.c.l.bf16 %v3303_v50 }
 0x11a   : > { %v5377_v47 = vunpack.c.l.bf16 %v4856_v8  ;;  %v2038_v9 = vmul.f32 %v3304_v62, %v2024_v25  ;;  %v5378_v19 = vunpack.c.h.bf16 %v4856_v8  ;;  %v2040_v39 = vmul.f32 %v3304_v62, %v2025_v45 }
 0x11b   : > { %v5379_v31 = vunpack.c.l.bf16 %v4859_v27  ;;  %v2042_v40 = vmul.f32 %v3304_v62, %v2026_v14  ;;  %v5380_v51 = vunpack.c.h.bf16 %v4859_v27  ;;  %v2044_v43 = vmul.f32 %v3304_v62, %v2027_v2 }
 0x11c   : > { %v2037_v17 = vmul.f32 %v3304_v62, %v5377_v47  ;;  %v2039_v35 = vmul.f32 %v3304_v62, %v5378_v19  ;;  %v5381_v34 = vunpack.c.l.bf16 %v4864_v54  ;;  %v2046_v13 = vmul.f32 %v3304_v62, %v2028_v38 }
 0x11d   : > { %v2041_v42 = vmul.f32 %v3304_v62, %v5379_v31  ;;  %v2043_v5 = vmul.f32 %v3304_v62, %v5380_v51  ;;  %v5382_v60 = vunpack.c.h.bf16 %v4864_v54  ;;  %v2048_v6 = vmul.f32 %v3304_v62, %v2029_v12 }
 0x11e   : > { %v2045_v3 = vmul.f32 %v3304_v62, %v5381_v34  ;;  %v5383_v8 = vunpack.c.l.bf16 %v4867_v21  ;;  %v2050_v16 = vmul.f32 %v3304_v62, %v2030_v52  ;;  %v5384_v50 = vunpack.c.h.bf16 %v4867_v21 }
 0x11f   : > { %v2047_v57 = vmul.f32 %v3304_v62, %v5382_v60  ;;  %v2052_v45 = vmul.f32 %v3304_v62, %v2031_v44  ;;  %v2069_v14 = vrot.slane %v2037_v17, 1  ;;  %v2070_v27 = vrot.slane %v2038_v9, 1  ;;  %v3307_v60 = vld [vmem:[%s3785_s23 + $0x20] sm:$0xe] }
 0x120   : > { %v2049_v23 = vmul.f32 %v3304_v62, %v5383_v8  ;;  %v2051_v25 = vmul.f32 %v3304_v62, %v5384_v50  ;;  %v2072_v47 = vrot.slane %v2039_v35, 1  ;;  %v2073_v2 = vrot.slane %v2040_v39, 1  ;;  %v3309_v50 = vld [vmem:[%s3785_s23 + $0x30] sm:$0xe] }
 0x121   : > { %v2075_v19 = vrot.slane %v2041_v42, 1  ;;  %v2076_v38 = vrot.slane %v2042_v40, 1  ;;  %v2078_v31 = vrot.slane %v2043_v5, 1  ;;  %v2071_v54 = vsel %vm465_vm1, %v2069_v14, %v2070_v27  ;;  %v3305_v42 = vld [vmem:[%s3785_s23 + $0x10] sm:$0xe] }
 0x122   : > { %v2079_v12 = vrot.slane %v2044_v43, 1  ;;  %v2081_v51 = vrot.slane %v2045_v3, 1  ;;  %v2082_v34 = vrot.slane %v2046_v13, 1  ;;  %v2074_v21 = vsel %vm465_vm1, %v2072_v47, %v2073_v2  ;;  %v3306_v40 = vld [vmem:[%s3785_s23 + $0x18] sm:$0xe] }
 0x123   : > { %v2077_v62 = vsel %vm465_vm1, %v2075_v19, %v2076_v38  ;;  %v2084_v52 = vrot.slane %v2047_v57, 1  ;;  %v2085_v44 = vrot.slane %v2048_v6, 1  ;;  %v2087_v35 = vrot.slane %v2049_v23, 1  ;;  %v3308_v57 = vld [vmem:[%s3785_s23 + $0x28] sm:$0xe] }
 0x124   : > { %v2080_v17 = vsel %vm465_vm1, %v2078_v31, %v2079_v12  ;;  %v2083_v9 = vsel %vm465_vm1, %v2081_v51, %v2082_v34  ;;  %v2088_v39 = vrot.slane %v2050_v16, 1  ;;  %v2090_v43 = vrot.slane %v2051_v25, 1  ;;  %v3310_v14 = vld [vmem:[%s3785_s23 + $0x38] sm:$0xe]  ;;  %v3311_v27 = vld [vmem:[%s3785_s23 + $0x40] sm:$0xe] }
 0x125   : > { %v2086_v5 = vsel %vm465_vm1, %v2084_v52, %v2085_v44  ;;  %v2091_v3 = vrot.slane %v2052_v45, 1  ;;  %v5041_v13 = vadd.f32 %v2071_v54, %v4983_v30  ;;  %v5047_v8 = vadd.f32 %v2074_v21, %v4989_v56  ;;  %v3312_v2 = vld [vmem:[%s3785_s23 + $0x48] sm:$0xe]  ;;  %v3313_v56 = vld [vmem:[%s5281_s1 + $0x18] ss:$0 sm:$0xff]  ;;  %s326_s23 = sand.u32 1, %s3641_s10  }
 0x126   : > { %v2089_v6 = vsel %vm465_vm1, %v2087_v35, %v2088_v39  ;;  %v2103_v23 = vadd.f32 %v2077_v62, %v4992_v20  ;;  %v2104_v16 = vadd.f32 %v2080_v17, %v4994_v53  ;;  %v2105_v45 = vadd.f32 %v2083_v9, %v5001_v33  ;;  %s3094_s28 = sshll.u32 %s326_s23, 6  ;;  %s5239_s24 = scalar_lea.sflag [#allocation5], %s326_s23 }
 0x127   : > { %v2092_v25 = vsel %vm465_vm1, %v2090_v43, %v2091_v3  ;;  %v2106_v30 = vadd.f32 %v2086_v5, %v5004_v10  ;;  %v2107_v47 = vadd.f32 %v2089_v6, %v5007_v63  ;;  %v2117_v19 = vunpack.c.l.bf16 %v3305_v42  ;;  %s328_s29 = scalar_lea.vmem [#allocation4], %s3094_s28 }
 0x128   : > { %v2108_v20 = vadd.f32 %v2092_v25, %v5014_v36  ;;  %v2118_v53 = vunpack.c.l.bf16 %v3306_v40  ;;  %v2119_v38 = vunpack.c.l.bf16 %v3307_v60  ;;  %v2120_v31 = vunpack.c.l.bf16 %v3308_v57  ;;  %s3028_s14 = sshll.u32 %s328_s29, 4  ;;  %s5232_s14 = int_to_ptr.vmem [resolvable:$true] %s3028_s14 }
 0x129   : > { %v2121_v54 = vunpack.c.l.bf16 %v3309_v50  ;;  %v2122_v12 = vunpack.c.l.bf16 %v3310_v14  ;;  %v2123_v51 = vunpack.c.l.bf16 %v3311_v27  ;;  %v2124_v34 = vunpack.c.l.bf16 %v3312_v2  ;;  %s3587_s13 = scalar_lea.vmem %s5232_s14, 1024  ;;  %p3594_p0 = scmp.lt.s32.totalorder %s5232_s14, %s3592_s26 }
 0x12a   : > { %v2130_v33 = vmul.f32 %v3313_v56, %v2117_v19  ;;  %v5385_v10 = vunpack.c.l.bf16 %v4887_v29  ;;  %v2132_v63 = vmul.f32 %v3313_v56, %v2118_v53  ;;  %v5386_v62 = vunpack.c.l.bf16 %v4898_v48  ;;  %p3588_p11 = scmp.ne.s32.totalorder %s5232_s14, %s3587_s13  ;;  %p3595_p1 = scmp.lt.s32.totalorder %s3593_s27, %s3587_s13 }
 0x12b   : > { %v2134_v44 = vmul.f32 %v3313_v56, %v2119_v38  ;;  %v5387_v36 = vunpack.c.l.bf16 %v4901_v0  ;;  %v2136_v9 = vmul.f32 %v3313_v56, %v2120_v31  ;;  %v5388_v35 = vunpack.c.l.bf16 %v4904_v37 }
 0x12c   : > { %v2131_v21 = vmul.f32 %v3313_v56, %v5385_v10  ;;  %v2133_v52 = vmul.f32 %v3313_v56, %v5386_v62  ;;  %v2138_v42 = vmul.f32 %v3313_v56, %v2121_v54  ;;  %v5389_v40 = vunpack.c.l.bf16 %v4913_v26  ;;  %p3589_p12 = pnand %p3588_p11, %p3745_p5  ;;  %p3596_p2 = por %p3595_p1, %p3594_p0 }
 0x12d   : > { %v2135_v17 = vmul.f32 %v3313_v56, %v5387_v36  ;;  %v2137_v39 = vmul.f32 %v3313_v56, %v5388_v35  ;;  %v2140_v43 = vmul.f32 %v3313_v56, %v2122_v12  ;;  %v5390_v29 = vunpack.c.l.bf16 %v4916_v18 }
 0x12e   : > { %v2139_v5 = vmul.f32 %v3313_v56, %v5389_v40  ;;  %v2142_v60 = vmul.f32 %v3313_v56, %v2123_v51  ;;  %v5391_v48 = vunpack.c.l.bf16 %v4919_v46  ;;  %v2144_v6 = vmul.f32 %v3313_v56, %v2124_v34  ;;  %p3590_p13 = pneg %p3589_p12 }
 0x12f   : > { %v2141_v3 = vmul.f32 %v3313_v56, %v5390_v29  ;;  %v2145_v0 = vmul.f32 %v3313_v56, %v1938_v11  ;;  %v2162_v50 = vrot.slane %v2130_v33, 2  ;;  %v2163_v14 = vrot.slane %v2131_v21, 2 }
 0x130   : > { %v2143_v57 = vmul.f32 %v3313_v56, %v5391_v48  ;;  %v2165_v37 = vrot.slane %v2132_v63, 2  ;;  %v2166_v27 = vrot.slane %v2133_v52, 2  ;;  %v2168_v25 = vrot.slane %v2134_v44, 2  ;;  %p3597_p3 = pnand %p3596_p2, %p3590_p13 }
 0x131   : > { %v2169_v2 = vrot.slane %v2135_v17, 2  ;;  %v2171_v26 = vrot.slane %v2136_v9, 2  ;;  %v2164_v19 = vsel %vm652_vm2, %v2162_v50, %v2163_v14  ;;  %v2172_v53 = vrot.slane %v2137_v39, 2 }
 0x132   : > { %v2174_v18 = vrot.slane %v2138_v42, 2  ;;  %v2175_v38 = vrot.slane %v2139_v5, 2  ;;  %v2167_v31 = vsel %vm652_vm2, %v2165_v37, %v2166_v27  ;;  %v2177_v54 = vrot.slane %v2140_v43, 2 }
 0x133   : > { %v2170_v46 = vsel %vm652_vm2, %v2168_v25, %v2169_v2  ;;  %v2178_v12 = vrot.slane %v2141_v3, 2  ;;  %v2173_v22 = vsel %vm652_vm2, %v2171_v26, %v2172_v53  ;;  %v2180_v56 = vrot.slane %v2142_v60, 2 }
 0x134   : > { %v2176_v11 = vsel %vm652_vm2, %v2174_v18, %v2175_v38  ;;  %v2181_v51 = vrot.slane %v2143_v57, 2  ;;  %v2183_v33 = vrot.slane %v2144_v6, 2  ;;  %v2184_v10 = vrot.slane %v2145_v0, 2 }
 0x135   : > { %v2179_v34 = vsel %vm652_vm2, %v2177_v54, %v2178_v12  ;;  %v2194_v21 = vadd.f32 %v2164_v19, %v5041_v13  ;;  %v2195_v62 = vadd.f32 %v2167_v31, %v5047_v8  ;;  %v2196_v52 = vadd.f32 %v2170_v46, %v2103_v23 }
 0x136   : > { %v2182_v63 = vsel %vm652_vm2, %v2180_v56, %v2181_v51  ;;  %v2197_v44 = vadd.f32 %v2173_v22, %v2104_v16  ;;  %v2185_v36 = vsel %vm652_vm2, %v2183_v33, %v2184_v10  ;;  %v2198_v17 = vadd.f32 %v2176_v11, %v2105_v45 }
 0x137   : > { %v2199_v9 = vadd.f32 %v2179_v34, %v2106_v30  ;;  %v2200_v35 = vadd.f32 %v2182_v63, %v2107_v47  ;;  %2565 = vst.msk [vmem:[#allocation2] sm:$0xff] %vm1269_vm3, %v2194_v21  ;;  %v2201_v39 = vadd.f32 %v2185_v36, %v2108_v20  ;;  %v2202_v42 = vsel %vm1269_vm3, %v2194_v21, 0.0  ;;  %2566 = vst.msk [vmem:[#allocation2 + $0x8] sm:$0xff] %vm1269_vm3, %v2195_v62 }
 0x138   : > { %v2203_v40 = vsel %vm1269_vm3, %v2195_v62, 0.0  ;;  %v2205_v13 = vsel %vm1269_vm3, %v2196_v52, 0.0  ;;  %2567 = vst.msk [vmem:[#allocation2 + $0x10] sm:$0xff] %vm1269_vm3, %v2196_v52  ;;  %2568 = vst.msk [vmem:[#allocation2 + $0x18] sm:$0xff] %vm1269_vm3, %v2197_v44  ;;  %v2207_v23 = vsel %vm1269_vm3, %v2197_v44, 0.0  ;;  %v2224_v16 = vmul.f32 %v2194_v21, %v2194_v21 }
 0x139   : > { %v2204_v8 = vadd.f32 %v2203_v40, %v2202_v42  ;;  %2569 = vst.msk [vmem:[#allocation2 + $0x20] sm:$0xff] %vm1269_vm3, %v2198_v17  ;;  %2570 = vst.msk [vmem:[#allocation2 + $0x28] sm:$0xff] %vm1269_vm3, %v2199_v9  ;;  %v2225_v45 = vmul.f32 %v2195_v62, %v2195_v62  ;;  %v2226_v47 = vmul.f32 %v2196_v52, %v2196_v52  ;;  %v2209_v5 = vsel %vm1269_vm3, %v2198_v17, 0.0 }
 0x13a   : > { %2571 = vst.msk [vmem:[#allocation2 + $0x30] sm:$0xff] %vm1269_vm3, %v2200_v35  ;;  %2572 = vst.msk [vmem:[#allocation2 + $0x38] sm:$0xff] %vm1269_vm3, %v2201_v39  ;;  %v2227_v20 = vmul.f32 %v2197_v44, %v2197_v44  ;;  %v2232_v43 = vsel %vm1269_vm3, %v2224_v16, 0.0  ;;  %v2228_v3 = vmul.f32 %v2198_v17, %v2198_v17  ;;  %v2211_v57 = vsel %vm1269_vm3, %v2199_v9, 0.0 }
 0x13b   : > { %v2206_v30 = vadd.f32 %v2205_v13, %v2204_v8  ;;  %v2233_v60 = vsel %vm1269_vm3, %v2225_v45, 0.0  ;;  %v2235_v48 = vsel %vm1269_vm3, %v2226_v47, 0.0  ;;  %v2229_v50 = vmul.f32 %v2199_v9, %v2199_v9  ;;  %v2410_v13 = vld [vmem:[%s5285_s5] sm:$0xff]  ;;  %v2411_v8 = vld [vmem:[%s5285_s5 + $0x8] sm:$0xff]  ;;  %v2413_v45 = vld [vmem:[%s5285_s5 + $0x18] sm:$0xff] }
 0x13c   : > { %v2234_v6 = vadd.f32 %v2233_v60, %v2232_v43  ;;  %v2237_v14 = vsel %vm1269_vm3, %v2227_v20, 0.0  ;;  %v2213_v37 = vsel %vm1269_vm3, %v2200_v35, 0.0  ;;  %v2230_v2 = vmul.f32 %v2200_v35, %v2200_v35 }
 0x13d   : > { %v2208_v29 = vadd.f32 %v2207_v23, %v2206_v30  ;;  %v2239_v26 = vsel %vm1269_vm3, %v2228_v3, 0.0  ;;  %v2215_v19 = vsel %vm1269_vm3, %v2201_v39, 0.0  ;;  %v2231_v38 = vmul.f32 %v2201_v39, %v2201_v39 }
 0x13e   : > { %v2236_v27 = vadd.f32 %v2235_v48, %v2234_v6  ;;  %v2241_v31 = vsel %vm1269_vm3, %v2229_v50, 0.0  ;;  %v2243_v12 = vsel %vm1269_vm3, %v2230_v2, 0.0  ;;  %v5392_v39 = vmov 0.0   ;;  %v3557_v6 = vld [vmem:[%s5286_s6] sm:$0xff]  }
 0x13f   : > { %v2210_v0 = vadd.f32 %v2209_v5, %v2208_v29  ;;  %v2245_v56 = vsel %vm1269_vm3, %v2231_v38, 0.0  ;;  %v5393_v40 = vmov 0.0|0.0   ;;  %v3493_v16 = vpack.c.bf16 %v2411_v8, %v2410_v13  ;;  %v3559_v50 = vld [vmem:[%s5288_s8] sm:$0xff]  }
 0x140   : > { %v2238_v53 = vadd.f32 %v2237_v14, %v2236_v27  ;;  %v3560_v14 = vld [vmem:[%s5288_s8 + $0x8] sm:$0xff]   ;;  %3444 = vmatprep.subr.bf16.mxu1 %v3559_v50 }
 0x141   : > { %v2212_v25 = vadd.f32 %v2211_v57, %v2210_v0  ;;  %v3558_v0 = vld [vmem:[%s5286_s6 + $0x8] sm:$0xff]   ;;  %3445 = vmatpush3.bf16.msra.mxu1 %v3559_v50  ;;  %v1242_v50 = vrot.slane %v4342_v24, 1 }
 0x142   : > { %v2240_v46 = vadd.f32 %v2239_v26, %v2238_v53  ;;  %3446 = vmatprep.subr.bf16.mxu1 %v3560_v14  ;;  %v2560_v26 = vld [vmem:[%s5282_s2] sm:$0x1] }
 0x143   : > { %v2214_v18 = vadd.f32 %v2213_v37, %v2212_v25  ;;  %v2581_v25 = vlaneseq }
 0x144   : > { %v2242_v22 = vadd.f32 %v2241_v31, %v2240_v46  ;;  %v2562_v31 = vld [vmem:[%s5283_s3] sm:$0x1] }
 0x145   : > { %v2216_v54 = vadd.f32 %v2215_v19, %v2214_v18  ;;  %3447 = vmatpush3.bf16.msra.mxu1 %v3560_v14  ;;  %v2582_v2 = vshrl.u32 %v2581_v25, 7  ;;  %v5397_v14 = vunpack.c.l.bf16 %v4377_v32  ;;  %v3562_v32 = vld [vmem:[%s5287_s7 + $0x8] sm:$0xff]  }
 0x146   : > { %v2244_v34 = vadd.f32 %v2243_v12, %v2242_v22  ;;  %v2573_v12 = vld [vmem:[#allocation2] sm:$0xff]  ;;  %v2574_v22 = vld [vmem:[#allocation2 + $0x8] sm:$0xff] }
 0x147   : > { %v2217_v11 = vsel %vm1269_vm3, %v2216_v54, 0.0  ;;  %v2583_v19 = vsub.s32 0, %v2582_v2  ;;  %v3563_v2 = vld [vmem:[%s5287_s7 + $0x10] sm:$0xff]  }
 0x148   : > { %v2218_v51 = vrot.slane %v2217_v11, 4  ;;  %v2246_v10 = vadd.f32 %v2245_v56, %v2244_v34  ;;  %v2576_v56 = vld [vmem:[#allocation2 + $0x18] sm:$0xff] }
 0x14a   : > { %v2219_v33 = vadd.f32 %v2218_v51, %v2217_v11  ;;  %v2247_v63 = vsel %vm1269_vm3, %v2246_v10, 0.0  ;;  %v2575_v11 = vld [vmem:[#allocation2 + $0x10] sm:$0xff]  ;;  %v2577_v51 = vld [vmem:[#allocation2 + $0x20] sm:$0xff] }
 0x14b   : > { %v2248_v62 = vrot.slane %v2247_v63, 4  ;;  %v2579_v10 = vld [vmem:[#allocation2 + $0x30] sm:$0xff] }
 0x14c   : > { %v2220_v21 = vrot.slane %v2219_v33, 2 }
 0x14d   : > { %v2249_v44 = vadd.f32 %v2248_v62, %v2247_v63 }
 0x14e   : > { %v2221_v52 = vadd.f32 %v2220_v21, %v2219_v33  ;;  %v2578_v33 = vld [vmem:[#allocation2 + $0x28] sm:$0xff]  ;;  %v2580_v21 = vld [vmem:[#allocation2 + $0x38] sm:$0xff] }
 0x14f   : > { %v2250_v17 = vrot.slane %v2249_v44, 2 }
 0x150   : > { %v2222_v36 = vrot.slane %v2221_v52, 1 }
 0x151   : > { %v2251_v35 = vadd.f32 %v2250_v17, %v2249_v44 }
 0x152   : > { %v2223_v9 = vadd.f32 %v2222_v36, %v2221_v52 }
 0x153   : > { %v2252_v42 = vrot.slane %v2251_v35, 1 }
 0x154   : > { %3397 = vmatmul.mubr.msk.f32.vlgmr.msra.gmra.mrb[0].mxu0 %vm1269_vm3, %v2223_v9 }
 0x155   : > { %3488 = vmatpush3.bf16.msra.mxu0 %v3765_v4  ;;  %3407 = vmatprep.mubr.msk.f32.mxu0 %vm3652_vm0, %v5392_v39  ;;  %v2253_v23 = vadd.f32 %v2252_v42, %v2251_v35  ;;  %v2412_v4 = vld [vmem:[%s5285_s5 + $0x10] sm:$0xff] }
 0x156   : > { %3489 = vmatprep.subr.bf16.mxu0 %v5393_v40 }
 0x159   : > { %3491 = vmatpush3.bf16.msra.mxu0 %v3774_v7  ;;  %v3496_v7 = vpack.c.bf16 %v2413_v45, %v2412_v4 }
 0x15a   : > { %3492 = vmatprep.subr.bf16.mxu0 %v5393_v40 }
 0x15c   : > { %3408 = vmatmul.mubr.msk.f32.vlgmr.msra.gmra.mrb[2].mxu0 %vm1269_vm3, %v2253_v23 }
 0x15d   : > { %3494 = vmatpush3.bf16.msra.mxu0 %v3493_v16  ;;  %3418 = vmatprep.mubr.msk.f32.mxu0 %vm3652_vm0, %v5392_v39 }
 0x15e   : > { %3495 = vmatprep.subr.bf16.mxu0 %v5393_v40 }
 0x161   : > { %3497 = vmatpush3.bf16.msra.mxu0 %v3496_v7 }
 0x162   : > { %3498 = vmatprep.subr.bf16.mxu0 %v5393_v40 }
 0x227   : > { %v2327_v30 = vpop.f32.mrb[0].mxu0 }
 0x228   : > { %v2404_v47 = vmul.f32 0.015625, %v2327_v30  ;;  %v3398_v20 = vpop.f32.mrb[1].mxu0 }
 0x22a   : > { %3419 = vmatmul.mubr.msk.f32.vlgmr.msra.gmra.mrb[4].mxu0 %vm1269_vm3, %v2404_v47  ;;  %v2406_v43 = vmul.f32 %v2404_v47, %v2404_v47 }
 0x22b   : > { %3500 = vmatpush3.bf16.msra.mxu0 %v3493_v16  ;;  %3429 = vmatprep.mubr.msk.f32.mxu0 %vm3652_vm0, %v5392_v39 }
 0x22c   : > { %3501 = vmatprep.subr.bf16.mxu0 %v5393_v40 }
 0x22f   : > { %v2400_v5 = vpop.f32.mrb[2].mxu0  ;;  %3503 = vmatpush3.bf16.msra.mxu0 %v3496_v7 }
 0x230   : > { %v2405_v29 = vmul.f32 0.015625, %v2400_v5  ;;  %v3409_v3 = vpop.f32.mrb[3].mxu0  ;;  %3432 = vmatprep.subr.bf16.mxu0 %v3557_v6  ;;  %v1233_v5 = vrot.slane %v4333_v28, 1 }
 0x231   : > { %v1236_v3 = vrot.slane %v4338_v49, 1 }
 0x232   : > { %v2407_v60 = vsub.f32 %v2405_v29, %v2406_v43  ;;  %v5394_v43 = vunpack.c.l.bf16 %v4368_v58 }
 0x234   : > { %v2408_v48 = vadd.f32 1e-05, %v2407_v60  ;;  %v1234_v29 = vrot.slane %v5394_v43, 1  ;;  %v5395_v60 = vunpack.c.l.bf16 %v4371_v41 }
 0x236   : > { %3569 = vrsqrt.f32 %v2408_v48  ;;  %v1237_v48 = vrot.slane %v5395_v60, 1  ;;  %v1235_v28 = vsel %vm465_vm1, %v1233_v5, %v1234_v29 }
 0x238   : > { %v1238_v58 = vsel %vm465_vm1, %v1236_v3, %v1237_v48 }
 0x240   : > { %v3570_v57 = vpop.eup %3569 }
 0x241   : > { %3430 = vmatmul.mubr.msk.f32.vlgmr.msra.gmra.mrb[6].mxu0 %vm1269_vm3, %v3570_v57  ;;  %v1239_v57 = vrot.slane %v4340_v15, 1  ;;  %v3561_v15 = vld [vmem:[%s5287_s7] sm:$0xff]  }
 0x242   : > { %3433 = vmatpush3.bf16.msra.mxu0 %v3557_v6  ;;  %v5396_v6 = vunpack.c.l.bf16 %v4374_v1  ;;  %3456 = vmatprep.subr.bf16.mxu1 %v3561_v15 }
 0x243   : > { %3434 = vmatprep.subr.bf16.mxu0 %v3558_v0 }
 0x246   : > { %3435 = vmatpush3.bf16.msra.mxu0 %v3558_v0  ;;  %v1240_v0 = vrot.slane %v5396_v6, 1 }
 0x248   : > { %v1241_v49 = vsel %vm465_vm1, %v1239_v57, %v1240_v0 }
 0x2fd   : > { %v2483_v37 = vpop.f32.mrb[4].mxu0 }
 0x2fe   : > { %v3420_v27 = vpop.f32.mrb[5].mxu0 }
 0x2ff   : > { %v1265_v27 = vpack.c.bf16 %v1238_v58, %v1235_v28 }
 0x301   : > { %1270 = vst.msk [vmem:[#allocation3] sm:$0xff] %vm1269_vm3, %v1265_v27 }
 0x308   : > { %v2796_v24 = vld [vmem:[#allocation3] sm:$0xff] }
 0x309   : > { %3448 = vmatprep.mubr.msk.bf16.mxu1 %vm1269_vm3, %v2796_v24 }
 0x314   : > { %v2556_v53 = vpop.f32.mrb[6].mxu0 }
 0x315   : > { %v2561_v18 = vmul.f32 %v2560_v26, %v2556_v53  ;;  %v3431_v38 = vpop.f32.mrb[7].mxu0  ;;  %v3564_v26 = vld [vmem:[%s5287_s7 + $0x18] sm:$0xff]   ;;  %v5398_v53 = vunpack.c.l.bf16 %v4380_v55 }
 0x316   : > { %v1248_v38 = vrot.slane %v4346_v59, 1 }
 0x317   : > { %v2563_v46 = vmul.f32 %v2561_v18, %v2483_v37  ;;  %v2584_v54 = vrot.slane %v2561_v18, %v2583_v19  ;;  %v1243_v37 = vrot.slane %v5397_v14, 1  ;;  %v1246_v18 = vrot.slane %v5398_v53, 1 }
 0x319   : > { %v2564_v34 = vsub.f32 %v2562_v31, %v2563_v46  ;;  %v2585_v63 = vmul.f32 %v2584_v54, %v2573_v12  ;;  %v2586_v52 = vmul.f32 %v2584_v54, %v2574_v22  ;;  %v2587_v44 = vmul.f32 %v2584_v54, %v2575_v11  ;;  %v5399_v31 = vld [vmem:[#allocation9_spill] sm:$0xff]  ;;  %v5401_v12 = vld [vmem:[#allocation7_spill] sm:$0xff]  ;;  %v5402_v11 = vld [vmem:[#allocation10_spill] sm:$0xff] }
 0x31a   : > { %v2588_v36 = vmul.f32 %v2584_v54, %v2576_v56  ;;  %v2589_v17 = vmul.f32 %v2584_v54, %v2577_v51  ;;  %v2590_v9 = vmul.f32 %v2584_v54, %v2578_v33  ;;  %v2591_v35 = vmul.f32 %v2584_v54, %v2579_v10  ;;  %v5405_v10 = vld [vmem:[#allocation11_spill] sm:$0xff] }
 0x31b   : > { %v2597_v62 = vrot.slane %v2564_v34, %v2583_v19  ;;  %v2592_v39 = vmul.f32 %v2584_v54, %v2580_v21  ;;  %v1244_v41 = vsel %vm465_vm1, %v1242_v50, %v1243_v37  ;;  %v1245_v19 = vrot.slane %v4344_v61, 1  ;;  %v5404_v34 = vld [vmem:[#allocation8_spill] sm:$0xff] }
 0x31c   : > { %v1266_v25 = vpack.c.bf16 %v1244_v41, %v1241_v49  ;;  %v5400_v46 = vunpack.c.l.bf16 %v5399_v31  ;;  %v1251_v22 = vrot.slane %v5401_v12, 1  ;;  %v5403_v56 = vunpack.c.l.bf16 %v5402_v11 }
 0x31d   : > { %v2599_v42 = vadd.f32 %v2597_v62, %v2585_v63  ;;  %v2600_v40 = vadd.f32 %v2597_v62, %v2586_v52  ;;  %v2601_v13 = vadd.f32 %v2597_v62, %v2587_v44  ;;  %v2602_v8 = vadd.f32 %v2597_v62, %v2588_v36  ;;  %v3565_v44 = vld [vmem:[%s5287_s7 + $0x20] sm:$0xff]  }
 0x31e   : > { %v2603_v23 = vadd.f32 %v2597_v62, %v2589_v17  ;;  %v2604_v16 = vadd.f32 %v2597_v62, %v2590_v9  ;;  %v2605_v4 = vadd.f32 %v2597_v62, %v2591_v35  ;;  %v2606_v45 = vadd.f32 %v2597_v62, %v2592_v39  ;;  %1271 = vst.msk [vmem:[#allocation3 + $0x8] sm:$0xff] %vm1269_vm3, %v1266_v25  ;;  %v3566_v17 = vld [vmem:[%s5287_s7 + $0x28] sm:$0xff]   ;;  %v3567_v35 = vld [vmem:[%s5287_s7 + $0x30] sm:$0xff]  }
 0x31f   : > { %v2607_v7 = vpack.c.bf16 %v2600_v40, %v2599_v42  ;;  %v2608_v30 = vpack.c.bf16 %v2602_v8, %v2601_v13  ;;  %v1249_v54 = vrot.slane %v5400_v46, 1  ;;  %v1252_v51 = vrot.slane %v5403_v56, 1  ;;  %v3568_v42 = vld [vmem:[%s5287_s7 + $0x38] sm:$0xff]  }
 0x320   : > { %v2609_v47 = vpack.c.bf16 %v2604_v16, %v2603_v23  ;;  %v2610_v20 = vpack.c.bf16 %v2606_v45, %v2605_v4  ;;  %v1254_v33 = vrot.slane %v5404_v34, 1  ;;  %v5406_v21 = vunpack.c.l.bf16 %v5405_v10 }
 0x321   : > { %3436 = vmatprep.mubr.msk.bf16.mxu0 %vm1269_vm3, %v2607_v7  ;;  %v1247_v61 = vsel %vm465_vm1, %v1245_v19, %v1246_v18  ;;  %v1250_v55 = vsel %vm465_vm1, %v1248_v38, %v1249_v54  ;;  %v1253_v59 = vsel %vm465_vm1, %v1251_v22, %v1252_v51 }
 0x322   : > { %3437 = vmatmul.mubr.msk.bf16.vlgmr.msra.gmra.mrb[8].mxu0 %vm1269_vm3, %v2608_v30  ;;  %v1255_v63 = vrot.slane %v5406_v21, 1  ;;  %v1267_v62 = vpack.c.bf16 %v1250_v55, %v1247_v61 }
 0x323   : > { %3440 = vmatprep.mubr.msk.bf16.mxu0 %vm1269_vm3, %v2609_v47 }
 0x324   : > { %v1256_v52 = vsel %vm465_vm1, %v1254_v33, %v1255_v63  ;;  %1272 = vst.msk [vmem:[#allocation3 + $0x10] sm:$0xff] %vm1269_vm3, %v1267_v62 }
 0x325   : > { %v2797_v1 = vld [vmem:[#allocation3 + $0x8] sm:$0xff]  ;;  %v1268_v36 = vpack.c.bf16 %v1256_v52, %v1253_v59 }
 0x326   : > { %3449 = vmatmul.mubr.msk.bf16.vlgmr.msra.gmra.mrb[0].mxu1 %vm1269_vm3, %v2797_v1 }
 0x327   : > { %3457 = vmatpush3.bf16.msra.mxu1 %v3561_v15  ;;  %1273 = vst.msk [vmem:[#allocation3 + $0x18] sm:$0xff] %vm1269_vm3, %v1268_v36 }
 0x328   : > { %3458 = vmatprep.subr.bf16.mxu1 %v3562_v32 }
 0x32a   : > { %3441 = vmatmul.mubr.msk.bf16.gmra.mrb[12].mxu0 %vm1269_vm3, %v2610_v20 }
 0x32b   : > { %3459 = vmatpush3.bf16.msra.mxu1 %v3562_v32  ;;  %v2798_v9 = vld [vmem:[#allocation3 + $0x10] sm:$0xff] }
 0x32c   : > { %3460 = vmatprep.subr.bf16.mxu1 %v3563_v2  ;;  %3452 = vmatprep.mubr.msk.bf16.mxu1 %vm1269_vm3, %v2798_v9 }
 0x32e   : > { %v2799_v39 = vld [vmem:[#allocation3 + $0x18] sm:$0xff] }
 0x32f   : > { %3461 = vmatpush3.bf16.msra.mxu1 %v3563_v2 }
 0x330   : > { %3462 = vmatprep.subr.bf16.mxu1 %v3564_v26  ;;  %3453 = vmatmul.mubr.msk.bf16.gmra.mrb[4].mxu1 %vm1269_vm3, %v2799_v39 }
 0x333   : > { %3463 = vmatpush3.bf16.msra.mxu1 %v3564_v26 }
 0x334   : > { %3464 = vmatprep.subr.bf16.mxu1 %v3565_v44 }
 0x337   : > { %3465 = vmatpush3.bf16.msra.mxu1 %v3565_v44 }
 0x338   : > { %3466 = vmatprep.subr.bf16.mxu1 %v3566_v17 }
 0x33b   : > { %3467 = vmatpush3.bf16.msra.mxu1 %v3566_v17 }
 0x33c   : > { %3468 = vmatprep.subr.bf16.mxu1 %v3567_v35 }
 0x33f   : > { %3469 = vmatpush3.bf16.msra.mxu1 %v3567_v35 }
 0x340   : > { %3470 = vmatprep.subr.bf16.mxu1 %v3568_v42 }
 0x343   : > { %3471 = vmatpush3.bf16.msra.mxu1 %v3568_v42 }
 0x3f5   : > { %v3438_v40 = vpop.f32.mrb[8].mxu0 }
 0x3f6   : > { %v2714_v13 = vmul.f32 0.044715, %v3438_v40  ;;  %v2673_v8 = vpop.f32.mrb[9].mxu0  ;;  %v2706_v62 = vmul.f32 0.5, %v3438_v40 }
 0x3f7   : > { %v2712_v23 = vmul.f32 0.044715, %v2673_v8  ;;  %v3439_v16 = vpop.f32.mrb[10].mxu0  ;;  %v2704_v44 = vmul.f32 0.5, %v2673_v8 }
 0x3f8   : > { %v2722_v4 = vmul.f32 %v3438_v40, %v2714_v13  ;;  %v2715_v45 = vmul.f32 0.044715, %v3439_v16  ;;  %v2676_v7 = vpop.f32.mrb[11].mxu0  ;;  %v2707_v59 = vmul.f32 0.5, %v3439_v16 }
 0x3f9   : > { %v2720_v30 = vmul.f32 %v2712_v23, %v2673_v8  ;;  %v2713_v47 = vmul.f32 0.044715, %v2676_v7  ;;  %v2705_v36 = vmul.f32 0.5, %v2676_v7 }
 0x3fa   : > { %v2730_v20 = vmul.f32 %v3438_v40, %v2722_v4  ;;  %v2723_v5 = vmul.f32 %v3439_v16, %v2715_v45 }
 0x3fb   : > { %v2728_v43 = vmul.f32 %v2720_v30, %v2673_v8  ;;  %v2721_v29 = vmul.f32 %v2713_v47, %v2676_v7 }
 0x3fc   : > { %v2738_v3 = vadd.f32 %v3438_v40, %v2730_v20  ;;  %v2731_v60 = vmul.f32 %v3439_v16, %v2723_v5 }
 0x3fd   : > { %v2736_v48 = vadd.f32 %v2728_v43, %v2673_v8  ;;  %v2729_v57 = vmul.f32 %v2721_v29, %v2676_v7  ;;  %v3442_v6 = vpop.f32.mrb[12].mxu0 }
 0x3fe   : > { %v2746_v0 = vmul.f32 0.7978846, %v2738_v3  ;;  %v2739_v50 = vadd.f32 %v3439_v16, %v2731_v60  ;;  %v2718_v14 = vmul.f32 0.044715, %v3442_v6  ;;  %v2689_v37 = vpop.f32.mrb[13].mxu0  ;;  %v2710_v40 = vmul.f32 0.5, %v3442_v6 }
 0x3ff   : > { %v2744_v28 = vmul.f32 0.7978846, %v2736_v48  ;;  %v2737_v58 = vadd.f32 %v2729_v57, %v2676_v7  ;;  %v2716_v27 = vmul.f32 0.044715, %v2689_v37  ;;  %v3443_v49 = vpop.f32.mrb[14].mxu0  ;;  %v2708_v7 = vmul.f32 0.5, %v2689_v37 }
 0x400   : > { %3571 = vtanh.f32 %v2746_v0  ;;  %v2747_v41 = vmul.f32 0.7978846, %v2739_v50  ;;  %v2726_v25 = vmul.f32 %v3442_v6, %v2718_v14  ;;  %v2719_v15 = vmul.f32 0.044715, %v3443_v49  ;;  %v2692_v24 = vpop.f32.mrb[15].mxu0 }
 0x401   : > { %3573 = vtanh.f32 %v2744_v28  ;;  %v2745_v1 = vmul.f32 0.7978846, %v2737_v58  ;;  %v2724_v32 = vmul.f32 %v2716_v27, %v2689_v37  ;;  %v2717_v19 = vmul.f32 0.044715, %v2692_v24 }
 0x402   : > { %3575 = vtanh.f32 %v2747_v41  ;;  %v2734_v2 = vmul.f32 %v3442_v6, %v2726_v25  ;;  %v2727_v26 = vmul.f32 %v3443_v49, %v2719_v15  ;;  %v2711_v16 = vmul.f32 0.5, %v3443_v49 }
 0x403   : > { %3577 = vtanh.f32 %v2745_v1  ;;  %v2732_v53 = vmul.f32 %v2724_v32, %v2689_v37  ;;  %v2725_v31 = vmul.f32 %v2717_v19, %v2692_v24  ;;  %v2709_v43 = vmul.f32 0.5, %v2692_v24 }
 0x404   : > { %v2742_v18 = vadd.f32 %v3442_v6, %v2734_v2  ;;  %v2735_v38 = vmul.f32 %v3443_v49, %v2727_v26 }
 0x405   : > { %v2740_v46 = vadd.f32 %v2732_v53, %v2689_v37  ;;  %v2733_v22 = vmul.f32 %v2725_v31, %v2692_v24 }
 0x406   : > { %v2750_v54 = vmul.f32 0.7978846, %v2742_v18  ;;  %v2743_v12 = vadd.f32 %v3443_v49, %v2735_v38 }
 0x407   : > { %v2748_v11 = vmul.f32 0.7978846, %v2740_v46  ;;  %v2741_v51 = vadd.f32 %v2733_v22, %v2692_v24 }
 0x408   : > { %3579 = vtanh.f32 %v2750_v54  ;;  %v2751_v56 = vmul.f32 0.7978846, %v2743_v12 }
 0x409   : > { %3581 = vtanh.f32 %v2748_v11  ;;  %v2749_v33 = vmul.f32 0.7978846, %v2741_v51 }
 0x40a   : > { %v3572_v34 = vpop.eup %3571  ;;  %3583 = vtanh.f32 %v2751_v56 }
 0x40b   : > { %v3574_v10 = vpop.eup %3573  ;;  %v2762_v21 = vadd.f32 1.0, %v3572_v34  ;;  %3585 = vtanh.f32 %v2749_v33 }
 0x40c   : > { %v3576_v63 = vpop.eup %3575  ;;  %v2760_v61 = vadd.f32 1.0, %v3574_v10 }
 0x40d   : > { %v3578_v55 = vpop.eup %3577  ;;  %v2763_v52 = vadd.f32 1.0, %v3576_v63  ;;  %v2770_v9 = vmul.f32 %v2762_v21, %v2706_v62 }
 0x40e   : > { %v2761_v17 = vadd.f32 1.0, %v3578_v55  ;;  %v2768_v39 = vmul.f32 %v2760_v61, %v2704_v44 }
 0x40f   : > { %v2771_v35 = vmul.f32 %v2763_v52, %v2707_v59 }
 0x410   : > { %v2769_v42 = vmul.f32 %v2761_v17, %v2705_v36 }
 0x411   : > { %v2777_v13 = vpack.c.bf16 %v2771_v35, %v2770_v9 }
 0x412   : > { %v3580_v23 = vpop.eup %3579  ;;  %v2776_v4 = vpack.c.bf16 %v2769_v42, %v2768_v39 }
 0x413   : > { %v3582_v45 = vpop.eup %3581  ;;  %v2766_v30 = vadd.f32 1.0, %v3580_v23 }
 0x414   : > { %v3584_v47 = vpop.eup %3583  ;;  %3472 = vmatprep.mubr.bf16.mxu1 %v2776_v4  ;;  %v2764_v20 = vadd.f32 1.0, %v3582_v45 }
 0x415   : > { %3473 = vmatmul.mubr.bf16.vlgmr.msra.gmra.mrb[0].mxu1 %v2777_v13  ;;  %v2767_v5 = vadd.f32 1.0, %v3584_v47  ;;  %v3586_v8 = vpop.eup %3585  ;;  %v2774_v3 = vmul.f32 %v2766_v30, %v2710_v40 }
 0x416   : > { %v2765_v29 = vadd.f32 1.0, %v3586_v8  ;;  %v2772_v48 = vmul.f32 %v2764_v20, %v2708_v7 }
 0x417   : > { %v2775_v60 = vmul.f32 %v2767_v5, %v2711_v16 }
 0x418   : > { %v2773_v57 = vmul.f32 %v2765_v29, %v2709_v43 }
 0x419   : > { %v2779_v0 = vpack.c.bf16 %v2775_v60, %v2774_v3 }
 0x41a   : > { %v2778_v50 = vpack.c.bf16 %v2773_v57, %v2772_v48 }
 0x41c   : > { %3476 = vmatprep.mubr.bf16.mxu1 %v2778_v50 }
 0x41d   : > { %3477 = vmatmul.mubr.bf16.gmra.mrb[4].mxu1 %v2779_v0 }
 0x4e8   : > { %v3474_v14 = vpop.f32.mrb[0].mxu1 }
 0x4e9   : > { %3008 = vst [vmem:[%s328_s29 + $0x10] sm:$0xff] %v3474_v14  ;;  %v2975_v6 = vpop.f32.mrb[1].mxu1 }
 0x4ea   : > { %3006 = vst [vmem:[%s328_s29] sm:$0xff] %v2975_v6  ;;  %v3475_v28 = vpop.f32.mrb[2].mxu1 }
 0x4eb   : > { %3009 = vst [vmem:[%s328_s29 + $0x18] sm:$0xff] %v3475_v28  ;;  %v2978_v37 = vpop.f32.mrb[3].mxu1 }
 0x4ec   : > { %3007 = vst [vmem:[%s328_s29 + $0x8] sm:$0xff] %v2978_v37 }
 0x4f0   : > { %v3478_v58 = vpop.f32.mrb[4].mxu1 }
 0x4f1   : > { %3012 = vst [vmem:[%s328_s29 + $0x30] sm:$0xff] %v3478_v58  ;;  %v2991_v27 = vpop.f32.mrb[5].mxu1 }
 0x4f2   : > { %3010 = vst [vmem:[%s328_s29 + $0x20] sm:$0xff] %v2991_v27  ;;  %v3479_v49 = vpop.f32.mrb[6].mxu1 }
 0x4f3   : > { %3013 = vst [vmem:[%s328_s29 + $0x38] sm:$0xff] %v3479_v49  ;;  %v2994_v41 = vpop.f32.mrb[7].mxu1 }
 0x4f4   : > { %3011 = vst [vmem:[%s328_s29 + $0x28] sm:$0xff] %v2994_v41 }
 0x4f5   : > { %3600 = shalt.err (!%p3597_p3)
}
 0x4f6   : > { %s3601_s23 = scalar_lea.hbm %s5237_s22, 1024  ;;  %s3605_s16 = scalar_lea.hbm %s5289_s9, 2048 }
 0x4f7   : > { %p3602_p4 = scmp.ne.s32.totalorder %s5237_s22, %s3601_s23  ;;  %p3606_p9 = scmp.lt.u32.totalorder %s5237_s22, %s5289_s9 }
 0x4f8   : > { %p3607_p10 = scmp.lt.u32.totalorder %s3605_s16, %s3601_s23  ;;  %p3609_p12 = scmp.lt.u32.totalorder %s3601_s23, %s5237_s22 }
 0x4f9   : > { %p3603_p7 = pnand %p3602_p4, %p3745_p5 }
 0x4fa   : > { %p3608_p11 = por %p3607_p10, %p3606_p9 }
 0x4fb   : > { %p3604_p8 = pneg %p3603_p7 }
 0x4fc   : > { %p3610_p13 = por %p3609_p12, %p3608_p11 }
 0x4fe   : > { %p3611_p0 = pnand %p3610_p13, %p3604_p8 }
 0x500   : > { %3614 = shalt.err (!%p3611_p0)
}
 0x501   : > { %s3655_s13 = smov 128   ;;  %s3656_s25 = smov 8  }
 0x502   : > { %3513 = dma.vmem_to_hbm [thread:$0]  (%p3745_p5), %s5232_s14, 1024, %s5237_s22, %s5239_s24, %s3655_s13, %s3655_s13, %s3656_s25  }
 0x503 PF: > { %p3519_p1 = scmp.ge.s32.totalorder %s3649_s12, 2  ;;  %s3043_s26 = sand.u32 1, %s3637_s30  }
 0x504   : > { %s3044_s27 = scalar_lea.sflag [#allocation5], %s3043_s26 }
 0x505   : > { %p3516_p2 = pnand %p3519_p1, %p3749_p6 }
 0x507   : > { %3632 = dma.done.wait (!%p3516_p2), %s3044_s27, 1024  }
 0x508   : > { %3634 = vsyncadd (!%p3516_p2), %s3044_s27, 4294966272  ;;  %p19_p3 = scmp.ge.s32.totalorder %s3732_s15, 4   ;;  %s5407_s30 = smov %s3641_s10 }
 0x509   : > { %s5408_s10 = smov %s3645_s11  ;;  %s5409_s11 = smov %s3743_s18 }
 0x50a   : > { %s5410_s12 = smov %s3732_s15  ;;  %21 = sbr.rel (!%p19_p3) target bundleno = 3 (0x3), region = 100 }
 0x511   :  { %3049 = vsyncpa [#allocation5], 1 }
 0x512   :  { %3051 = vsyncpa [#allocation5 + $0x1], 1 }

</bundles_post_ra>
